<compile_context>
chip_gen: v5e
topology: v5e:2x2
jax: 0.10.0
libtpu: 0.0.40
codegen_flags: <defaults>
</compile_context>

<pallas_src>
import functools

import jax
import jax.numpy as jnp
import numpy as np
from jax import lax
from jax.experimental import pallas as pl
from jax.experimental.pallas import tpu as pltpu


# ----------------------------------------------------------------------------
# Pallas kernel: one grid step = one chunk of Tc time steps.
# Activations are (B, feature); z gates are (B, 1).
# ----------------------------------------------------------------------------
def _hm_lstm_kernel(
    # inputs
    x_ref,        # (1, Tc*B, In)   current time chunk, rows ordered (t, b)
    wx1g_ref,     # (In, 4*H1)      layer-1 input -> gates (transposed)
    wx1z_ref,     # (1, In)         layer-1 input -> z-logit row
    b1g_ref,      # (1, 4*H1)
    b1z_ref,      # (1, 1)
    u11g_ref,     # (H1, 4*H1)      layer-1 recurrent (own h) -> gates
    u21g_ref,     # (H2, 4*H1)      layer-1 top-down (h2)     -> gates
    z1w_ref,      # (1, H1+H2)      layer-1 z-logit rows [U11_z | U21_z]
    w2g_ref,      # (H1, 4*H2)      layer-2 bottom-up (h1)    -> gates
    u2g_ref,      # (H2, 4*H2)      layer-2 recurrent (own h) -> gates
    z2w_ref,      # (1, H1+H2)      layer-2 z-logit rows [W01_z | U11_z]
    b2g_ref,      # (1, 4*H2)
    b2z_ref,      # (1, 1)
    # outputs
    seq_ref,      # (Tc, B, H1+H2+2)  packed [h1 | h2 | z1 | z2] per step
    h1f_ref, c1f_ref, z1f_ref, h2f_ref, c2f_ref, z2f_ref,     # final (B, *)
    # scratch
    xg_ref,       # (Tc, B, 4*H1)   per-chunk precomputed x projection (gates)
    xz_ref,       # (Tc, B, 1)      per-chunk precomputed x projection (z)
    sh1, sc1, sz1, sh2, sc2, sz2,   # recurrent state carried across chunks
    *, Tc, B, H1, H2, a, unroll):

    f32 = jnp.float32

    # ---- zero initial state (hidden=None) at the first chunk only.
    @pl.when(pl.program_id(0) == 0)
    def _init():
        for r in (sh1, sc1, sz1, sh2, sc2, sz2):
            r[...] = jnp.zeros_like(r)

    # ---- hoisted: per-chunk input projection for all Tc steps in one MXU pass
    # (M = Tc*B rows) + bias folded in; split into gate / z parts off the loop.
    x2d = x_ref[0]                                                 # (Tc*B, In)
    projg = jnp.dot(x2d, wx1g_ref[...],
                    preferred_element_type=f32) + b1g_ref[...]     # (Tc*B, 4H1)
    projz = (jnp.sum(x2d * wx1z_ref[...], axis=-1, keepdims=True)
             + b1z_ref[...])                                       # (Tc*B, 1)
    for tt in range(Tc):                                           # static, off the loop
        xg_ref[tt] = projg[tt * B:(tt + 1) * B, :]
        xz_ref[tt] = projz[tt * B:(tt + 1) * B, :]

    # ---- hoisted loop-invariant weight loads / broadcasts.
    u11_g = u11g_ref[...]
    u21_g = u21g_ref[...]
    z1w = z1w_ref[...]
    z1w_a = z1w[:, 0:H1]
    z1w_b = z1w[:, H1:H1 + H2]
    w2_g = w2g_ref[...]
    u2_g = u2g_ref[...]
    z2w = z2w_ref[...]
    z2w_a = z2w[:, 0:H1]
    z2w_b = z2w[:, H1:H1 + H2]
    b2_g = jnp.broadcast_to(b2g_ref[...], (B, 4 * H2))
    b2_z = b2z_ref[...]                                            # (1, 1)

    def gate_act(gates, zlog, H):
        # One EUP sigmoid over the contiguous f|i|o block; tanh(g) separate.
        sig = jax.nn.sigmoid(gates[:, 0:3 * H])
        f = sig[:, 0:H]
        i = sig[:, H:2 * H]
        o = sig[:, 2 * H:3 * H]
        g = jnp.tanh(gates[:, 3 * H:4 * H])
        # hard_sigm(a, x) = clamp((x*a + 1)/2, 0, 1); bound(): z = (z_hat > 0.5)
        z_hat = jnp.clip((zlog * a + 1.0) * 0.5, 0.0, 1.0)
        z_new = (z_hat > 0.5).astype(f32)
        return f, i, o, g, z_new

    def step(t, carry):
        h1, c1, z1, h2, c2, z2 = carry

        # -------- layer 1 (z_bottom == 1 exactly) --------
        hz1 = z1 * h2                                              # gated top-down input
        gates1 = (xg_ref[t]
                  + jnp.dot(h1, u11_g, preferred_element_type=f32)
                  + jnp.dot(hz1, u21_g, preferred_element_type=f32))
        zlog1 = (xz_ref[t]
                 + jnp.sum(h1 * z1w_a, axis=-1, keepdims=True)
                 + jnp.sum(hz1 * z1w_b, axis=-1, keepdims=True))
        f1, i1, o1, g1, z1n = gate_act(gates1, zlog1, H1)
        ig1 = i1 * g1
        # z_bottom == 1 => (1-z_b) terms vanish and h = o * tanh(c)
        c1n = z1 * ig1 + (1.0 - z1) * (f1 * c1 + ig1)
        h1n = o1 * jnp.tanh(c1n)

        # -------- layer 2 (last layer: no top-down term) --------
        hz2 = z1n * h2                                             # gated bottom-up recurrence
        gates2 = (b2_g
                  + jnp.dot(h1n, w2_g, preferred_element_type=f32)
                  + jnp.dot(hz2, u2_g, preferred_element_type=f32))
        zlog2 = (b2_z
                 + jnp.sum(h1n * z2w_a, axis=-1, keepdims=True)
                 + jnp.sum(hz2 * z2w_b, axis=-1, keepdims=True))
        f2, i2, o2, g2, z2n = gate_act(gates2, zlog2, H2)
        ig2 = i2 * g2
        nz2 = 1.0 - z2
        c2n = z2 * ig2 + nz2 * (1.0 - z1n) * c2 + nz2 * z1n * (f2 * c2 + ig2)
        oc2 = o2 * jnp.tanh(c2n)
        h2n = z2 * oc2 + nz2 * (1.0 - z1n) * h2 + nz2 * z1n * oc2

        # Single packed per-step store into the VMEM-resident output chunk.
        seq_ref[t] = jnp.concatenate([h1n, h2n, z1n, z2n], axis=1)
        return h1n, c1n, z1n, h2n, c2n, z2n

    carry0 = (sh1[...], sc1[...], sz1[...], sh2[...], sc2[...], sz2[...])
    h1, c1, z1, h2, c2, z2 = lax.fori_loop(0, Tc, step, carry0, unroll=unroll)

    # Carry state to the next chunk + expose the final state.
    sh1[...] = h1; sc1[...] = c1; sz1[...] = z1
    sh2[...] = h2; sc2[...] = c2; sz2[...] = z2
    h1f_ref[...] = h1; c1f_ref[...] = c1; z1f_ref[...] = z1
    h2f_ref[...] = h2; c2f_ref[...] = c2; z2f_ref[...] = z2


# ----------------------------------------------------------------------------
# Wrapper: weight prep (split z-column, transpose to feature-in-lane),
# pallas_call, and layout glue back to the PyTorch output convention.
# ----------------------------------------------------------------------------
def hm_lstm_forward(inputs, params, H1, H2, a, chunk_t=None):
    """inputs: (T, B, In) float32 (the module's pre-transpose convention).

    Returns (h_1, h_2, z_1, z_2, hidden) with PyTorch layouts:
      h_1 (B,T,H1), h_2 (B,T,H2), z_1/z_2 (B,T,1),
      hidden = (h_t1 (H1,B), c_t1 (H1,B), z_t1 (1,B), h_t2, c_t2, z_t2).
    """
    T, B, In = inputs.shape
    x = inputs.astype(jnp.float32)

    # Chunk size for the time axis (must divide T).
    if chunk_t is None:
        chunk_t = 8
    Tc = max(1, min(int(chunk_t), T))
    while T % Tc:
        Tc -= 1
    n_chunks = T // Tc
    unroll = max(1, min(Tc, 8))          # bounded unroll inside each chunk

    G1 = 4 * H1
    G2 = 4 * H2
    Dp = H1 + H2 + 2

    W01_1 = params["W01_1"]; U11_1 = params["U11_1"]; U21_1 = params["U21_1"]
    W01_2 = params["W01_2"]; U11_2 = params["U11_2"]
    b1 = params["b1"]; b2 = params["b2"]

    # Layer 1: gate weights transposed to (K, 4*H1); z-logit rows split out.
    wx1_g = W01_1[:G1, :].T                                   # (In, 4H1)
    wx1_z = W01_1[G1:G1 + 1, :]                               # (1, In)
    b1_g = b1[:G1].reshape(1, G1)
    b1_z = b1[G1:].reshape(1, 1)
    u11_g = U11_1[:G1, :].T                                   # (H1, 4H1)
    u21_g = U21_1[:G1, :].T                                   # (H2, 4H1)
    z1w = jnp.concatenate([U11_1[G1], U21_1[G1]]).reshape(1, H1 + H2)

    # Layer 2 (last layer, no top-down weights).
    w2_g = W01_2[:G2, :].T                                    # (H1, 4H2)
    u2_g = U11_2[:G2, :].T                                    # (H2, 4H2)
    z2w = jnp.concatenate([W01_2[G2], U11_2[G2]]).reshape(1, H1 + H2)
    b2_g = b2[:G2].reshape(1, G2)
    b2_z = b2[G2:].reshape(1, 1)

    # Rows of each chunk ordered (t, b): (T,B,In) -> (n_chunks, Tc*B, In).
    x_chunks = x.reshape(n_chunks, Tc * B, In)

    out_shape = (
        jax.ShapeDtypeStruct((T, B, Dp), jnp.float32),        # packed sequences
        jax.ShapeDtypeStruct((B, H1), jnp.float32),           # h_t1 final
        jax.ShapeDtypeStruct((B, H1), jnp.float32),           # c_t1 final
        jax.ShapeDtypeStruct((B, 1), jnp.float32),            # z_t1 final
        jax.ShapeDtypeStruct((B, H2), jnp.float32),           # h_t2 final
        jax.ShapeDtypeStruct((B, H2), jnp.float32),           # c_t2 final
        jax.ShapeDtypeStruct((B, 1), jnp.float32),            # z_t2 final
    )

    grid_spec = pltpu.PrefetchScalarGridSpec(
        num_scalar_prefetch=0,
        grid=(n_chunks,),
        in_specs=[
            pl.BlockSpec((1, Tc * B, In), lambda i: (i, 0, 0)),   # x chunk (streamed)
            pl.BlockSpec((In, G1), lambda i: (0, 0)),             # wx1_g
            pl.BlockSpec((1, In), lambda i: (0, 0)),              # wx1_z
            pl.BlockSpec((1, G1), lambda i: (0, 0)),              # b1_g
            pl.BlockSpec((1, 1), lambda i: (0, 0)),               # b1_z
            pl.BlockSpec((H1, G1), lambda i: (0, 0)),             # u11_g
            pl.BlockSpec((H2, G1), lambda i: (0, 0)),             # u21_g
            pl.BlockSpec((1, H1 + H2), lambda i: (0, 0)),         # z1w
            pl.BlockSpec((H1, G2), lambda i: (0, 0)),             # w2_g
            pl.BlockSpec((H2, G2), lambda i: (0, 0)),             # u2_g
            pl.BlockSpec((1, H1 + H2), lambda i: (0, 0)),         # z2w
            pl.BlockSpec((1, G2), lambda i: (0, 0)),              # b2_g
            pl.BlockSpec((1, 1), lambda i: (0, 0)),               # b2_z
        ],
        out_specs=[
            pl.BlockSpec((Tc, B, Dp), lambda i: (i, 0, 0)),       # packed seq chunk
            pl.BlockSpec((B, H1), lambda i: (0, 0)),
            pl.BlockSpec((B, H1), lambda i: (0, 0)),
            pl.BlockSpec((B, 1), lambda i: (0, 0)),
            pl.BlockSpec((B, H2), lambda i: (0, 0)),
            pl.BlockSpec((B, H2), lambda i: (0, 0)),
            pl.BlockSpec((B, 1), lambda i: (0, 0)),
        ],
        scratch_shapes=[
            pltpu.VMEM((Tc, B, G1), jnp.float32),   # x projection (gates)
            pltpu.VMEM((Tc, B, 1), jnp.float32),    # x projection (z)
            pltpu.VMEM((B, H1), jnp.float32),       # h1 carry
            pltpu.VMEM((B, H1), jnp.float32),       # c1 carry
            pltpu.VMEM((B, 1), jnp.float32),        # z1 carry
            pltpu.VMEM((B, H2), jnp.float32),       # h2 carry
            pltpu.VMEM((B, H2), jnp.float32),       # c2 carry
            pltpu.VMEM((B, 1), jnp.float32),        # z2 carry
        ],
    )

    flops = (2 * T * B * ((In + H1 + H2) * (G1 + 1) + (H1 + H2) * (G2 + 1))
             + 24 * T * B * (H1 + H2))
    transcendentals = 4 * T * B * (H1 + H2) + 2 * T * B
    bytes_accessed = 4 * (x.size + wx1_g.size + u11_g.size + u21_g.size
                          + w2_g.size + u2_g.size
                          + T * B * Dp + B * (2 * H1 + 2 * H2 + 2))

    kernel = functools.partial(_hm_lstm_kernel, Tc=Tc, B=B, H1=H1, H2=H2,
                               a=float(a), unroll=unroll)
    outs = pl.pallas_call(
        kernel,
        out_shape=out_shape,
        grid_spec=grid_spec,
        compiler_params=pltpu.CompilerParams(
            dimension_semantics=("arbitrary",)),      # sequential recurrence
        cost_estimate=pl.CostEstimate(
            flops=int(flops), transcendentals=int(transcendentals),
            bytes_accessed=int(bytes_accessed)),
    )(x_chunks, wx1_g, wx1_z, b1_g, b1_z, u11_g, u21_g, z1w,
      w2_g, u2_g, z2w, b2_g, b2_z)

    seq, h1f, c1f, z1f, h2f, c2f, z2f = outs

    # PyTorch stacks h_t.t() along dim=1 -> (B, T, H); hidden stays (H, B).
    seq_bt = jnp.transpose(seq, (1, 0, 2))            # (B, T, H1+H2+2)
    h_1 = seq_bt[:, :, 0:H1]
    h_2 = seq_bt[:, :, H1:H1 + H2]
    z_1 = seq_bt[:, :, H1 + H2:H1 + H2 + 1]
    z_2 = seq_bt[:, :, H1 + H2 + 1:H1 + H2 + 2]
    hidden = (h1f.T, c1f.T, z1f.T, h2f.T, c2f.T, z2f.T)
    return h_1, h_2, z_1, z_2, hidden


# ----------------------------------------------------------------------------
# Pure-JAX reference: direct (feature, batch) port of the PyTorch forward.
# ----------------------------------------------------------------------------
def _hm_cell_ref(c, h_bottom, h, h_top, z, z_bottom, W01, U11, U21, bias, H, a,
                 last_layer):
    s_recur = jnp.dot(W01, h_bottom, preferred_element_type=jnp.float32)
    if last_layer:
        s_topdown = jnp.zeros_like(s_recur)
    else:
        s_topdown = z * jnp.dot(U21, h_top, preferred_element_type=jnp.float32)
    s_bottomup = z_bottom * jnp.dot(U11, h, preferred_element_type=jnp.float32)
    f_s = s_recur + s_topdown + s_bottomup + bias            # (4H+1, B)

    f = jax.nn.sigmoid(f_s[0:H, :])
    i = jax.nn.sigmoid(f_s[H:2 * H, :])
    o = jax.nn.sigmoid(f_s[2 * H:3 * H, :])
    g = jnp.tanh(f_s[3 * H:4 * H, :])
    z_hat = jnp.clip((f_s[4 * H:4 * H + 1, :] * a + 1.0) / 2.0, 0.0, 1.0)

    one = jnp.ones_like(f)
    c_new = (z * (i * g)
             + (one - z) * (one - z_bottom) * c
             + (one - z) * z_bottom * (f * c + i * g))
    tanh_c = jnp.tanh(c_new)
    h_new = (z * o * tanh_c
             + (one - z) * (one - z_bottom) * h
             + (one - z) * z_bottom * o * tanh_c)
    z_new = (z_hat > 0.5).astype(jnp.float32)
    return h_new, c_new, z_new


def hm_lstm_ref(inputs, params, H1, H2, a):
    T, B, In = inputs.shape
    b1 = params["b1"].reshape(-1, 1)
    b2 = params["b2"].reshape(-1, 1)
    h_t1 = jnp.zeros((H1, B), jnp.float32)
    c_t1 = jnp.zeros((H1, B), jnp.float32)
    z_t1 = jnp.zeros((1, B), jnp.float32)
    h_t2 = jnp.zeros((H2, B), jnp.float32)
    c_t2 = jnp.zeros((H2, B), jnp.float32)
    z_t2 = jnp.zeros((1, B), jnp.float32)
    z_one = jnp.ones((1, B), jnp.float32)
    h1s, h2s, z1s, z2s = [], [], [], []
    for t in range(T):
        x_t = inputs[t].T                      # (In, B)
        h_t1, c_t1, z_t1 = _hm_cell_ref(
            c_t1, x_t, h_t1, h_t2, z_t1, z_one,
            params["W01_1"], params["U11_1"], params["U21_1"], b1,
            H1, a, last_layer=False)
        h_t2, c_t2, z_t2 = _hm_cell_ref(
            c_t2, h_t1, h_t2, None, z_t2, z_t1,
            params["W01_2"], params["U11_2"], None, b2,
            H2, a, last_layer=True)
        h1s.append(h_t1.T)
        h2s.append(h_t2.T)
        z1s.append(z_t1.T)
        z2s.append(z_t2.T)
    hidden = (h_t1, c_t1, z_t1, h_t2, c_t2, z_t2)
    return (jnp.stack(h1s, 1), jnp.stack(h2s, 1),
            jnp.stack(z1s, 1), jnp.stack(z2s, 1), hidden)


# ----------------------------------------------------------------------------
# Deterministic parameter init (uniform(-1/sqrt(H), 1/sqrt(H)), as in torch).
# ----------------------------------------------------------------------------
def init_params(key, input_size, size_list):
    H1, H2 = size_list
    ks = jax.random.split(key, 7)
    s1 = 1.0 / float(np.sqrt(H1))
    s2 = 1.0 / float(np.sqrt(H2))
    return {
        "U11_1": jax.random.uniform(ks[0], (4 * H1 + 1, H1), jnp.float32, -s1, s1),
        "U21_1": jax.random.uniform(ks[1], (4 * H1 + 1, H2), jnp.float32, -s1, s1),
        "W01_1": jax.random.uniform(ks[2], (4 * H1 + 1, input_size), jnp.float32, -s1, s1),
        "b1":    jax.random.uniform(ks[3], (4 * H1 + 1,), jnp.float32, -s1, s1),
        "U11_2": jax.random.uniform(ks[4], (4 * H2 + 1, H2), jnp.float32, -s2, s2),
        "W01_2": jax.random.uniform(ks[5], (4 * H2 + 1, H1), jnp.float32, -s2, s2),
        "b2":    jax.random.uniform(ks[6], (4 * H2 + 1,), jnp.float32, -s2, s2),
    }


if __name__ == "__main__":
    T, B, In = 8, 2, 16
    H1, H2 = 32, 32
    a = 1.0

    key = jax.random.PRNGKey(0)
    pkey, xkey = jax.random.split(key)
    params = init_params(pkey, In, [H1, H2])
    inputs = jax.random.normal(xkey, (T, B, In), jnp.float32)   # (time, batch, feature)

    # chunk_t=4 -> grid=(2,): exercises the cross-chunk state carry in scratch.
    out = hm_lstm_forward(inputs, params, H1, H2, a, chunk_t=4)
    out = jax.block_until_ready(out)

    ref = hm_lstm_ref(inputs, params, H1, H2, a)

    ok = True
    for got, want in zip(out[:4], ref[:4]):
        ok &= bool(np.allclose(np.asarray(got), np.asarray(want),
                               rtol=1e-4, atol=1e-4))
    for got, want in zip(out[4], ref[4]):
        ok &= bool(np.allclose(np.asarray(got), np.asarray(want),
                               rtol=1e-4, atol=1e-4))

    if ok:
        print("KERNEL_OK")
    else:
        raise SystemExit("Pallas output mismatch vs pure-JAX reference")
</pallas_src>

<mosaic_0001>
module attributes {stable_mosaic.version = 11 : i64} {
  func.func @_hm_lstm_kernel(%arg0: i32, %arg1: memref<1x8x16xf32, #tpu.memory_space<vmem>>, %arg2: memref<16x128xf32, #tpu.memory_space<vmem>>, %arg3: memref<1x16xf32, #tpu.memory_space<vmem>>, %arg4: memref<1x128xf32, #tpu.memory_space<vmem>>, %arg5: memref<1x1xf32, #tpu.memory_space<vmem>>, %arg6: memref<32x128xf32, #tpu.memory_space<vmem>>, %arg7: memref<32x128xf32, #tpu.memory_space<vmem>>, %arg8: memref<1x64xf32, #tpu.memory_space<vmem>>, %arg9: memref<32x128xf32, #tpu.memory_space<vmem>>, %arg10: memref<32x128xf32, #tpu.memory_space<vmem>>, %arg11: memref<1x64xf32, #tpu.memory_space<vmem>>, %arg12: memref<1x128xf32, #tpu.memory_space<vmem>>, %arg13: memref<1x1xf32, #tpu.memory_space<vmem>>, %arg14: memref<4x2x66xf32, #tpu.memory_space<vmem>>, %arg15: memref<2x32xf32, #tpu.memory_space<vmem>>, %arg16: memref<2x32xf32, #tpu.memory_space<vmem>>, %arg17: memref<2x1xf32, #tpu.memory_space<vmem>>, %arg18: memref<2x32xf32, #tpu.memory_space<vmem>>, %arg19: memref<2x32xf32, #tpu.memory_space<vmem>>, %arg20: memref<2x1xf32, #tpu.memory_space<vmem>>, %arg21: memref<4x2x128xf32, #tpu.memory_space<vmem>>, %arg22: memref<4x2x1xf32, #tpu.memory_space<vmem>>, %arg23: memref<2x32xf32, #tpu.memory_space<vmem>>, %arg24: memref<2x32xf32, #tpu.memory_space<vmem>>, %arg25: memref<2x1xf32, #tpu.memory_space<vmem>>, %arg26: memref<2x32xf32, #tpu.memory_space<vmem>>, %arg27: memref<2x32xf32, #tpu.memory_space<vmem>>, %arg28: memref<2x1xf32, #tpu.memory_space<vmem>>) attributes {dimension_semantics = [#tpu.dimension_semantics<arbitrary>], iteration_bounds = array<i64: 2>, scalar_prefetch = 0 : i64, scratch_operands = 8 : i64, tpu.core_type = #tpu.core_type<tc>, window_params = [{transform_indices = @transform_0, window_bounds = array<i64: 1, 8, 16>}, {pipeline_mode = #tpu.pipeline_mode<synchronous>, transform_indices = @transform_1, window_bounds = array<i64: 16, 128>}, {pipeline_mode = #tpu.pipeline_mode<synchronous>, transform_indices = @transform_2, window_bounds = array<i64: 1, 16>}, {pipeline_mode = #tpu.pipeline_mode<synchronous>, transform_indices = @transform_3, window_bounds = array<i64: 1, 128>}, {pipeline_mode = #tpu.pipeline_mode<synchronous>, transform_indices = @transform_4, window_bounds = array<i64: 1, 1>}, {pipeline_mode = #tpu.pipeline_mode<synchronous>, transform_indices = @transform_5, window_bounds = array<i64: 32, 128>}, {pipeline_mode = #tpu.pipeline_mode<synchronous>, transform_indices = @transform_6, window_bounds = array<i64: 32, 128>}, {pipeline_mode = #tpu.pipeline_mode<synchronous>, transform_indices = @transform_7, window_bounds = array<i64: 1, 64>}, {pipeline_mode = #tpu.pipeline_mode<synchronous>, transform_indices = @transform_8, window_bounds = array<i64: 32, 128>}, {pipeline_mode = #tpu.pipeline_mode<synchronous>, transform_indices = @transform_9, window_bounds = array<i64: 32, 128>}, {pipeline_mode = #tpu.pipeline_mode<synchronous>, transform_indices = @transform_10, window_bounds = array<i64: 1, 64>}, {pipeline_mode = #tpu.pipeline_mode<synchronous>, transform_indices = @transform_11, window_bounds = array<i64: 1, 128>}, {pipeline_mode = #tpu.pipeline_mode<synchronous>, transform_indices = @transform_12, window_bounds = array<i64: 1, 1>}, {transform_indices = @transform_13, window_bounds = array<i64: 4, 2, 66>}, {pipeline_mode = #tpu.pipeline_mode<synchronous>, transform_indices = @transform_14, window_bounds = array<i64: 2, 32>}, {pipeline_mode = #tpu.pipeline_mode<synchronous>, transform_indices = @transform_15, window_bounds = array<i64: 2, 32>}, {pipeline_mode = #tpu.pipeline_mode<synchronous>, transform_indices = @transform_16, window_bounds = array<i64: 2, 1>}, {pipeline_mode = #tpu.pipeline_mode<synchronous>, transform_indices = @transform_17, window_bounds = array<i64: 2, 32>}, {pipeline_mode = #tpu.pipeline_mode<synchronous>, transform_indices = @transform_18, window_bounds = array<i64: 2, 32>}, {pipeline_mode = #tpu.pipeline_mode<synchronous>, transform_indices = @transform_19, window_bounds = array<i64: 2, 1>}]} {
    %c0_i32 = arith.constant 0 : i32
    %0 = arith.cmpi eq, %arg0, %c0_i32 : i32
    %1 = arith.extui %0 : i1 to i32
    %c0_i32_0 = arith.constant 0 : i32
    %2 = arith.cmpi ne, %1, %c0_i32_0 : i32
    scf.if %2 {
      %cst_214 = arith.constant 0.000000e+00 : f32
      %630 = vector.broadcast %cst_214 : f32 to vector<2x32xf32>
      %c0_215 = arith.constant 0 : index
      %c0_216 = arith.constant 0 : index
      %631 = vector.load %arg23[%c0_215, %c0_216] : memref<2x32xf32, #tpu.memory_space<vmem>>, vector<2x32xf32>
      tpu.vector_store %arg23[%c0_215, %c0_216], %630 {strides = array<i32>} : memref<2x32xf32, #tpu.memory_space<vmem>>, vector<2x32xf32>,
      %cst_217 = arith.constant 0.000000e+00 : f32
      %632 = vector.broadcast %cst_217 : f32 to vector<2x32xf32>
      %c0_218 = arith.constant 0 : index
      %c0_219 = arith.constant 0 : index
      %633 = vector.load %arg24[%c0_218, %c0_219] : memref<2x32xf32, #tpu.memory_space<vmem>>, vector<2x32xf32>
      tpu.vector_store %arg24[%c0_218, %c0_219], %632 {strides = array<i32>} : memref<2x32xf32, #tpu.memory_space<vmem>>, vector<2x32xf32>,
      %cst_220 = arith.constant 0.000000e+00 : f32
      %634 = vector.broadcast %cst_220 : f32 to vector<2x1xf32>
      %c0_221 = arith.constant 0 : index
      %c0_222 = arith.constant 0 : index
      %635 = vector.load %arg25[%c0_221, %c0_222] : memref<2x1xf32, #tpu.memory_space<vmem>>, vector<2x1xf32>
      tpu.vector_store %arg25[%c0_221, %c0_222], %634 {strides = array<i32>} : memref<2x1xf32, #tpu.memory_space<vmem>>, vector<2x1xf32>,
      %cst_223 = arith.constant 0.000000e+00 : f32
      %636 = vector.broadcast %cst_223 : f32 to vector<2x32xf32>
      %c0_224 = arith.constant 0 : index
      %c0_225 = arith.constant 0 : index
      %637 = vector.load %arg26[%c0_224, %c0_225] : memref<2x32xf32, #tpu.memory_space<vmem>>, vector<2x32xf32>
      tpu.vector_store %arg26[%c0_224, %c0_225], %636 {strides = array<i32>} : memref<2x32xf32, #tpu.memory_space<vmem>>, vector<2x32xf32>,
      %cst_226 = arith.constant 0.000000e+00 : f32
      %638 = vector.broadcast %cst_226 : f32 to vector<2x32xf32>
      %c0_227 = arith.constant 0 : index
      %c0_228 = arith.constant 0 : index
      %639 = vector.load %arg27[%c0_227, %c0_228] : memref<2x32xf32, #tpu.memory_space<vmem>>, vector<2x32xf32>
      tpu.vector_store %arg27[%c0_227, %c0_228], %638 {strides = array<i32>} : memref<2x32xf32, #tpu.memory_space<vmem>>, vector<2x32xf32>,
      %cst_229 = arith.constant 0.000000e+00 : f32
      %640 = vector.broadcast %cst_229 : f32 to vector<2x1xf32>
      %c0_230 = arith.constant 0 : index
      %c0_231 = arith.constant 0 : index
      %641 = vector.load %arg28[%c0_230, %c0_231] : memref<2x1xf32, #tpu.memory_space<vmem>>, vector<2x1xf32>
      tpu.vector_store %arg28[%c0_230, %c0_231], %640 {strides = array<i32>} : memref<2x1xf32, #tpu.memory_space<vmem>>, vector<2x1xf32>,
    } else {
    }
    %c0 = arith.constant 0 : index
    %c0_1 = arith.constant 0 : index
    %c0_2 = arith.constant 0 : index
    %3 = vector.load %arg1[%c0, %c0_1, %c0_2] : memref<1x8x16xf32, #tpu.memory_space<vmem>>, vector<1x8x16xf32>
    %4 = vector.shape_cast %3 : vector<1x8x16xf32> to vector<8x16xf32>
    %c0_3 = arith.constant 0 : index
    %c0_4 = arith.constant 0 : index
    %5 = vector.load %arg2[%c0_3, %c0_4] : memref<16x128xf32, #tpu.memory_space<vmem>>, vector<16x128xf32>
    %cst = arith.constant dense<0.000000e+00> : vector<8x128xf32>
    %6 = tpu.matmul %4, %5, %cst {dimension_numbers = #tpu.dot_dimension_numbers<[1], [0], [0], [1], [0, 0, 1, 1], [], []>} : vector<8x16xf32>, vector<16x128xf32>, vector<8x128xf32> -> vector<8x128xf32>
    %c0_5 = arith.constant 0 : index
    %c0_6 = arith.constant 0 : index
    %7 = vector.load %arg4[%c0_5, %c0_6] : memref<1x128xf32, #tpu.memory_space<vmem>>, vector<1x128xf32>
    %8 = vector.broadcast %7 : vector<1x128xf32> to vector<8x128xf32>
    %9 = arith.addf %6, %8 : vector<8x128xf32>
    %c0_7 = arith.constant 0 : index
    %c0_8 = arith.constant 0 : index
    %10 = vector.load %arg3[%c0_7, %c0_8] : memref<1x16xf32, #tpu.memory_space<vmem>>, vector<1x16xf32>
    %11 = vector.broadcast %10 : vector<1x16xf32> to vector<8x16xf32>
    %12 = arith.mulf %4, %11 : vector<8x16xf32>
    %cst_9 = arith.constant dense<0.000000e+00> : vector<8xf32>
    %13 = vector.multi_reduction <add>, %12, %cst_9 [1] : vector<8x16xf32> to vector<8xf32>
    %14 = vector.shape_cast %13 : vector<8xf32> to vector<8x1xf32>
    %c0_10 = arith.constant 0 : index
    %c0_11 = arith.constant 0 : index
    %15 = vector.load %arg5[%c0_10, %c0_11] : memref<1x1xf32, #tpu.memory_space<vmem>>, vector<1x1xf32>
    %16 = vector.broadcast %15 : vector<1x1xf32> to vector<8x1xf32>
    %17 = arith.addf %14, %16 : vector<8x1xf32>
    %18 = vector.extract_strided_slice %9 {offsets = [0, 0], sizes = [2, 128], strides = [1, 1]} : vector<8x128xf32> to vector<2x128xf32>
    %c0_12 = arith.constant 0 : index
    %c0_13 = arith.constant 0 : index
    %c0_14 = arith.constant 0 : index
    %19 = vector.load %arg21[%c0_12, %c0_13, %c0_14] : memref<4x2x128xf32, #tpu.memory_space<vmem>>, vector<1x2x128xf32>
    %20 = vector.shape_cast %19 : vector<1x2x128xf32> to vector<2x128xf32>
    %21 = vector.shape_cast %18 : vector<2x128xf32> to vector<1x2x128xf32>
    tpu.vector_store %arg21[%c0_12, %c0_13, %c0_14], %21 {strides = array<i32>} : memref<4x2x128xf32, #tpu.memory_space<vmem>>, vector<1x2x128xf32>,
    %22 = vector.extract_strided_slice %17 {offsets = [0, 0], sizes = [2, 1], strides = [1, 1]} : vector<8x1xf32> to vector<2x1xf32>
    %c0_15 = arith.constant 0 : index
    %c0_16 = arith.constant 0 : index
    %c0_17 = arith.constant 0 : index
    %23 = vector.load %arg22[%c0_15, %c0_16, %c0_17] : memref<4x2x1xf32, #tpu.memory_space<vmem>>, vector<1x2x1xf32>
    %24 = vector.shape_cast %23 : vector<1x2x1xf32> to vector<2x1xf32>
    %25 = vector.shape_cast %22 : vector<2x1xf32> to vector<1x2x1xf32>
    tpu.vector_store %arg22[%c0_15, %c0_16, %c0_17], %25 {strides = array<i32>} : memref<4x2x1xf32, #tpu.memory_space<vmem>>, vector<1x2x1xf32>,
    %26 = vector.extract_strided_slice %9 {offsets = [2, 0], sizes = [2, 128], strides = [1, 1]} : vector<8x128xf32> to vector<2x128xf32>
    %c1 = arith.constant 1 : index
    %c0_18 = arith.constant 0 : index
    %c0_19 = arith.constant 0 : index
    %27 = vector.load %arg21[%c1, %c0_18, %c0_19] : memref<4x2x128xf32, #tpu.memory_space<vmem>>, vector<1x2x128xf32>
    %28 = vector.shape_cast %27 : vector<1x2x128xf32> to vector<2x128xf32>
    %29 = vector.shape_cast %26 : vector<2x128xf32> to vector<1x2x128xf32>
    tpu.vector_store %arg21[%c1, %c0_18, %c0_19], %29 {strides = array<i32>} : memref<4x2x128xf32, #tpu.memory_space<vmem>>, vector<1x2x128xf32>,
    %30 = vector.extract_strided_slice %17 {offsets = [2, 0], sizes = [2, 1], strides = [1, 1]} : vector<8x1xf32> to vector<2x1xf32>
    %c1_20 = arith.constant 1 : index
    %c0_21 = arith.constant 0 : index
    %c0_22 = arith.constant 0 : index
    %31 = vector.load %arg22[%c1_20, %c0_21, %c0_22] : memref<4x2x1xf32, #tpu.memory_space<vmem>>, vector<1x2x1xf32>
    %32 = vector.shape_cast %31 : vector<1x2x1xf32> to vector<2x1xf32>
    %33 = vector.shape_cast %30 : vector<2x1xf32> to vector<1x2x1xf32>
    tpu.vector_store %arg22[%c1_20, %c0_21, %c0_22], %33 {strides = array<i32>} : memref<4x2x1xf32, #tpu.memory_space<vmem>>, vector<1x2x1xf32>,
    %34 = vector.extract_strided_slice %9 {offsets = [4, 0], sizes = [2, 128], strides = [1, 1]} : vector<8x128xf32> to vector<2x128xf32>
    %c2 = arith.constant 2 : index
    %c0_23 = arith.constant 0 : index
    %c0_24 = arith.constant 0 : index
    %35 = vector.load %arg21[%c2, %c0_23, %c0_24] : memref<4x2x128xf32, #tpu.memory_space<vmem>>, vector<1x2x128xf32>
    %36 = vector.shape_cast %35 : vector<1x2x128xf32> to vector<2x128xf32>
    %37 = vector.shape_cast %34 : vector<2x128xf32> to vector<1x2x128xf32>
    tpu.vector_store %arg21[%c2, %c0_23, %c0_24], %37 {strides = array<i32>} : memref<4x2x128xf32, #tpu.memory_space<vmem>>, vector<1x2x128xf32>,
    %38 = vector.extract_strided_slice %17 {offsets = [4, 0], sizes = [2, 1], strides = [1, 1]} : vector<8x1xf32> to vector<2x1xf32>
    %c2_25 = arith.constant 2 : index
    %c0_26 = arith.constant 0 : index
    %c0_27 = arith.constant 0 : index
    %39 = vector.load %arg22[%c2_25, %c0_26, %c0_27] : memref<4x2x1xf32, #tpu.memory_space<vmem>>, vector<1x2x1xf32>
    %40 = vector.shape_cast %39 : vector<1x2x1xf32> to vector<2x1xf32>
    %41 = vector.shape_cast %38 : vector<2x1xf32> to vector<1x2x1xf32>
    tpu.vector_store %arg22[%c2_25, %c0_26, %c0_27], %41 {strides = array<i32>} : memref<4x2x1xf32, #tpu.memory_space<vmem>>, vector<1x2x1xf32>,
    %42 = vector.extract_strided_slice %9 {offsets = [6, 0], sizes = [2, 128], strides = [1, 1]} : vector<8x128xf32> to vector<2x128xf32>
    %c3 = arith.constant 3 : index
    %c0_28 = arith.constant 0 : index
    %c0_29 = arith.constant 0 : index
    %43 = vector.load %arg21[%c3, %c0_28, %c0_29] : memref<4x2x128xf32, #tpu.memory_space<vmem>>, vector<1x2x128xf32>
    %44 = vector.shape_cast %43 : vector<1x2x128xf32> to vector<2x128xf32>
    %45 = vector.shape_cast %42 : vector<2x128xf32> to vector<1x2x128xf32>
    tpu.vector_store %arg21[%c3, %c0_28, %c0_29], %45 {strides = array<i32>} : memref<4x2x128xf32, #tpu.memory_space<vmem>>, vector<1x2x128xf32>,
    %46 = vector.extract_strided_slice %17 {offsets = [6, 0], sizes = [2, 1], strides = [1, 1]} : vector<8x1xf32> to vector<2x1xf32>
    %c3_30 = arith.constant 3 : index
    %c0_31 = arith.constant 0 : index
    %c0_32 = arith.constant 0 : index
    %47 = vector.load %arg22[%c3_30, %c0_31, %c0_32] : memref<4x2x1xf32, #tpu.memory_space<vmem>>, vector<1x2x1xf32>
    %48 = vector.shape_cast %47 : vector<1x2x1xf32> to vector<2x1xf32>
    %49 = vector.shape_cast %46 : vector<2x1xf32> to vector<1x2x1xf32>
    tpu.vector_store %arg22[%c3_30, %c0_31, %c0_32], %49 {strides = array<i32>} : memref<4x2x1xf32, #tpu.memory_space<vmem>>, vector<1x2x1xf32>,
    %c0_33 = arith.constant 0 : index
    %c0_34 = arith.constant 0 : index
    %50 = vector.load %arg6[%c0_33, %c0_34] : memref<32x128xf32, #tpu.memory_space<vmem>>, vector<32x128xf32>
    %c0_35 = arith.constant 0 : index
    %c0_36 = arith.constant 0 : index
    %51 = vector.load %arg7[%c0_35, %c0_36] : memref<32x128xf32, #tpu.memory_space<vmem>>, vector<32x128xf32>
    %c0_37 = arith.constant 0 : index
    %c0_38 = arith.constant 0 : index
    %52 = vector.load %arg8[%c0_37, %c0_38] : memref<1x64xf32, #tpu.memory_space<vmem>>, vector<1x64xf32>
    %53 = vector.extract_strided_slice %52 {offsets = [0, 0], sizes = [1, 32], strides = [1, 1]} : vector<1x64xf32> to vector<1x32xf32>
    %54 = vector.extract_strided_slice %52 {offsets = [0, 32], sizes = [1, 32], strides = [1, 1]} : vector<1x64xf32> to vector<1x32xf32>
    %c0_39 = arith.constant 0 : index
    %c0_40 = arith.constant 0 : index
    %55 = vector.load %arg9[%c0_39, %c0_40] : memref<32x128xf32, #tpu.memory_space<vmem>>, vector<32x128xf32>
    %c0_41 = arith.constant 0 : index
    %c0_42 = arith.constant 0 : index
    %56 = vector.load %arg10[%c0_41, %c0_42] : memref<32x128xf32, #tpu.memory_space<vmem>>, vector<32x128xf32>
    %c0_43 = arith.constant 0 : index
    %c0_44 = arith.constant 0 : index
    %57 = vector.load %arg11[%c0_43, %c0_44] : memref<1x64xf32, #tpu.memory_space<vmem>>, vector<1x64xf32>
    %58 = vector.extract_strided_slice %57 {offsets = [0, 0], sizes = [1, 32], strides = [1, 1]} : vector<1x64xf32> to vector<1x32xf32>
    %59 = vector.extract_strided_slice %57 {offsets = [0, 32], sizes = [1, 32], strides = [1, 1]} : vector<1x64xf32> to vector<1x32xf32>
    %c0_45 = arith.constant 0 : index
    %c0_46 = arith.constant 0 : index
    %60 = vector.load %arg12[%c0_45, %c0_46] : memref<1x128xf32, #tpu.memory_space<vmem>>, vector<1x128xf32>
    %61 = vector.shape_cast %60 : vector<1x128xf32> to vector<1x128xf32>
    %62 = vector.broadcast %61 : vector<1x128xf32> to vector<2x128xf32>
    %c0_47 = arith.constant 0 : index
    %c0_48 = arith.constant 0 : index
    %63 = vector.load %arg13[%c0_47, %c0_48] : memref<1x1xf32, #tpu.memory_space<vmem>>, vector<1x1xf32>
    %c0_49 = arith.constant 0 : index
    %c0_50 = arith.constant 0 : index
    %64 = vector.load %arg23[%c0_49, %c0_50] : memref<2x32xf32, #tpu.memory_space<vmem>>, vector<2x32xf32>
    %c0_51 = arith.constant 0 : index
    %c0_52 = arith.constant 0 : index
    %65 = vector.load %arg24[%c0_51, %c0_52] : memref<2x32xf32, #tpu.memory_space<vmem>>, vector<2x32xf32>
    %c0_53 = arith.constant 0 : index
    %c0_54 = arith.constant 0 : index
    %66 = vector.load %arg25[%c0_53, %c0_54] : memref<2x1xf32, #tpu.memory_space<vmem>>, vector<2x1xf32>
    %c0_55 = arith.constant 0 : index
    %c0_56 = arith.constant 0 : index
    %67 = vector.load %arg26[%c0_55, %c0_56] : memref<2x32xf32, #tpu.memory_space<vmem>>, vector<2x32xf32>
    %c0_57 = arith.constant 0 : index
    %c0_58 = arith.constant 0 : index
    %68 = vector.load %arg27[%c0_57, %c0_58] : memref<2x32xf32, #tpu.memory_space<vmem>>, vector<2x32xf32>
    %c0_59 = arith.constant 0 : index
    %c0_60 = arith.constant 0 : index
    %69 = vector.load %arg28[%c0_59, %c0_60] : memref<2x1xf32, #tpu.memory_space<vmem>>, vector<2x1xf32>
    %c0_i32_61 = arith.constant 0 : i32
    %70 = vector.broadcast %66 : vector<2x1xf32> to vector<2x32xf32>
    %71 = arith.mulf %70, %67 : vector<2x32xf32>
    %72 = arith.index_cast %c0_i32_61 : i32 to index
    %c0_62 = arith.constant 0 : index
    %c0_63 = arith.constant 0 : index
    %73 = vector.load %arg21[%72, %c0_62, %c0_63] : memref<4x2x128xf32, #tpu.memory_space<vmem>>, vector<1x2x128xf32>
    %74 = vector.shape_cast %73 : vector<1x2x128xf32> to vector<2x128xf32>
    %cst_64 = arith.constant dense<0.000000e+00> : vector<2x128xf32>
    %75 = tpu.matmul %64, %50, %cst_64 {dimension_numbers = #tpu.dot_dimension_numbers<[1], [0], [0], [1], [0, 0, 1, 1], [], []>} : vector<2x32xf32>, vector<32x128xf32>, vector<2x128xf32> -> vector<2x128xf32>
    %76 = arith.addf %74, %75 : vector<2x128xf32>
    %cst_65 = arith.constant dense<0.000000e+00> : vector<2x128xf32>
    %77 = tpu.matmul %71, %51, %cst_65 {dimension_numbers = #tpu.dot_dimension_numbers<[1], [0], [0], [1], [0, 0, 1, 1], [], []>} : vector<2x32xf32>, vector<32x128xf32>, vector<2x128xf32> -> vector<2x128xf32>
    %78 = arith.addf %76, %77 : vector<2x128xf32>
    %79 = arith.index_cast %c0_i32_61 : i32 to index
    %c0_66 = arith.constant 0 : index
    %c0_67 = arith.constant 0 : index
    %80 = vector.load %arg22[%79, %c0_66, %c0_67] : memref<4x2x1xf32, #tpu.memory_space<vmem>>, vector<1x2x1xf32>
    %81 = vector.shape_cast %80 : vector<1x2x1xf32> to vector<2x1xf32>
    %82 = vector.broadcast %53 : vector<1x32xf32> to vector<2x32xf32>
    %83 = arith.mulf %64, %82 : vector<2x32xf32>
    %cst_68 = arith.constant dense<0.000000e+00> : vector<2xf32>
    %84 = vector.multi_reduction <add>, %83, %cst_68 [1] : vector<2x32xf32> to vector<2xf32>
    %85 = vector.shape_cast %84 : vector<2xf32> to vector<2x1xf32>
    %86 = arith.addf %81, %85 : vector<2x1xf32>
    %87 = vector.broadcast %54 : vector<1x32xf32> to vector<2x32xf32>
    %88 = arith.mulf %71, %87 : vector<2x32xf32>
    %cst_69 = arith.constant dense<0.000000e+00> : vector<2xf32>
    %89 = vector.multi_reduction <add>, %88, %cst_69 [1] : vector<2x32xf32> to vector<2xf32>
    %90 = vector.shape_cast %89 : vector<2xf32> to vector<2x1xf32>
    %91 = arith.addf %86, %90 : vector<2x1xf32>
    %92 = vector.extract_strided_slice %78 {offsets = [0, 0], sizes = [2, 96], strides = [1, 1]} : vector<2x128xf32> to vector<2x96xf32>
    %93 = arith.negf %92 : vector<2x96xf32>
    %94 = math.exp %93 : vector<2x96xf32>
    %cst_70 = arith.constant 1.000000e+00 : f32
    %95 = vector.broadcast %cst_70 : f32 to vector<2x96xf32>
    %96 = arith.addf %95, %94 : vector<2x96xf32>
    %97 = arith.divf %95, %96 : vector<2x96xf32>
    %98 = vector.extract_strided_slice %97 {offsets = [0, 0], sizes = [2, 32], strides = [1, 1]} : vector<2x96xf32> to vector<2x32xf32>
    %99 = vector.extract_strided_slice %97 {offsets = [0, 32], sizes = [2, 32], strides = [1, 1]} : vector<2x96xf32> to vector<2x32xf32>
    %100 = vector.extract_strided_slice %97 {offsets = [0, 64], sizes = [2, 32], strides = [1, 1]} : vector<2x96xf32> to vector<2x32xf32>
    %101 = vector.extract_strided_slice %78 {offsets = [0, 96], sizes = [2, 32], strides = [1, 1]} : vector<2x128xf32> to vector<2x32xf32>
    %102 = math.tanh %101 : vector<2x32xf32>
    %cst_71 = arith.constant 1.000000e+00 : f32
    %103 = vector.broadcast %cst_71 : f32 to vector<2x1xf32>
    %104 = arith.mulf %91, %103 : vector<2x1xf32>
    %cst_72 = arith.constant 1.000000e+00 : f32
    %105 = vector.broadcast %cst_72 : f32 to vector<2x1xf32>
    %106 = arith.addf %104, %105 : vector<2x1xf32>
    %cst_73 = arith.constant 5.000000e-01 : f32
    %107 = vector.broadcast %cst_73 : f32 to vector<2x1xf32>
    %108 = arith.mulf %106, %107 : vector<2x1xf32>
    %cst_74 = arith.constant 0.000000e+00 : f32
    %cst_75 = arith.constant 1.000000e+00 : f32
    %109 = vector.broadcast %cst_74 : f32 to vector<2x1xf32>
    %110 = arith.maximumf %109, %108 : vector<2x1xf32>
    %111 = vector.broadcast %cst_75 : f32 to vector<2x1xf32>
    %112 = arith.minimumf %111, %110 : vector<2x1xf32>
    %cst_76 = arith.constant 5.000000e-01 : f32
    %113 = vector.broadcast %cst_76 : f32 to vector<2x1xf32>
    %114 = arith.cmpf ogt, %112, %113 : vector<2x1xf32>
    %115 = arith.extui %114 : vector<2x1xi1> to vector<2x1xi32>
    %116 = arith.sitofp %115 : vector<2x1xi32> to vector<2x1xf32>
    %117 = arith.mulf %99, %102 : vector<2x32xf32>
    %118 = vector.broadcast %66 : vector<2x1xf32> to vector<2x32xf32>
    %119 = arith.mulf %118, %117 : vector<2x32xf32>
    %cst_77 = arith.constant 1.000000e+00 : f32
    %120 = vector.broadcast %cst_77 : f32 to vector<2x1xf32>
    %121 = arith.subf %120, %66 : vector<2x1xf32>
    %122 = arith.mulf %98, %65 : vector<2x32xf32>
    %123 = arith.addf %122, %117 : vector<2x32xf32>
    %124 = vector.broadcast %121 : vector<2x1xf32> to vector<2x32xf32>
    %125 = arith.mulf %124, %123 : vector<2x32xf32>
    %126 = arith.addf %119, %125 : vector<2x32xf32>
    %127 = math.tanh %126 : vector<2x32xf32>
    %128 = arith.mulf %100, %127 : vector<2x32xf32>
    %129 = vector.broadcast %116 : vector<2x1xf32> to vector<2x32xf32>
    %130 = arith.mulf %129, %67 : vector<2x32xf32>
    %cst_78 = arith.constant dense<0.000000e+00> : vector<2x128xf32>
    %131 = tpu.matmul %128, %55, %cst_78 {dimension_numbers = #tpu.dot_dimension_numbers<[1], [0], [0], [1], [0, 0, 1, 1], [], []>} : vector<2x32xf32>, vector<32x128xf32>, vector<2x128xf32> -> vector<2x128xf32>
    %132 = arith.addf %62, %131 : vector<2x128xf32>
    %cst_79 = arith.constant dense<0.000000e+00> : vector<2x128xf32>
    %133 = tpu.matmul %130, %56, %cst_79 {dimension_numbers = #tpu.dot_dimension_numbers<[1], [0], [0], [1], [0, 0, 1, 1], [], []>} : vector<2x32xf32>, vector<32x128xf32>, vector<2x128xf32> -> vector<2x128xf32>
    %134 = arith.addf %132, %133 : vector<2x128xf32>
    %135 = vector.broadcast %58 : vector<1x32xf32> to vector<2x32xf32>
    %136 = arith.mulf %128, %135 : vector<2x32xf32>
    %cst_80 = arith.constant dense<0.000000e+00> : vector<2xf32>
    %137 = vector.multi_reduction <add>, %136, %cst_80 [1] : vector<2x32xf32> to vector<2xf32>
    %138 = vector.shape_cast %137 : vector<2xf32> to vector<2x1xf32>
    %139 = vector.broadcast %63 : vector<1x1xf32> to vector<2x1xf32>
    %140 = arith.addf %139, %138 : vector<2x1xf32>
    %141 = vector.broadcast %59 : vector<1x32xf32> to vector<2x32xf32>
    %142 = arith.mulf %130, %141 : vector<2x32xf32>
    %cst_81 = arith.constant dense<0.000000e+00> : vector<2xf32>
    %143 = vector.multi_reduction <add>, %142, %cst_81 [1] : vector<2x32xf32> to vector<2xf32>
    %144 = vector.shape_cast %143 : vector<2xf32> to vector<2x1xf32>
    %145 = arith.addf %140, %144 : vector<2x1xf32>
    %146 = vector.extract_strided_slice %134 {offsets = [0, 0], sizes = [2, 96], strides = [1, 1]} : vector<2x128xf32> to vector<2x96xf32>
    %147 = arith.negf %146 : vector<2x96xf32>
    %148 = math.exp %147 : vector<2x96xf32>
    %cst_82 = arith.constant 1.000000e+00 : f32
    %149 = vector.broadcast %cst_82 : f32 to vector<2x96xf32>
    %150 = arith.addf %149, %148 : vector<2x96xf32>
    %151 = arith.divf %149, %150 : vector<2x96xf32>
    %152 = vector.extract_strided_slice %151 {offsets = [0, 0], sizes = [2, 32], strides = [1, 1]} : vector<2x96xf32> to vector<2x32xf32>
    %153 = vector.extract_strided_slice %151 {offsets = [0, 32], sizes = [2, 32], strides = [1, 1]} : vector<2x96xf32> to vector<2x32xf32>
    %154 = vector.extract_strided_slice %151 {offsets = [0, 64], sizes = [2, 32], strides = [1, 1]} : vector<2x96xf32> to vector<2x32xf32>
    %155 = vector.extract_strided_slice %134 {offsets = [0, 96], sizes = [2, 32], strides = [1, 1]} : vector<2x128xf32> to vector<2x32xf32>
    %156 = math.tanh %155 : vector<2x32xf32>
    %cst_83 = arith.constant 1.000000e+00 : f32
    %157 = vector.broadcast %cst_83 : f32 to vector<2x1xf32>
    %158 = arith.mulf %145, %157 : vector<2x1xf32>
    %cst_84 = arith.constant 1.000000e+00 : f32
    %159 = vector.broadcast %cst_84 : f32 to vector<2x1xf32>
    %160 = arith.addf %158, %159 : vector<2x1xf32>
    %cst_85 = arith.constant 5.000000e-01 : f32
    %161 = vector.broadcast %cst_85 : f32 to vector<2x1xf32>
    %162 = arith.mulf %160, %161 : vector<2x1xf32>
    %cst_86 = arith.constant 0.000000e+00 : f32
    %cst_87 = arith.constant 1.000000e+00 : f32
    %163 = vector.broadcast %cst_86 : f32 to vector<2x1xf32>
    %164 = arith.maximumf %163, %162 : vector<2x1xf32>
    %165 = vector.broadcast %cst_87 : f32 to vector<2x1xf32>
    %166 = arith.minimumf %165, %164 : vector<2x1xf32>
    %cst_88 = arith.constant 5.000000e-01 : f32
    %167 = vector.broadcast %cst_88 : f32 to vector<2x1xf32>
    %168 = arith.cmpf ogt, %166, %167 : vector<2x1xf32>
    %169 = arith.extui %168 : vector<2x1xi1> to vector<2x1xi32>
    %170 = arith.sitofp %169 : vector<2x1xi32> to vector<2x1xf32>
    %171 = arith.mulf %153, %156 : vector<2x32xf32>
    %cst_89 = arith.constant 1.000000e+00 : f32
    %172 = vector.broadcast %cst_89 : f32 to vector<2x1xf32>
    %173 = arith.subf %172, %69 : vector<2x1xf32>
    %174 = vector.broadcast %69 : vector<2x1xf32> to vector<2x32xf32>
    %175 = arith.mulf %174, %171 : vector<2x32xf32>
    %cst_90 = arith.constant 1.000000e+00 : f32
    %176 = vector.broadcast %cst_90 : f32 to vector<2x1xf32>
    %177 = arith.subf %176, %116 : vector<2x1xf32>
    %178 = arith.mulf %173, %177 : vector<2x1xf32>
    %179 = vector.broadcast %178 : vector<2x1xf32> to vector<2x32xf32>
    %180 = arith.mulf %179, %68 : vector<2x32xf32>
    %181 = arith.addf %175, %180 : vector<2x32xf32>
    %182 = arith.mulf %173, %116 : vector<2x1xf32>
    %183 = arith.mulf %152, %68 : vector<2x32xf32>
    %184 = arith.addf %183, %171 : vector<2x32xf32>
    %185 = vector.broadcast %182 : vector<2x1xf32> to vector<2x32xf32>
    %186 = arith.mulf %185, %184 : vector<2x32xf32>
    %187 = arith.addf %181, %186 : vector<2x32xf32>
    %188 = math.tanh %187 : vector<2x32xf32>
    %189 = arith.mulf %154, %188 : vector<2x32xf32>
    %190 = vector.broadcast %69 : vector<2x1xf32> to vector<2x32xf32>
    %191 = arith.mulf %190, %189 : vector<2x32xf32>
    %cst_91 = arith.constant 1.000000e+00 : f32
    %192 = vector.broadcast %cst_91 : f32 to vector<2x1xf32>
    %193 = arith.subf %192, %116 : vector<2x1xf32>
    %194 = arith.mulf %173, %193 : vector<2x1xf32>
    %195 = vector.broadcast %194 : vector<2x1xf32> to vector<2x32xf32>
    %196 = arith.mulf %195, %67 : vector<2x32xf32>
    %197 = arith.addf %191, %196 : vector<2x32xf32>
    %198 = arith.mulf %173, %116 : vector<2x1xf32>
    %199 = vector.broadcast %198 : vector<2x1xf32> to vector<2x32xf32>
    %200 = arith.mulf %199, %189 : vector<2x32xf32>
    %201 = arith.addf %197, %200 : vector<2x32xf32>
    %202 = tpu.concatenate %128, %201, %116, %170 in 1 : vector<2x32xf32>, vector<2x32xf32>, vector<2x1xf32>, vector<2x1xf32> -> vector<2x66xf32>
    %203 = arith.index_cast %c0_i32_61 : i32 to index
    %c0_92 = arith.constant 0 : index
    %c0_93 = arith.constant 0 : index
    %204 = vector.load %arg14[%203, %c0_92, %c0_93] : memref<4x2x66xf32, #tpu.memory_space<vmem>>, vector<1x2x66xf32>
    %205 = vector.shape_cast %204 : vector<1x2x66xf32> to vector<2x66xf32>
    %206 = vector.shape_cast %202 : vector<2x66xf32> to vector<1x2x66xf32>
    tpu.vector_store %arg14[%203, %c0_92, %c0_93], %206 {strides = array<i32>} : memref<4x2x66xf32, #tpu.memory_space<vmem>>, vector<1x2x66xf32>,
    %c1_i32 = arith.constant 1 : i32
    %207 = vector.broadcast %116 : vector<2x1xf32> to vector<2x32xf32>
    %208 = arith.mulf %207, %201 : vector<2x32xf32>
    %209 = arith.index_cast %c1_i32 : i32 to index
    %c0_94 = arith.constant 0 : index
    %c0_95 = arith.constant 0 : index
    %210 = vector.load %arg21[%209, %c0_94, %c0_95] : memref<4x2x128xf32, #tpu.memory_space<vmem>>, vector<1x2x128xf32>
    %211 = vector.shape_cast %210 : vector<1x2x128xf32> to vector<2x128xf32>
    %cst_96 = arith.constant dense<0.000000e+00> : vector<2x128xf32>
    %212 = tpu.matmul %128, %50, %cst_96 {dimension_numbers = #tpu.dot_dimension_numbers<[1], [0], [0], [1], [0, 0, 1, 1], [], []>} : vector<2x32xf32>, vector<32x128xf32>, vector<2x128xf32> -> vector<2x128xf32>
    %213 = arith.addf %211, %212 : vector<2x128xf32>
    %cst_97 = arith.constant dense<0.000000e+00> : vector<2x128xf32>
    %214 = tpu.matmul %208, %51, %cst_97 {dimension_numbers = #tpu.dot_dimension_numbers<[1], [0], [0], [1], [0, 0, 1, 1], [], []>} : vector<2x32xf32>, vector<32x128xf32>, vector<2x128xf32> -> vector<2x128xf32>
    %215 = arith.addf %213, %214 : vector<2x128xf32>
    %216 = arith.index_cast %c1_i32 : i32 to index
    %c0_98 = arith.constant 0 : index
    %c0_99 = arith.constant 0 : index
    %217 = vector.load %arg22[%216, %c0_98, %c0_99] : memref<4x2x1xf32, #tpu.memory_space<vmem>>, vector<1x2x1xf32>
    %218 = vector.shape_cast %217 : vector<1x2x1xf32> to vector<2x1xf32>
    %219 = vector.broadcast %53 : vector<1x32xf32> to vector<2x32xf32>
    %220 = arith.mulf %128, %219 : vector<2x32xf32>
    %cst_100 = arith.constant dense<0.000000e+00> : vector<2xf32>
    %221 = vector.multi_reduction <add>, %220, %cst_100 [1] : vector<2x32xf32> to vector<2xf32>
    %222 = vector.shape_cast %221 : vector<2xf32> to vector<2x1xf32>
    %223 = arith.addf %218, %222 : vector<2x1xf32>
    %224 = vector.broadcast %54 : vector<1x32xf32> to vector<2x32xf32>
    %225 = arith.mulf %208, %224 : vector<2x32xf32>
    %cst_101 = arith.constant dense<0.000000e+00> : vector<2xf32>
    %226 = vector.multi_reduction <add>, %225, %cst_101 [1] : vector<2x32xf32> to vector<2xf32>
    %227 = vector.shape_cast %226 : vector<2xf32> to vector<2x1xf32>
    %228 = arith.addf %223, %227 : vector<2x1xf32>
    %229 = vector.extract_strided_slice %215 {offsets = [0, 0], sizes = [2, 96], strides = [1, 1]} : vector<2x128xf32> to vector<2x96xf32>
    %230 = arith.negf %229 : vector<2x96xf32>
    %231 = math.exp %230 : vector<2x96xf32>
    %cst_102 = arith.constant 1.000000e+00 : f32
    %232 = vector.broadcast %cst_102 : f32 to vector<2x96xf32>
    %233 = arith.addf %232, %231 : vector<2x96xf32>
    %234 = arith.divf %232, %233 : vector<2x96xf32>
    %235 = vector.extract_strided_slice %234 {offsets = [0, 0], sizes = [2, 32], strides = [1, 1]} : vector<2x96xf32> to vector<2x32xf32>
    %236 = vector.extract_strided_slice %234 {offsets = [0, 32], sizes = [2, 32], strides = [1, 1]} : vector<2x96xf32> to vector<2x32xf32>
    %237 = vector.extract_strided_slice %234 {offsets = [0, 64], sizes = [2, 32], strides = [1, 1]} : vector<2x96xf32> to vector<2x32xf32>
    %238 = vector.extract_strided_slice %215 {offsets = [0, 96], sizes = [2, 32], strides = [1, 1]} : vector<2x128xf32> to vector<2x32xf32>
    %239 = math.tanh %238 : vector<2x32xf32>
    %cst_103 = arith.constant 1.000000e+00 : f32
    %240 = vector.broadcast %cst_103 : f32 to vector<2x1xf32>
    %241 = arith.mulf %228, %240 : vector<2x1xf32>
    %cst_104 = arith.constant 1.000000e+00 : f32
    %242 = vector.broadcast %cst_104 : f32 to vector<2x1xf32>
    %243 = arith.addf %241, %242 : vector<2x1xf32>
    %cst_105 = arith.constant 5.000000e-01 : f32
    %244 = vector.broadcast %cst_105 : f32 to vector<2x1xf32>
    %245 = arith.mulf %243, %244 : vector<2x1xf32>
    %cst_106 = arith.constant 0.000000e+00 : f32
    %cst_107 = arith.constant 1.000000e+00 : f32
    %246 = vector.broadcast %cst_106 : f32 to vector<2x1xf32>
    %247 = arith.maximumf %246, %245 : vector<2x1xf32>
    %248 = vector.broadcast %cst_107 : f32 to vector<2x1xf32>
    %249 = arith.minimumf %248, %247 : vector<2x1xf32>
    %cst_108 = arith.constant 5.000000e-01 : f32
    %250 = vector.broadcast %cst_108 : f32 to vector<2x1xf32>
    %251 = arith.cmpf ogt, %249, %250 : vector<2x1xf32>
    %252 = arith.extui %251 : vector<2x1xi1> to vector<2x1xi32>
    %253 = arith.sitofp %252 : vector<2x1xi32> to vector<2x1xf32>
    %254 = arith.mulf %236, %239 : vector<2x32xf32>
    %255 = vector.broadcast %116 : vector<2x1xf32> to vector<2x32xf32>
    %256 = arith.mulf %255, %254 : vector<2x32xf32>
    %cst_109 = arith.constant 1.000000e+00 : f32
    %257 = vector.broadcast %cst_109 : f32 to vector<2x1xf32>
    %258 = arith.subf %257, %116 : vector<2x1xf32>
    %259 = arith.mulf %235, %126 : vector<2x32xf32>
    %260 = arith.addf %259, %254 : vector<2x32xf32>
    %261 = vector.broadcast %258 : vector<2x1xf32> to vector<2x32xf32>
    %262 = arith.mulf %261, %260 : vector<2x32xf32>
    %263 = arith.addf %256, %262 : vector<2x32xf32>
    %264 = math.tanh %263 : vector<2x32xf32>
    %265 = arith.mulf %237, %264 : vector<2x32xf32>
    %266 = vector.broadcast %253 : vector<2x1xf32> to vector<2x32xf32>
    %267 = arith.mulf %266, %201 : vector<2x32xf32>
    %cst_110 = arith.constant dense<0.000000e+00> : vector<2x128xf32>
    %268 = tpu.matmul %265, %55, %cst_110 {dimension_numbers = #tpu.dot_dimension_numbers<[1], [0], [0], [1], [0, 0, 1, 1], [], []>} : vector<2x32xf32>, vector<32x128xf32>, vector<2x128xf32> -> vector<2x128xf32>
    %269 = arith.addf %62, %268 : vector<2x128xf32>
    %cst_111 = arith.constant dense<0.000000e+00> : vector<2x128xf32>
    %270 = tpu.matmul %267, %56, %cst_111 {dimension_numbers = #tpu.dot_dimension_numbers<[1], [0], [0], [1], [0, 0, 1, 1], [], []>} : vector<2x32xf32>, vector<32x128xf32>, vector<2x128xf32> -> vector<2x128xf32>
    %271 = arith.addf %269, %270 : vector<2x128xf32>
    %272 = vector.broadcast %58 : vector<1x32xf32> to vector<2x32xf32>
    %273 = arith.mulf %265, %272 : vector<2x32xf32>
    %cst_112 = arith.constant dense<0.000000e+00> : vector<2xf32>
    %274 = vector.multi_reduction <add>, %273, %cst_112 [1] : vector<2x32xf32> to vector<2xf32>
    %275 = vector.shape_cast %274 : vector<2xf32> to vector<2x1xf32>
    %276 = vector.broadcast %63 : vector<1x1xf32> to vector<2x1xf32>
    %277 = arith.addf %276, %275 : vector<2x1xf32>
    %278 = vector.broadcast %59 : vector<1x32xf32> to vector<2x32xf32>
    %279 = arith.mulf %267, %278 : vector<2x32xf32>
    %cst_113 = arith.constant dense<0.000000e+00> : vector<2xf32>
    %280 = vector.multi_reduction <add>, %279, %cst_113 [1] : vector<2x32xf32> to vector<2xf32>
    %281 = vector.shape_cast %280 : vector<2xf32> to vector<2x1xf32>
    %282 = arith.addf %277, %281 : vector<2x1xf32>
    %283 = vector.extract_strided_slice %271 {offsets = [0, 0], sizes = [2, 96], strides = [1, 1]} : vector<2x128xf32> to vector<2x96xf32>
    %284 = arith.negf %283 : vector<2x96xf32>
    %285 = math.exp %284 : vector<2x96xf32>
    %cst_114 = arith.constant 1.000000e+00 : f32
    %286 = vector.broadcast %cst_114 : f32 to vector<2x96xf32>
    %287 = arith.addf %286, %285 : vector<2x96xf32>
    %288 = arith.divf %286, %287 : vector<2x96xf32>
    %289 = vector.extract_strided_slice %288 {offsets = [0, 0], sizes = [2, 32], strides = [1, 1]} : vector<2x96xf32> to vector<2x32xf32>
    %290 = vector.extract_strided_slice %288 {offsets = [0, 32], sizes = [2, 32], strides = [1, 1]} : vector<2x96xf32> to vector<2x32xf32>
    %291 = vector.extract_strided_slice %288 {offsets = [0, 64], sizes = [2, 32], strides = [1, 1]} : vector<2x96xf32> to vector<2x32xf32>
    %292 = vector.extract_strided_slice %271 {offsets = [0, 96], sizes = [2, 32], strides = [1, 1]} : vector<2x128xf32> to vector<2x32xf32>
    %293 = math.tanh %292 : vector<2x32xf32>
    %cst_115 = arith.constant 1.000000e+00 : f32
    %294 = vector.broadcast %cst_115 : f32 to vector<2x1xf32>
    %295 = arith.mulf %282, %294 : vector<2x1xf32>
    %cst_116 = arith.constant 1.000000e+00 : f32
    %296 = vector.broadcast %cst_116 : f32 to vector<2x1xf32>
    %297 = arith.addf %295, %296 : vector<2x1xf32>
    %cst_117 = arith.constant 5.000000e-01 : f32
    %298 = vector.broadcast %cst_117 : f32 to vector<2x1xf32>
    %299 = arith.mulf %297, %298 : vector<2x1xf32>
    %cst_118 = arith.constant 0.000000e+00 : f32
    %cst_119 = arith.constant 1.000000e+00 : f32
    %300 = vector.broadcast %cst_118 : f32 to vector<2x1xf32>
    %301 = arith.maximumf %300, %299 : vector<2x1xf32>
    %302 = vector.broadcast %cst_119 : f32 to vector<2x1xf32>
    %303 = arith.minimumf %302, %301 : vector<2x1xf32>
    %cst_120 = arith.constant 5.000000e-01 : f32
    %304 = vector.broadcast %cst_120 : f32 to vector<2x1xf32>
    %305 = arith.cmpf ogt, %303, %304 : vector<2x1xf32>
    %306 = arith.extui %305 : vector<2x1xi1> to vector<2x1xi32>
    %307 = arith.sitofp %306 : vector<2x1xi32> to vector<2x1xf32>
    %308 = arith.mulf %290, %293 : vector<2x32xf32>
    %cst_121 = arith.constant 1.000000e+00 : f32
    %309 = vector.broadcast %cst_121 : f32 to vector<2x1xf32>
    %310 = arith.subf %309, %170 : vector<2x1xf32>
    %311 = vector.broadcast %170 : vector<2x1xf32> to vector<2x32xf32>
    %312 = arith.mulf %311, %308 : vector<2x32xf32>
    %cst_122 = arith.constant 1.000000e+00 : f32
    %313 = vector.broadcast %cst_122 : f32 to vector<2x1xf32>
    %314 = arith.subf %313, %253 : vector<2x1xf32>
    %315 = arith.mulf %310, %314 : vector<2x1xf32>
    %316 = vector.broadcast %315 : vector<2x1xf32> to vector<2x32xf32>
    %317 = arith.mulf %316, %187 : vector<2x32xf32>
    %318 = arith.addf %312, %317 : vector<2x32xf32>
    %319 = arith.mulf %310, %253 : vector<2x1xf32>
    %320 = arith.mulf %289, %187 : vector<2x32xf32>
    %321 = arith.addf %320, %308 : vector<2x32xf32>
    %322 = vector.broadcast %319 : vector<2x1xf32> to vector<2x32xf32>
    %323 = arith.mulf %322, %321 : vector<2x32xf32>
    %324 = arith.addf %318, %323 : vector<2x32xf32>
    %325 = math.tanh %324 : vector<2x32xf32>
    %326 = arith.mulf %291, %325 : vector<2x32xf32>
    %327 = vector.broadcast %170 : vector<2x1xf32> to vector<2x32xf32>
    %328 = arith.mulf %327, %326 : vector<2x32xf32>
    %cst_123 = arith.constant 1.000000e+00 : f32
    %329 = vector.broadcast %cst_123 : f32 to vector<2x1xf32>
    %330 = arith.subf %329, %253 : vector<2x1xf32>
    %331 = arith.mulf %310, %330 : vector<2x1xf32>
    %332 = vector.broadcast %331 : vector<2x1xf32> to vector<2x32xf32>
    %333 = arith.mulf %332, %201 : vector<2x32xf32>
    %334 = arith.addf %328, %333 : vector<2x32xf32>
    %335 = arith.mulf %310, %253 : vector<2x1xf32>
    %336 = vector.broadcast %335 : vector<2x1xf32> to vector<2x32xf32>
    %337 = arith.mulf %336, %326 : vector<2x32xf32>
    %338 = arith.addf %334, %337 : vector<2x32xf32>
    %339 = tpu.concatenate %265, %338, %253, %307 in 1 : vector<2x32xf32>, vector<2x32xf32>, vector<2x1xf32>, vector<2x1xf32> -> vector<2x66xf32>
    %340 = arith.index_cast %c1_i32 : i32 to index
    %c0_124 = arith.constant 0 : index
    %c0_125 = arith.constant 0 : index
    %341 = vector.load %arg14[%340, %c0_124, %c0_125] : memref<4x2x66xf32, #tpu.memory_space<vmem>>, vector<1x2x66xf32>
    %342 = vector.shape_cast %341 : vector<1x2x66xf32> to vector<2x66xf32>
    %343 = vector.shape_cast %339 : vector<2x66xf32> to vector<1x2x66xf32>
    tpu.vector_store %arg14[%340, %c0_124, %c0_125], %343 {strides = array<i32>} : memref<4x2x66xf32, #tpu.memory_space<vmem>>, vector<1x2x66xf32>,
    %c2_i32 = arith.constant 2 : i32
    %344 = vector.broadcast %253 : vector<2x1xf32> to vector<2x32xf32>
    %345 = arith.mulf %344, %338 : vector<2x32xf32>
    %346 = arith.index_cast %c2_i32 : i32 to index
    %c0_126 = arith.constant 0 : index
    %c0_127 = arith.constant 0 : index
    %347 = vector.load %arg21[%346, %c0_126, %c0_127] : memref<4x2x128xf32, #tpu.memory_space<vmem>>, vector<1x2x128xf32>
    %348 = vector.shape_cast %347 : vector<1x2x128xf32> to vector<2x128xf32>
    %cst_128 = arith.constant dense<0.000000e+00> : vector<2x128xf32>
    %349 = tpu.matmul %265, %50, %cst_128 {dimension_numbers = #tpu.dot_dimension_numbers<[1], [0], [0], [1], [0, 0, 1, 1], [], []>} : vector<2x32xf32>, vector<32x128xf32>, vector<2x128xf32> -> vector<2x128xf32>
    %350 = arith.addf %348, %349 : vector<2x128xf32>
    %cst_129 = arith.constant dense<0.000000e+00> : vector<2x128xf32>
    %351 = tpu.matmul %345, %51, %cst_129 {dimension_numbers = #tpu.dot_dimension_numbers<[1], [0], [0], [1], [0, 0, 1, 1], [], []>} : vector<2x32xf32>, vector<32x128xf32>, vector<2x128xf32> -> vector<2x128xf32>
    %352 = arith.addf %350, %351 : vector<2x128xf32>
    %353 = arith.index_cast %c2_i32 : i32 to index
    %c0_130 = arith.constant 0 : index
    %c0_131 = arith.constant 0 : index
    %354 = vector.load %arg22[%353, %c0_130, %c0_131] : memref<4x2x1xf32, #tpu.memory_space<vmem>>, vector<1x2x1xf32>
    %355 = vector.shape_cast %354 : vector<1x2x1xf32> to vector<2x1xf32>
    %356 = vector.broadcast %53 : vector<1x32xf32> to vector<2x32xf32>
    %357 = arith.mulf %265, %356 : vector<2x32xf32>
    %cst_132 = arith.constant dense<0.000000e+00> : vector<2xf32>
    %358 = vector.multi_reduction <add>, %357, %cst_132 [1] : vector<2x32xf32> to vector<2xf32>
    %359 = vector.shape_cast %358 : vector<2xf32> to vector<2x1xf32>
    %360 = arith.addf %355, %359 : vector<2x1xf32>
    %361 = vector.broadcast %54 : vector<1x32xf32> to vector<2x32xf32>
    %362 = arith.mulf %345, %361 : vector<2x32xf32>
    %cst_133 = arith.constant dense<0.000000e+00> : vector<2xf32>
    %363 = vector.multi_reduction <add>, %362, %cst_133 [1] : vector<2x32xf32> to vector<2xf32>
    %364 = vector.shape_cast %363 : vector<2xf32> to vector<2x1xf32>
    %365 = arith.addf %360, %364 : vector<2x1xf32>
    %366 = vector.extract_strided_slice %352 {offsets = [0, 0], sizes = [2, 96], strides = [1, 1]} : vector<2x128xf32> to vector<2x96xf32>
    %367 = arith.negf %366 : vector<2x96xf32>
    %368 = math.exp %367 : vector<2x96xf32>
    %cst_134 = arith.constant 1.000000e+00 : f32
    %369 = vector.broadcast %cst_134 : f32 to vector<2x96xf32>
    %370 = arith.addf %369, %368 : vector<2x96xf32>
    %371 = arith.divf %369, %370 : vector<2x96xf32>
    %372 = vector.extract_strided_slice %371 {offsets = [0, 0], sizes = [2, 32], strides = [1, 1]} : vector<2x96xf32> to vector<2x32xf32>
    %373 = vector.extract_strided_slice %371 {offsets = [0, 32], sizes = [2, 32], strides = [1, 1]} : vector<2x96xf32> to vector<2x32xf32>
    %374 = vector.extract_strided_slice %371 {offsets = [0, 64], sizes = [2, 32], strides = [1, 1]} : vector<2x96xf32> to vector<2x32xf32>
    %375 = vector.extract_strided_slice %352 {offsets = [0, 96], sizes = [2, 32], strides = [1, 1]} : vector<2x128xf32> to vector<2x32xf32>
    %376 = math.tanh %375 : vector<2x32xf32>
    %cst_135 = arith.constant 1.000000e+00 : f32
    %377 = vector.broadcast %cst_135 : f32 to vector<2x1xf32>
    %378 = arith.mulf %365, %377 : vector<2x1xf32>
    %cst_136 = arith.constant 1.000000e+00 : f32
    %379 = vector.broadcast %cst_136 : f32 to vector<2x1xf32>
    %380 = arith.addf %378, %379 : vector<2x1xf32>
    %cst_137 = arith.constant 5.000000e-01 : f32
    %381 = vector.broadcast %cst_137 : f32 to vector<2x1xf32>
    %382 = arith.mulf %380, %381 : vector<2x1xf32>
    %cst_138 = arith.constant 0.000000e+00 : f32
    %cst_139 = arith.constant 1.000000e+00 : f32
    %383 = vector.broadcast %cst_138 : f32 to vector<2x1xf32>
    %384 = arith.maximumf %383, %382 : vector<2x1xf32>
    %385 = vector.broadcast %cst_139 : f32 to vector<2x1xf32>
    %386 = arith.minimumf %385, %384 : vector<2x1xf32>
    %cst_140 = arith.constant 5.000000e-01 : f32
    %387 = vector.broadcast %cst_140 : f32 to vector<2x1xf32>
    %388 = arith.cmpf ogt, %386, %387 : vector<2x1xf32>
    %389 = arith.extui %388 : vector<2x1xi1> to vector<2x1xi32>
    %390 = arith.sitofp %389 : vector<2x1xi32> to vector<2x1xf32>
    %391 = arith.mulf %373, %376 : vector<2x32xf32>
    %392 = vector.broadcast %253 : vector<2x1xf32> to vector<2x32xf32>
    %393 = arith.mulf %392, %391 : vector<2x32xf32>
    %cst_141 = arith.constant 1.000000e+00 : f32
    %394 = vector.broadcast %cst_141 : f32 to vector<2x1xf32>
    %395 = arith.subf %394, %253 : vector<2x1xf32>
    %396 = arith.mulf %372, %263 : vector<2x32xf32>
    %397 = arith.addf %396, %391 : vector<2x32xf32>
    %398 = vector.broadcast %395 : vector<2x1xf32> to vector<2x32xf32>
    %399 = arith.mulf %398, %397 : vector<2x32xf32>
    %400 = arith.addf %393, %399 : vector<2x32xf32>
    %401 = math.tanh %400 : vector<2x32xf32>
    %402 = arith.mulf %374, %401 : vector<2x32xf32>
    %403 = vector.broadcast %390 : vector<2x1xf32> to vector<2x32xf32>
    %404 = arith.mulf %403, %338 : vector<2x32xf32>
    %cst_142 = arith.constant dense<0.000000e+00> : vector<2x128xf32>
    %405 = tpu.matmul %402, %55, %cst_142 {dimension_numbers = #tpu.dot_dimension_numbers<[1], [0], [0], [1], [0, 0, 1, 1], [], []>} : vector<2x32xf32>, vector<32x128xf32>, vector<2x128xf32> -> vector<2x128xf32>
    %406 = arith.addf %62, %405 : vector<2x128xf32>
    %cst_143 = arith.constant dense<0.000000e+00> : vector<2x128xf32>
    %407 = tpu.matmul %404, %56, %cst_143 {dimension_numbers = #tpu.dot_dimension_numbers<[1], [0], [0], [1], [0, 0, 1, 1], [], []>} : vector<2x32xf32>, vector<32x128xf32>, vector<2x128xf32> -> vector<2x128xf32>
    %408 = arith.addf %406, %407 : vector<2x128xf32>
    %409 = vector.broadcast %58 : vector<1x32xf32> to vector<2x32xf32>
    %410 = arith.mulf %402, %409 : vector<2x32xf32>
    %cst_144 = arith.constant dense<0.000000e+00> : vector<2xf32>
    %411 = vector.multi_reduction <add>, %410, %cst_144 [1] : vector<2x32xf32> to vector<2xf32>
    %412 = vector.shape_cast %411 : vector<2xf32> to vector<2x1xf32>
    %413 = vector.broadcast %63 : vector<1x1xf32> to vector<2x1xf32>
    %414 = arith.addf %413, %412 : vector<2x1xf32>
    %415 = vector.broadcast %59 : vector<1x32xf32> to vector<2x32xf32>
    %416 = arith.mulf %404, %415 : vector<2x32xf32>
    %cst_145 = arith.constant dense<0.000000e+00> : vector<2xf32>
    %417 = vector.multi_reduction <add>, %416, %cst_145 [1] : vector<2x32xf32> to vector<2xf32>
    %418 = vector.shape_cast %417 : vector<2xf32> to vector<2x1xf32>
    %419 = arith.addf %414, %418 : vector<2x1xf32>
    %420 = vector.extract_strided_slice %408 {offsets = [0, 0], sizes = [2, 96], strides = [1, 1]} : vector<2x128xf32> to vector<2x96xf32>
    %421 = arith.negf %420 : vector<2x96xf32>
    %422 = math.exp %421 : vector<2x96xf32>
    %cst_146 = arith.constant 1.000000e+00 : f32
    %423 = vector.broadcast %cst_146 : f32 to vector<2x96xf32>
    %424 = arith.addf %423, %422 : vector<2x96xf32>
    %425 = arith.divf %423, %424 : vector<2x96xf32>
    %426 = vector.extract_strided_slice %425 {offsets = [0, 0], sizes = [2, 32], strides = [1, 1]} : vector<2x96xf32> to vector<2x32xf32>
    %427 = vector.extract_strided_slice %425 {offsets = [0, 32], sizes = [2, 32], strides = [1, 1]} : vector<2x96xf32> to vector<2x32xf32>
    %428 = vector.extract_strided_slice %425 {offsets = [0, 64], sizes = [2, 32], strides = [1, 1]} : vector<2x96xf32> to vector<2x32xf32>
    %429 = vector.extract_strided_slice %408 {offsets = [0, 96], sizes = [2, 32], strides = [1, 1]} : vector<2x128xf32> to vector<2x32xf32>
    %430 = math.tanh %429 : vector<2x32xf32>
    %cst_147 = arith.constant 1.000000e+00 : f32
    %431 = vector.broadcast %cst_147 : f32 to vector<2x1xf32>
    %432 = arith.mulf %419, %431 : vector<2x1xf32>
    %cst_148 = arith.constant 1.000000e+00 : f32
    %433 = vector.broadcast %cst_148 : f32 to vector<2x1xf32>
    %434 = arith.addf %432, %433 : vector<2x1xf32>
    %cst_149 = arith.constant 5.000000e-01 : f32
    %435 = vector.broadcast %cst_149 : f32 to vector<2x1xf32>
    %436 = arith.mulf %434, %435 : vector<2x1xf32>
    %cst_150 = arith.constant 0.000000e+00 : f32
    %cst_151 = arith.constant 1.000000e+00 : f32
    %437 = vector.broadcast %cst_150 : f32 to vector<2x1xf32>
    %438 = arith.maximumf %437, %436 : vector<2x1xf32>
    %439 = vector.broadcast %cst_151 : f32 to vector<2x1xf32>
    %440 = arith.minimumf %439, %438 : vector<2x1xf32>
    %cst_152 = arith.constant 5.000000e-01 : f32
    %441 = vector.broadcast %cst_152 : f32 to vector<2x1xf32>
    %442 = arith.cmpf ogt, %440, %441 : vector<2x1xf32>
    %443 = arith.extui %442 : vector<2x1xi1> to vector<2x1xi32>
    %444 = arith.sitofp %443 : vector<2x1xi32> to vector<2x1xf32>
    %445 = arith.mulf %427, %430 : vector<2x32xf32>
    %cst_153 = arith.constant 1.000000e+00 : f32
    %446 = vector.broadcast %cst_153 : f32 to vector<2x1xf32>
    %447 = arith.subf %446, %307 : vector<2x1xf32>
    %448 = vector.broadcast %307 : vector<2x1xf32> to vector<2x32xf32>
    %449 = arith.mulf %448, %445 : vector<2x32xf32>
    %cst_154 = arith.constant 1.000000e+00 : f32
    %450 = vector.broadcast %cst_154 : f32 to vector<2x1xf32>
    %451 = arith.subf %450, %390 : vector<2x1xf32>
    %452 = arith.mulf %447, %451 : vector<2x1xf32>
    %453 = vector.broadcast %452 : vector<2x1xf32> to vector<2x32xf32>
    %454 = arith.mulf %453, %324 : vector<2x32xf32>
    %455 = arith.addf %449, %454 : vector<2x32xf32>
    %456 = arith.mulf %447, %390 : vector<2x1xf32>
    %457 = arith.mulf %426, %324 : vector<2x32xf32>
    %458 = arith.addf %457, %445 : vector<2x32xf32>
    %459 = vector.broadcast %456 : vector<2x1xf32> to vector<2x32xf32>
    %460 = arith.mulf %459, %458 : vector<2x32xf32>
    %461 = arith.addf %455, %460 : vector<2x32xf32>
    %462 = math.tanh %461 : vector<2x32xf32>
    %463 = arith.mulf %428, %462 : vector<2x32xf32>
    %464 = vector.broadcast %307 : vector<2x1xf32> to vector<2x32xf32>
    %465 = arith.mulf %464, %463 : vector<2x32xf32>
    %cst_155 = arith.constant 1.000000e+00 : f32
    %466 = vector.broadcast %cst_155 : f32 to vector<2x1xf32>
    %467 = arith.subf %466, %390 : vector<2x1xf32>
    %468 = arith.mulf %447, %467 : vector<2x1xf32>
    %469 = vector.broadcast %468 : vector<2x1xf32> to vector<2x32xf32>
    %470 = arith.mulf %469, %338 : vector<2x32xf32>
    %471 = arith.addf %465, %470 : vector<2x32xf32>
    %472 = arith.mulf %447, %390 : vector<2x1xf32>
    %473 = vector.broadcast %472 : vector<2x1xf32> to vector<2x32xf32>
    %474 = arith.mulf %473, %463 : vector<2x32xf32>
    %475 = arith.addf %471, %474 : vector<2x32xf32>
    %476 = tpu.concatenate %402, %475, %390, %444 in 1 : vector<2x32xf32>, vector<2x32xf32>, vector<2x1xf32>, vector<2x1xf32> -> vector<2x66xf32>
    %477 = arith.index_cast %c2_i32 : i32 to index
    %c0_156 = arith.constant 0 : index
    %c0_157 = arith.constant 0 : index
    %478 = vector.load %arg14[%477, %c0_156, %c0_157] : memref<4x2x66xf32, #tpu.memory_space<vmem>>, vector<1x2x66xf32>
    %479 = vector.shape_cast %478 : vector<1x2x66xf32> to vector<2x66xf32>
    %480 = vector.shape_cast %476 : vector<2x66xf32> to vector<1x2x66xf32>
    tpu.vector_store %arg14[%477, %c0_156, %c0_157], %480 {strides = array<i32>} : memref<4x2x66xf32, #tpu.memory_space<vmem>>, vector<1x2x66xf32>,
    %c3_i32 = arith.constant 3 : i32
    %481 = vector.broadcast %390 : vector<2x1xf32> to vector<2x32xf32>
    %482 = arith.mulf %481, %475 : vector<2x32xf32>
    %483 = arith.index_cast %c3_i32 : i32 to index
    %c0_158 = arith.constant 0 : index
    %c0_159 = arith.constant 0 : index
    %484 = vector.load %arg21[%483, %c0_158, %c0_159] : memref<4x2x128xf32, #tpu.memory_space<vmem>>, vector<1x2x128xf32>
    %485 = vector.shape_cast %484 : vector<1x2x128xf32> to vector<2x128xf32>
    %cst_160 = arith.constant dense<0.000000e+00> : vector<2x128xf32>
    %486 = tpu.matmul %402, %50, %cst_160 {dimension_numbers = #tpu.dot_dimension_numbers<[1], [0], [0], [1], [0, 0, 1, 1], [], []>} : vector<2x32xf32>, vector<32x128xf32>, vector<2x128xf32> -> vector<2x128xf32>
    %487 = arith.addf %485, %486 : vector<2x128xf32>
    %cst_161 = arith.constant dense<0.000000e+00> : vector<2x128xf32>
    %488 = tpu.matmul %482, %51, %cst_161 {dimension_numbers = #tpu.dot_dimension_numbers<[1], [0], [0], [1], [0, 0, 1, 1], [], []>} : vector<2x32xf32>, vector<32x128xf32>, vector<2x128xf32> -> vector<2x128xf32>
    %489 = arith.addf %487, %488 : vector<2x128xf32>
    %490 = arith.index_cast %c3_i32 : i32 to index
    %c0_162 = arith.constant 0 : index
    %c0_163 = arith.constant 0 : index
    %491 = vector.load %arg22[%490, %c0_162, %c0_163] : memref<4x2x1xf32, #tpu.memory_space<vmem>>, vector<1x2x1xf32>
    %492 = vector.shape_cast %491 : vector<1x2x1xf32> to vector<2x1xf32>
    %493 = vector.broadcast %53 : vector<1x32xf32> to vector<2x32xf32>
    %494 = arith.mulf %402, %493 : vector<2x32xf32>
    %cst_164 = arith.constant dense<0.000000e+00> : vector<2xf32>
    %495 = vector.multi_reduction <add>, %494, %cst_164 [1] : vector<2x32xf32> to vector<2xf32>
    %496 = vector.shape_cast %495 : vector<2xf32> to vector<2x1xf32>
    %497 = arith.addf %492, %496 : vector<2x1xf32>
    %498 = vector.broadcast %54 : vector<1x32xf32> to vector<2x32xf32>
    %499 = arith.mulf %482, %498 : vector<2x32xf32>
    %cst_165 = arith.constant dense<0.000000e+00> : vector<2xf32>
    %500 = vector.multi_reduction <add>, %499, %cst_165 [1] : vector<2x32xf32> to vector<2xf32>
    %501 = vector.shape_cast %500 : vector<2xf32> to vector<2x1xf32>
    %502 = arith.addf %497, %501 : vector<2x1xf32>
    %503 = vector.extract_strided_slice %489 {offsets = [0, 0], sizes = [2, 96], strides = [1, 1]} : vector<2x128xf32> to vector<2x96xf32>
    %504 = arith.negf %503 : vector<2x96xf32>
    %505 = math.exp %504 : vector<2x96xf32>
    %cst_166 = arith.constant 1.000000e+00 : f32
    %506 = vector.broadcast %cst_166 : f32 to vector<2x96xf32>
    %507 = arith.addf %506, %505 : vector<2x96xf32>
    %508 = arith.divf %506, %507 : vector<2x96xf32>
    %509 = vector.extract_strided_slice %508 {offsets = [0, 0], sizes = [2, 32], strides = [1, 1]} : vector<2x96xf32> to vector<2x32xf32>
    %510 = vector.extract_strided_slice %508 {offsets = [0, 32], sizes = [2, 32], strides = [1, 1]} : vector<2x96xf32> to vector<2x32xf32>
    %511 = vector.extract_strided_slice %508 {offsets = [0, 64], sizes = [2, 32], strides = [1, 1]} : vector<2x96xf32> to vector<2x32xf32>
    %512 = vector.extract_strided_slice %489 {offsets = [0, 96], sizes = [2, 32], strides = [1, 1]} : vector<2x128xf32> to vector<2x32xf32>
    %513 = math.tanh %512 : vector<2x32xf32>
    %cst_167 = arith.constant 1.000000e+00 : f32
    %514 = vector.broadcast %cst_167 : f32 to vector<2x1xf32>
    %515 = arith.mulf %502, %514 : vector<2x1xf32>
    %cst_168 = arith.constant 1.000000e+00 : f32
    %516 = vector.broadcast %cst_168 : f32 to vector<2x1xf32>
    %517 = arith.addf %515, %516 : vector<2x1xf32>
    %cst_169 = arith.constant 5.000000e-01 : f32
    %518 = vector.broadcast %cst_169 : f32 to vector<2x1xf32>
    %519 = arith.mulf %517, %518 : vector<2x1xf32>
    %cst_170 = arith.constant 0.000000e+00 : f32
    %cst_171 = arith.constant 1.000000e+00 : f32
    %520 = vector.broadcast %cst_170 : f32 to vector<2x1xf32>
    %521 = arith.maximumf %520, %519 : vector<2x1xf32>
    %522 = vector.broadcast %cst_171 : f32 to vector<2x1xf32>
    %523 = arith.minimumf %522, %521 : vector<2x1xf32>
    %cst_172 = arith.constant 5.000000e-01 : f32
    %524 = vector.broadcast %cst_172 : f32 to vector<2x1xf32>
    %525 = arith.cmpf ogt, %523, %524 : vector<2x1xf32>
    %526 = arith.extui %525 : vector<2x1xi1> to vector<2x1xi32>
    %527 = arith.sitofp %526 : vector<2x1xi32> to vector<2x1xf32>
    %528 = arith.mulf %510, %513 : vector<2x32xf32>
    %529 = vector.broadcast %390 : vector<2x1xf32> to vector<2x32xf32>
    %530 = arith.mulf %529, %528 : vector<2x32xf32>
    %cst_173 = arith.constant 1.000000e+00 : f32
    %531 = vector.broadcast %cst_173 : f32 to vector<2x1xf32>
    %532 = arith.subf %531, %390 : vector<2x1xf32>
    %533 = arith.mulf %509, %400 : vector<2x32xf32>
    %534 = arith.addf %533, %528 : vector<2x32xf32>
    %535 = vector.broadcast %532 : vector<2x1xf32> to vector<2x32xf32>
    %536 = arith.mulf %535, %534 : vector<2x32xf32>
    %537 = arith.addf %530, %536 : vector<2x32xf32>
    %538 = math.tanh %537 : vector<2x32xf32>
    %539 = arith.mulf %511, %538 : vector<2x32xf32>
    %540 = vector.broadcast %527 : vector<2x1xf32> to vector<2x32xf32>
    %541 = arith.mulf %540, %475 : vector<2x32xf32>
    %cst_174 = arith.constant dense<0.000000e+00> : vector<2x128xf32>
    %542 = tpu.matmul %539, %55, %cst_174 {dimension_numbers = #tpu.dot_dimension_numbers<[1], [0], [0], [1], [0, 0, 1, 1], [], []>} : vector<2x32xf32>, vector<32x128xf32>, vector<2x128xf32> -> vector<2x128xf32>
    %543 = arith.addf %62, %542 : vector<2x128xf32>
    %cst_175 = arith.constant dense<0.000000e+00> : vector<2x128xf32>
    %544 = tpu.matmul %541, %56, %cst_175 {dimension_numbers = #tpu.dot_dimension_numbers<[1], [0], [0], [1], [0, 0, 1, 1], [], []>} : vector<2x32xf32>, vector<32x128xf32>, vector<2x128xf32> -> vector<2x128xf32>
    %545 = arith.addf %543, %544 : vector<2x128xf32>
    %546 = vector.broadcast %58 : vector<1x32xf32> to vector<2x32xf32>
    %547 = arith.mulf %539, %546 : vector<2x32xf32>
    %cst_176 = arith.constant dense<0.000000e+00> : vector<2xf32>
    %548 = vector.multi_reduction <add>, %547, %cst_176 [1] : vector<2x32xf32> to vector<2xf32>
    %549 = vector.shape_cast %548 : vector<2xf32> to vector<2x1xf32>
    %550 = vector.broadcast %63 : vector<1x1xf32> to vector<2x1xf32>
    %551 = arith.addf %550, %549 : vector<2x1xf32>
    %552 = vector.broadcast %59 : vector<1x32xf32> to vector<2x32xf32>
    %553 = arith.mulf %541, %552 : vector<2x32xf32>
    %cst_177 = arith.constant dense<0.000000e+00> : vector<2xf32>
    %554 = vector.multi_reduction <add>, %553, %cst_177 [1] : vector<2x32xf32> to vector<2xf32>
    %555 = vector.shape_cast %554 : vector<2xf32> to vector<2x1xf32>
    %556 = arith.addf %551, %555 : vector<2x1xf32>
    %557 = vector.extract_strided_slice %545 {offsets = [0, 0], sizes = [2, 96], strides = [1, 1]} : vector<2x128xf32> to vector<2x96xf32>
    %558 = arith.negf %557 : vector<2x96xf32>
    %559 = math.exp %558 : vector<2x96xf32>
    %cst_178 = arith.constant 1.000000e+00 : f32
    %560 = vector.broadcast %cst_178 : f32 to vector<2x96xf32>
    %561 = arith.addf %560, %559 : vector<2x96xf32>
    %562 = arith.divf %560, %561 : vector<2x96xf32>
    %563 = vector.extract_strided_slice %562 {offsets = [0, 0], sizes = [2, 32], strides = [1, 1]} : vector<2x96xf32> to vector<2x32xf32>
    %564 = vector.extract_strided_slice %562 {offsets = [0, 32], sizes = [2, 32], strides = [1, 1]} : vector<2x96xf32> to vector<2x32xf32>
    %565 = vector.extract_strided_slice %562 {offsets = [0, 64], sizes = [2, 32], strides = [1, 1]} : vector<2x96xf32> to vector<2x32xf32>
    %566 = vector.extract_strided_slice %545 {offsets = [0, 96], sizes = [2, 32], strides = [1, 1]} : vector<2x128xf32> to vector<2x32xf32>
    %567 = math.tanh %566 : vector<2x32xf32>
    %cst_179 = arith.constant 1.000000e+00 : f32
    %568 = vector.broadcast %cst_179 : f32 to vector<2x1xf32>
    %569 = arith.mulf %556, %568 : vector<2x1xf32>
    %cst_180 = arith.constant 1.000000e+00 : f32
    %570 = vector.broadcast %cst_180 : f32 to vector<2x1xf32>
    %571 = arith.addf %569, %570 : vector<2x1xf32>
    %cst_181 = arith.constant 5.000000e-01 : f32
    %572 = vector.broadcast %cst_181 : f32 to vector<2x1xf32>
    %573 = arith.mulf %571, %572 : vector<2x1xf32>
    %cst_182 = arith.constant 0.000000e+00 : f32
    %cst_183 = arith.constant 1.000000e+00 : f32
    %574 = vector.broadcast %cst_182 : f32 to vector<2x1xf32>
    %575 = arith.maximumf %574, %573 : vector<2x1xf32>
    %576 = vector.broadcast %cst_183 : f32 to vector<2x1xf32>
    %577 = arith.minimumf %576, %575 : vector<2x1xf32>
    %cst_184 = arith.constant 5.000000e-01 : f32
    %578 = vector.broadcast %cst_184 : f32 to vector<2x1xf32>
    %579 = arith.cmpf ogt, %577, %578 : vector<2x1xf32>
    %580 = arith.extui %579 : vector<2x1xi1> to vector<2x1xi32>
    %581 = arith.sitofp %580 : vector<2x1xi32> to vector<2x1xf32>
    %582 = arith.mulf %564, %567 : vector<2x32xf32>
    %cst_185 = arith.constant 1.000000e+00 : f32
    %583 = vector.broadcast %cst_185 : f32 to vector<2x1xf32>
    %584 = arith.subf %583, %444 : vector<2x1xf32>
    %585 = vector.broadcast %444 : vector<2x1xf32> to vector<2x32xf32>
    %586 = arith.mulf %585, %582 : vector<2x32xf32>
    %cst_186 = arith.constant 1.000000e+00 : f32
    %587 = vector.broadcast %cst_186 : f32 to vector<2x1xf32>
    %588 = arith.subf %587, %527 : vector<2x1xf32>
    %589 = arith.mulf %584, %588 : vector<2x1xf32>
    %590 = vector.broadcast %589 : vector<2x1xf32> to vector<2x32xf32>
    %591 = arith.mulf %590, %461 : vector<2x32xf32>
    %592 = arith.addf %586, %591 : vector<2x32xf32>
    %593 = arith.mulf %584, %527 : vector<2x1xf32>
    %594 = arith.mulf %563, %461 : vector<2x32xf32>
    %595 = arith.addf %594, %582 : vector<2x32xf32>
    %596 = vector.broadcast %593 : vector<2x1xf32> to vector<2x32xf32>
    %597 = arith.mulf %596, %595 : vector<2x32xf32>
    %598 = arith.addf %592, %597 : vector<2x32xf32>
    %599 = math.tanh %598 : vector<2x32xf32>
    %600 = arith.mulf %565, %599 : vector<2x32xf32>
    %601 = vector.broadcast %444 : vector<2x1xf32> to vector<2x32xf32>
    %602 = arith.mulf %601, %600 : vector<2x32xf32>
    %cst_187 = arith.constant 1.000000e+00 : f32
    %603 = vector.broadcast %cst_187 : f32 to vector<2x1xf32>
    %604 = arith.subf %603, %527 : vector<2x1xf32>
    %605 = arith.mulf %584, %604 : vector<2x1xf32>
    %606 = vector.broadcast %605 : vector<2x1xf32> to vector<2x32xf32>
    %607 = arith.mulf %606, %475 : vector<2x32xf32>
    %608 = arith.addf %602, %607 : vector<2x32xf32>
    %609 = arith.mulf %584, %527 : vector<2x1xf32>
    %610 = vector.broadcast %609 : vector<2x1xf32> to vector<2x32xf32>
    %611 = arith.mulf %610, %600 : vector<2x32xf32>
    %612 = arith.addf %608, %611 : vector<2x32xf32>
    %613 = tpu.concatenate %539, %612, %527, %581 in 1 : vector<2x32xf32>, vector<2x32xf32>, vector<2x1xf32>, vector<2x1xf32> -> vector<2x66xf32>
    %614 = arith.index_cast %c3_i32 : i32 to index
    %c0_188 = arith.constant 0 : index
    %c0_189 = arith.constant 0 : index
    %615 = vector.load %arg14[%614, %c0_188, %c0_189] : memref<4x2x66xf32, #tpu.memory_space<vmem>>, vector<1x2x66xf32>
    %616 = vector.shape_cast %615 : vector<1x2x66xf32> to vector<2x66xf32>
    %617 = vector.shape_cast %613 : vector<2x66xf32> to vector<1x2x66xf32>
    tpu.vector_store %arg14[%614, %c0_188, %c0_189], %617 {strides = array<i32>} : memref<4x2x66xf32, #tpu.memory_space<vmem>>, vector<1x2x66xf32>,
    %c4_i32 = arith.constant 4 : i32
    %c0_190 = arith.constant 0 : index
    %c0_191 = arith.constant 0 : index
    %618 = vector.load %arg23[%c0_190, %c0_191] : memref<2x32xf32, #tpu.memory_space<vmem>>, vector<2x32xf32>
    tpu.vector_store %arg23[%c0_190, %c0_191], %539 {strides = array<i32>} : memref<2x32xf32, #tpu.memory_space<vmem>>, vector<2x32xf32>,
    %c0_192 = arith.constant 0 : index
    %c0_193 = arith.constant 0 : index
    %619 = vector.load %arg24[%c0_192, %c0_193] : memref<2x32xf32, #tpu.memory_space<vmem>>, vector<2x32xf32>
    tpu.vector_store %arg24[%c0_192, %c0_193], %537 {strides = array<i32>} : memref<2x32xf32, #tpu.memory_space<vmem>>, vector<2x32xf32>,
    %c0_194 = arith.constant 0 : index
    %c0_195 = arith.constant 0 : index
    %620 = vector.load %arg25[%c0_194, %c0_195] : memref<2x1xf32, #tpu.memory_space<vmem>>, vector<2x1xf32>
    tpu.vector_store %arg25[%c0_194, %c0_195], %527 {strides = array<i32>} : memref<2x1xf32, #tpu.memory_space<vmem>>, vector<2x1xf32>,
    %c0_196 = arith.constant 0 : index
    %c0_197 = arith.constant 0 : index
    %621 = vector.load %arg26[%c0_196, %c0_197] : memref<2x32xf32, #tpu.memory_space<vmem>>, vector<2x32xf32>
    tpu.vector_store %arg26[%c0_196, %c0_197], %612 {strides = array<i32>} : memref<2x32xf32, #tpu.memory_space<vmem>>, vector<2x32xf32>,
    %c0_198 = arith.constant 0 : index
    %c0_199 = arith.constant 0 : index
    %622 = vector.load %arg27[%c0_198, %c0_199] : memref<2x32xf32, #tpu.memory_space<vmem>>, vector<2x32xf32>
    tpu.vector_store %arg27[%c0_198, %c0_199], %598 {strides = array<i32>} : memref<2x32xf32, #tpu.memory_space<vmem>>, vector<2x32xf32>,
    %c0_200 = arith.constant 0 : index
    %c0_201 = arith.constant 0 : index
    %623 = vector.load %arg28[%c0_200, %c0_201] : memref<2x1xf32, #tpu.memory_space<vmem>>, vector<2x1xf32>
    tpu.vector_store %arg28[%c0_200, %c0_201], %581 {strides = array<i32>} : memref<2x1xf32, #tpu.memory_space<vmem>>, vector<2x1xf32>,
    %c0_202 = arith.constant 0 : index
    %c0_203 = arith.constant 0 : index
    %624 = vector.load %arg15[%c0_202, %c0_203] : memref<2x32xf32, #tpu.memory_space<vmem>>, vector<2x32xf32>
    tpu.vector_store %arg15[%c0_202, %c0_203], %539 {strides = array<i32>} : memref<2x32xf32, #tpu.memory_space<vmem>>, vector<2x32xf32>,
    %c0_204 = arith.constant 0 : index
    %c0_205 = arith.constant 0 : index
    %625 = vector.load %arg16[%c0_204, %c0_205] : memref<2x32xf32, #tpu.memory_space<vmem>>, vector<2x32xf32>
    tpu.vector_store %arg16[%c0_204, %c0_205], %537 {strides = array<i32>} : memref<2x32xf32, #tpu.memory_space<vmem>>, vector<2x32xf32>,
    %c0_206 = arith.constant 0 : index
    %c0_207 = arith.constant 0 : index
    %626 = vector.load %arg17[%c0_206, %c0_207] : memref<2x1xf32, #tpu.memory_space<vmem>>, vector<2x1xf32>
    tpu.vector_store %arg17[%c0_206, %c0_207], %527 {strides = array<i32>} : memref<2x1xf32, #tpu.memory_space<vmem>>, vector<2x1xf32>,
    %c0_208 = arith.constant 0 : index
    %c0_209 = arith.constant 0 : index
    %627 = vector.load %arg18[%c0_208, %c0_209] : memref<2x32xf32, #tpu.memory_space<vmem>>, vector<2x32xf32>
    tpu.vector_store %arg18[%c0_208, %c0_209], %612 {strides = array<i32>} : memref<2x32xf32, #tpu.memory_space<vmem>>, vector<2x32xf32>,
    %c0_210 = arith.constant 0 : index
    %c0_211 = arith.constant 0 : index
    %628 = vector.load %arg19[%c0_210, %c0_211] : memref<2x32xf32, #tpu.memory_space<vmem>>, vector<2x32xf32>
    tpu.vector_store %arg19[%c0_210, %c0_211], %598 {strides = array<i32>} : memref<2x32xf32, #tpu.memory_space<vmem>>, vector<2x32xf32>,
    %c0_212 = arith.constant 0 : index
    %c0_213 = arith.constant 0 : index
    %629 = vector.load %arg20[%c0_212, %c0_213] : memref<2x1xf32, #tpu.memory_space<vmem>>, vector<2x1xf32>
    tpu.vector_store %arg20[%c0_212, %c0_213], %581 {strides = array<i32>} : memref<2x1xf32, #tpu.memory_space<vmem>>, vector<2x1xf32>,
    return
  }
  func.func @transform_0(%arg0: i32) -> (i32, i32, i32) {
    %c0_i32 = arith.constant 0 : i32
    %c0_i32_0 = arith.constant 0 : i32
    %c0_i32_1 = arith.constant 0 : i32
    return %arg0, %c0_i32, %c0_i32_0 : i32, i32, i32
  }
  func.func @transform_1(%arg0: i32) -> (i32, i32) {
    %c0_i32 = arith.constant 0 : i32
    %c0_i32_0 = arith.constant 0 : i32
    %c0_i32_1 = arith.constant 0 : i32
    return %c0_i32, %c0_i32_0 : i32, i32
  }
  func.func @transform_2(%arg0: i32) -> (i32, i32) {
    %c0_i32 = arith.constant 0 : i32
    %c0_i32_0 = arith.constant 0 : i32
    %c0_i32_1 = arith.constant 0 : i32
    return %c0_i32, %c0_i32_0 : i32, i32
  }
  func.func @transform_3(%arg0: i32) -> (i32, i32) {
    %c0_i32 = arith.constant 0 : i32
    %c0_i32_0 = arith.constant 0 : i32
    %c0_i32_1 = arith.constant 0 : i32
    return %c0_i32, %c0_i32_0 : i32, i32
  }
  func.func @transform_4(%arg0: i32) -> (i32, i32) {
    %c0_i32 = arith.constant 0 : i32
    %c0_i32_0 = arith.constant 0 : i32
    %c0_i32_1 = arith.constant 0 : i32
    return %c0_i32, %c0_i32_0 : i32, i32
  }
  func.func @transform_5(%arg0: i32) -> (i32, i32) {
    %c0_i32 = arith.constant 0 : i32
    %c0_i32_0 = arith.constant 0 : i32
    %c0_i32_1 = arith.constant 0 : i32
    return %c0_i32, %c0_i32_0 : i32, i32
  }
  func.func @transform_6(%arg0: i32) -> (i32, i32) {
    %c0_i32 = arith.constant 0 : i32
    %c0_i32_0 = arith.constant 0 : i32
    %c0_i32_1 = arith.constant 0 : i32
    return %c0_i32, %c0_i32_0 : i32, i32
  }
  func.func @transform_7(%arg0: i32) -> (i32, i32) {
    %c0_i32 = arith.constant 0 : i32
    %c0_i32_0 = arith.constant 0 : i32
    %c0_i32_1 = arith.constant 0 : i32
    return %c0_i32, %c0_i32_0 : i32, i32
  }
  func.func @transform_8(%arg0: i32) -> (i32, i32) {
    %c0_i32 = arith.constant 0 : i32
    %c0_i32_0 = arith.constant 0 : i32
    %c0_i32_1 = arith.constant 0 : i32
    return %c0_i32, %c0_i32_0 : i32, i32
  }
  func.func @transform_9(%arg0: i32) -> (i32, i32) {
    %c0_i32 = arith.constant 0 : i32
    %c0_i32_0 = arith.constant 0 : i32
    %c0_i32_1 = arith.constant 0 : i32
    return %c0_i32, %c0_i32_0 : i32, i32
  }
  func.func @transform_10(%arg0: i32) -> (i32, i32) {
    %c0_i32 = arith.constant 0 : i32
    %c0_i32_0 = arith.constant 0 : i32
    %c0_i32_1 = arith.constant 0 : i32
    return %c0_i32, %c0_i32_0 : i32, i32
  }
  func.func @transform_11(%arg0: i32) -> (i32, i32) {
    %c0_i32 = arith.constant 0 : i32
    %c0_i32_0 = arith.constant 0 : i32
    %c0_i32_1 = arith.constant 0 : i32
    return %c0_i32, %c0_i32_0 : i32, i32
  }
  func.func @transform_12(%arg0: i32) -> (i32, i32) {
    %c0_i32 = arith.constant 0 : i32
    %c0_i32_0 = arith.constant 0 : i32
    %c0_i32_1 = arith.constant 0 : i32
    return %c0_i32, %c0_i32_0 : i32, i32
  }
  func.func @transform_13(%arg0: i32) -> (i32, i32, i32) {
    %c0_i32 = arith.constant 0 : i32
    %c0_i32_0 = arith.constant 0 : i32
    %c0_i32_1 = arith.constant 0 : i32
    return %arg0, %c0_i32, %c0_i32_0 : i32, i32, i32
  }
  func.func @transform_14(%arg0: i32) -> (i32, i32) {
    %c0_i32 = arith.constant 0 : i32
    %c0_i32_0 = arith.constant 0 : i32
    %c0_i32_1 = arith.constant 0 : i32
    return %c0_i32, %c0_i32_0 : i32, i32
  }
  func.func @transform_15(%arg0: i32) -> (i32, i32) {
    %c0_i32 = arith.constant 0 : i32
    %c0_i32_0 = arith.constant 0 : i32
    %c0_i32_1 = arith.constant 0 : i32
    return %c0_i32, %c0_i32_0 : i32, i32
  }
  func.func @transform_16(%arg0: i32) -> (i32, i32) {
    %c0_i32 = arith.constant 0 : i32
    %c0_i32_0 = arith.constant 0 : i32
    %c0_i32_1 = arith.constant 0 : i32
    return %c0_i32, %c0_i32_0 : i32, i32
  }
  func.func @transform_17(%arg0: i32) -> (i32, i32) {
    %c0_i32 = arith.constant 0 : i32
    %c0_i32_0 = arith.constant 0 : i32
    %c0_i32_1 = arith.constant 0 : i32
    return %c0_i32, %c0_i32_0 : i32, i32
  }
  func.func @transform_18(%arg0: i32) -> (i32, i32) {
    %c0_i32 = arith.constant 0 : i32
    %c0_i32_0 = arith.constant 0 : i32
    %c0_i32_1 = arith.constant 0 : i32
    return %c0_i32, %c0_i32_0 : i32, i32
  }
  func.func @transform_19(%arg0: i32) -> (i32, i32) {
    %c0_i32 = arith.constant 0 : i32
    %c0_i32_0 = arith.constant 0 : i32
    %c0_i32_1 = arith.constant 0 : i32
    return %c0_i32, %c0_i32_0 : i32, i32
  }
}

</mosaic_0001>

<bundles_post_ra>
// kernel: tpu_custom_call.1
= control target key start
LH: loop header
LB: loop body
LE: loop exit
PB: predicated region body
PF: predicated region fallthrough
CT: control target
= control target key end

     0   :  { %s3800_s0 = inlined_call_operand.hbm [shape: f32[2,8,16], index: 0, kind: input, shape index: {}]   ;;  %s3801_s1 = inlined_call_operand.hbm [shape: f32[16,128], index: 1, kind: input, shape index: {}]   ;;  %s3802_s2 = inlined_call_operand.vmem [shape: f32[1,16], index: 2, kind: input, shape index: {}]   ;;  %s3803_s3 = inlined_call_operand.vmem [shape: f32[1,128], index: 3, kind: input, shape index: {}]   ;;  %s3804_s4 = inlined_call_operand.<no memory space> [shape: f32[1,1], index: 4, kind: input, shape index: {}]   ;;  %s3805_s5 = inlined_call_operand.hbm [shape: f32[32,128], index: 5, kind: input, shape index: {}]   ;;  %s3806_s6 = inlined_call_operand.hbm [shape: f32[32,128], index: 6, kind: input, shape index: {}]   ;;  %s3807_s7 = inlined_call_operand.vmem [shape: f32[1,64], index: 7, kind: input, shape index: {}]   ;;  %s3808_s8 = inlined_call_operand.hbm [shape: f32[32,128], index: 8, kind: input, shape index: {}]   ;;  %s3809_s9 = inlined_call_operand.hbm [shape: f32[32,128], index: 9, kind: input, shape index: {}]   ;;  %s3810_s10 = inlined_call_operand.vmem [shape: f32[1,64], index: 10, kind: input, shape index: {}]   ;;  %s3811_s11 = inlined_call_operand.vmem [shape: f32[1,128], index: 11, kind: input, shape index: {}]   ;;  %s3812_s13 = inlined_call_operand.hbm [shape: f32[8,2,66], index: 13, kind: output, shape index: {0}]   ;;  %s3813_s14 = inlined_call_operand.hbm [shape: f32[2,32], index: 14, kind: output, shape index: {1}]   ;;  %s3814_s15 = inlined_call_operand.hbm [shape: f32[2,32], index: 15, kind: output, shape index: {2}]   ;;  %s3815_s16 = inlined_call_operand.vmem [shape: f32[2,1], index: 16, kind: output, shape index: {3}]   ;;  %s3816_s17 = inlined_call_operand.hbm [shape: f32[2,32], index: 17, kind: output, shape index: {4}]   ;;  %s3817_s18 = inlined_call_operand.hbm [shape: f32[2,32], index: 18, kind: output, shape index: {5}]   ;;  %s3818_s19 = inlined_call_operand.vmem [shape: f32[2,1], index: 19, kind: output, shape index: {6}]   ;;  %s3819_s12 = inlined_call_operand.<no memory space> [shape: f32[1,1], index: 12, kind: input, shape index: {}]  }
   0x1   :  { %3824 = sst [smem:[#allocation38_spill]] %s3800_s0  ;;  %v25_v0 = vstv %s3804_s4  ;;  %v27_v1 = vstv %s3819_s12 }
   0x2   :  { %3825 = sst [smem:[#allocation39_spill]] %s3801_s1  ;;  %26 = vst [vmem:[#allocation10] sm:$0x1] %v25_v0 }
   0x3   :  { %3826 = sst [smem:[#allocation40_spill]] %s3802_s2  ;;  %28 = vst [vmem:[#allocation11] sm:$0x1] %v27_v1 }
   0x4   :  { %3827 = sst [smem:[#allocation41_spill]] %s3803_s3 }
   0x5   :  { %3828 = sst [smem:[#allocation42_spill]] %s3805_s5 }
   0x6   :  { %3829 = sst [smem:[#allocation43_spill]] %s3806_s6 }
   0x7   :  { %3830 = sst [smem:[#allocation44_spill]] %s3807_s7 }
   0x8   :  { %3831 = sst [smem:[#allocation45_spill]] %s3808_s8 }
   0x9   :  { %3832 = sst [smem:[#allocation46_spill]] %s3809_s9 }
   0xa   :  { %3833 = sst [smem:[#allocation47_spill]] %s3810_s10 }
   0xb   :  { %3834 = sst [smem:[#allocation48_spill]] %s3811_s11 }
   0xc   :  { %3835 = sst [smem:[#allocation49_spill]] %s3812_s13 }
   0xd   :  { %3836 = sst [smem:[#allocation50_spill]] %s3816_s17 }
   0xe   :  { %3837 = sst [smem:[#allocation51_spill]] %s3817_s18 }
   0xf   :  { %29 = vsyncpa [#allocation13], 0 }
  0x10   :  { %31 = vsyncpa [#allocation13 + $0x1], 0 }
  0x11   :  { %32 = vsyncpa [#allocation16], 0 }
  0x12   :  { %33 = vsyncpa [#allocation19], 0 }
  0x13   :  { %34 = vsyncpa [#allocation22], 0 }
  0x14   :  { %35 = vsyncpa [#allocation14], 0 }
  0x15   :  { %37 = vsyncpa [#allocation14 + $0x1], 0 }
  0x16   :  { %38 = vsyncpa [#allocation25], 0 }
  0x17   :  { %39 = vsyncpa [#allocation28], 0  ;;  %s3089_s1 = smov 0   ;;  %s3091_s22 = smov 0  }
  0x18   :  { %s3093_s4 = smov 0   ;;  %s3095_s2 = smov 0  }
  0x19 LB: > { %s3838_s24 = sld [smem:[#allocation39_spill]]  ;;  %s3113_s3 = sadd.s32 4294967295, %s2962_s2   ;;  %s2962_s2 = sphi %s3095_s2, %s3873_s2   ;;  %s2958_s4 = sphi %s3093_s4, %s3872_s4   ;;  %s2954_s22 = sphi %s3091_s22, %s3871_s22   ;;  %s2950_s1 = sphi %s3089_s1, %s3870_s1  }
  0x1a   : > { %p2291_p0 = scmp.ge.s32.totalorder %s2962_s2, 1  ;;  %p66_p1 = scmp.eq.s32.totalorder %s3113_s3, 0 }
  0x1b   : > { %p480_p2 = scmp.lt.s32.totalorder %s2962_s2, 3  ;;  %s2964_s27 = smov [#allocation15]  }
  0x1c   : > { %s493_s28 = sshll.u32 %s2964_s27, 4  ;;  %s3840_s6 = sld [smem:[#allocation43_spill]]  ;;  %s494_s28 = int_to_ptr.vmem [resolvable:$true] %s493_s28 }
  0x1d   : > { %p3119_p4 = pnand %p2291_p0, %p480_p2  ;;  %s3842_s5 = sld [smem:[#allocation42_spill]] }
  0x1e   : > { %s2966_s18 = smov 128   ;;  %s2967_s13 = smov 8  }
  0x1f   : > { %s491_s25 = sshll.u32 %s3838_s24, 4  ;;  %p2399_p5 = pneg %p3119_p4  ;;  %s492_s25 = int_to_ptr.hbm [resolvable:$true] %s491_s25 }
  0x20   : > { %s2965_s24 = smov [#allocation18]   ;;  %s3843_s8 = sld [smem:[#allocation45_spill]] }
  0x21   : > { %p3131_p7 = pnand %p2399_p5, %p66_p1  ;;  %s530_s27 = sshll.u32 %s2965_s24, 4  ;;  %s531_s27 = int_to_ptr.vmem [resolvable:$true] %s530_s27 }
  0x22   : > { %s528_s30 = sshll.u32 %s3840_s6, 4  ;;  %s2968_s17 = smov [#allocation17]   ;;  %s529_s30 = int_to_ptr.hbm [resolvable:$true] %s528_s30 }
  0x23   : > { %s514_s23 = sshll.u32 %s3842_s5, 4  ;;  %s516_s21 = sshll.u32 %s2968_s17, 4  ;;  %s515_s23 = int_to_ptr.hbm [resolvable:$true] %s514_s23  ;;  %s517_s21 = int_to_ptr.vmem [resolvable:$true] %s516_s21 }
  0x24   : > { %2402 = dma.hbm_to_vmem [thread:$0]  (!%p3131_p7), %s492_s25, 256, %s494_s28, [#allocation16], %s2966_s18, %s2966_s18, %s2967_s13  }
  0x25   : > { %2408 = dma.hbm_to_vmem [thread:$0]  (!%p3131_p7), %s529_s30, 512, %s531_s27, [#allocation19], %s2966_s18, %s2966_s18, %s2967_s13  }
  0x26   : > { %s545_s6 = sshll.u32 %s3843_s8, 4  ;;  %s2969_s25 = smov [#allocation20]   ;;  %s546_s6 = int_to_ptr.hbm [resolvable:$true] %s545_s6 }
  0x27   : > { %2405 = dma.hbm_to_vmem [thread:$0]  (!%p3131_p7), %s515_s23, 512, %s517_s21, [#allocation16], %s2966_s18, %s2966_s18, %s2967_s13  }
  0x28   : > { %s547_s28 = sshll.u32 %s2969_s25, 4  ;;  %s3844_s9 = sld [smem:[#allocation46_spill]]  ;;  %s548_s28 = int_to_ptr.vmem [resolvable:$true] %s547_s28 }
  0x29   : > { %2411 = dma.hbm_to_vmem [thread:$0]  (!%p3131_p7), %s546_s6, 512, %s548_s28, [#allocation19], %s2966_s18, %s2966_s18, %s2967_s13  }
  0x2a   : > { %s2970_s17 = smov [#allocation21]   ;;  %s2290_s23 = sadd.s32 4294967294, %s2962_s2  }
  0x2b   : > { %s561_s27 = sshll.u32 %s2970_s17, 4  ;;  %s3156_s29 = sadd.s32 1, %s2962_s2   ;;  %s562_s27 = int_to_ptr.vmem [resolvable:$true] %s561_s27 }
  0x2c   : > { %s52_s0 = sadd.s32 1, %s2958_s4  ;;  %s49_s21 = ssub.s32 %s2962_s2, %s3156_s29 }
  0x2d   : > { %p59_p8 = scmp.ne.s32.totalorder %s2958_s4, %s2954_s22  ;;  %p50_p9 = scmp.eq.s32.totalorder %s49_s21, 0 }
  0x2e   : > { %s559_s24 = sshll.u32 %s3844_s9, 4  ;;  %p60_p10 = scmp.eq.s32.totalorder %s2962_s2, 0  ;;  %s560_s24 = int_to_ptr.hbm [resolvable:$true] %s559_s24 }
  0x2f   : > { %2414 = dma.hbm_to_vmem [thread:$0]  (!%p3131_p7), %s560_s24, 512, %s562_s27, [#allocation22], %s2966_s18, %s2966_s18, %s2967_s13  }
  0x30   : > { %p65_p11 = scmp.ne.s32.totalorder %s2954_s22, %s2950_s1  ;;  %p3822_p12 = scmp.eq.s32.totalorder %s3113_s3, 1 }
  0x31   : > { %s3168_s6 = scalar_select %p50_p9, %s2958_s4, %s52_s0  }
  0x32   : > { %p3172_p13 = por %p66_p1, %p65_p11  ;;  %p3178_p0 = por %p3822_p12, %p59_p8 }
  0x33   : > { %3845 = sst [smem:[#allocation37_spill]] %s3168_s6  ;;  %p347_p2 = scmp.eq.s32.totalorder %s2290_s23, 1 }
  0x34   : > { %p61_p5 = por %p60_p10, %p59_p8  ;;  %s584_s18 = sand.u32 1, %s2958_s4  }
  0x35   : > { %p3183_p7 = por %p347_p2, %p65_p11  ;;  %p2428_p6 = scmp.lt.s32.totalorder %s2962_s2, 2 }
  0x36   : > { %s2298_s28 = sshll.u32 %s584_s18, 3  ;;  %s2299_s30 = sshll.u32 %s2962_s2, 3 }
  0x37   : > { %s3849_s17 = sld [smem:[#allocation38_spill]]  ;;  %s588_s21 = scalar_lea.vmem [#allocation12], %s2298_s28 }
  0x38   : > { %s596_s5 = sshll.u32 %s588_s21, 4  ;;  %p3192_p9 = pnand %p2428_p6, %p61_p5  ;;  %s597_s5 = int_to_ptr.vmem [resolvable:$true] %s596_s5 }
  0x39   : > { %s585_s8 = scalar_lea.sflag [#allocation13], %s584_s18 }
  0x3a   : > { %p2738_p10 = pneg %p3192_p9 }
  0x3d   : > { %s592_s27 = scalar_lea.hbm %s3849_s17, %s2299_s30  ;;  %s2741_s28 = scalar_lea.hbm %s3849_s17, 16 }
  0x3e   : > { %s594_s0 = sshll.u32 %s592_s27, 4  ;;  %s595_s0 = int_to_ptr.hbm [resolvable:$true] %s594_s0 }
  0x3f   : > { %s2734_s9 = sshra.s32 %s595_s0, 4  ;;  %s2735_s9 = int_to_ptr.hbm [resolvable:$true] %s2734_s9 }
  0x40   : > { %s2736_s6 = scalar_lea.hbm %s2735_s9, 8  ;;  %p2742_p6 = scmp.lt.s32.totalorder %s2735_s9, %s3849_s17 }
  0x41   : > { %p2737_p8 = scmp.ne.s32.totalorder %s2735_s9, %s2736_s6  ;;  %p2743_p5 = scmp.lt.s32.totalorder %s2741_s28, %s2736_s6 }
  0x43   : > { %p2739_p11 = pnand %p2738_p10, %p2737_p8  ;;  %p2744_p12 = por %p2743_p5, %p2742_p6 }
  0x45   : > { %p2740_p2 = pneg %p2739_p11 }
  0x47   : > { %p2745_p3 = pnand %p2744_p12, %p2740_p2 }
  0x49   : > { %2748 = shalt.err (!%p2745_p3)
}
  0x4a   : > { %2418 = dma.hbm_to_vmem [thread:$0]  (!%p3192_p9), %s595_s0, 128, %s597_s5, %s585_s8  }
  0x4b   : > { %605 = sbr.rel (%p3119_p4) target bundleno = 5995 (0x176b), region = 72  ;;  %s3209_s18 = sand.u32 (!%p3119_p4), 1, %s2954_s22  }
  0x4c   : > { %s2301_s21 = sshll.u32 (!%p3119_p4), %s3209_s18, 3  ;;  %s608_s30 = scalar_lea.sflag (!%p3119_p4), [#allocation13], %s3209_s18 }
  0x4d   : > { %s3213_s12 = scalar_lea.vmem (!%p3119_p4), [#allocation12], %s2301_s21 }
  0x50   : > { %2921 = dma.done.wait (%p3172_p13), %s608_s30, 128  }
  0x51   : > { %2923 = vsyncadd (%p3172_p13), %s608_s30, 4294967168 }
  0x52   : > { %2925 = dma.done.wait (%p66_p1), [#allocation16], 768  }
  0x53   : > { %2927 = vsyncadd (%p66_p1), [#allocation16], 4294966528 }
  0x54   : > { %2929 = dma.done.wait (%p66_p1), [#allocation19], 1024  }
  0x55   : > { %2931 = vsyncadd (%p66_p1), [#allocation19], 4294966272 }
  0x56   : > { %2933 = dma.done.wait (%p66_p1), [#allocation22], 512  }
  0x57   : > { %2935 = vsyncadd (%p66_p1), [#allocation22], 4294966784  ;;  %s3231_s5 = scalar_lea.vmem [#allocation23], %s2301_s21  ;;  %p3851_p3 = scmp.ne.s32.totalorder %s3113_s3, 0 }
  0x59   : > { %696 = sbr.rel (%p3851_p3) target bundleno = 101 (0x65), region = 100 }
  0x5e   : > { %vm697_vm0 = vcmask 254976   ;;  %v2971_v2 = vmov 0.0   ;;  %vm700_vm1 = vcmask 1024  }
  0x5f   : > { %698 = vst.msk [vmem:[#allocation4] sm:$0x3] %vm697_vm0, %v2971_v2 }
  0x60   : > { %699 = vst.msk [vmem:[#allocation5] sm:$0x3] %vm697_vm0, %v2971_v2 }
  0x61   : > { %702 = vst.msk [vmem:[#allocation7] sm:$0x3] %vm697_vm0, %v2971_v2 }
  0x62   : > { %703 = vst.msk [vmem:[#allocation8] sm:$0x3] %vm697_vm0, %v2971_v2 }
  0x63   : > { %701 = vst.msk [vmem:[#allocation6] sm:$0x3] %vm700_vm1, %v2971_v2 }
  0x64   : > { %704 = vst.msk [vmem:[#allocation9] sm:$0x3] %vm700_vm1, %v2971_v2 }
  0x65 PF: > { %v2972_v4 = vmov 0   ;;  %s3852_s7 = sld [smem:[#allocation44_spill]]  ;;  %v707_v6 = vld [vmem:[#allocation15 + $0x8] sm:$0xff]  ;;  %v706_v7 = vld [vmem:[#allocation15] sm:$0xff]  ;;  %v3246_v9 = vld [vmem:[%s3213_s12] sm:$0xff]  ;;  %vm712_vm2 = vcmask 130048  }
  0x66   : > { %2494 = vset.pattern.permute.xlu0 %v2972_v4  ;;  %2495 = vset.pattern.permute.xlu1 %v2972_v4  ;;  %v3243_v8 = vld [vmem:[#allocation18 + $0x18] sm:$0xff]  ;;  %v3248_v10 = vld [vmem:[#allocation18 + $0x10] sm:$0xff]  ;;  %s2973_s26 = smov 96   ;;  %v3258_v12 = vld [vmem:[#allocation18 + $0x8] sm:$0xff]  ;;  %vm803_vm3 = vcmask 261120   ;;  %s3853_s0 = sld [smem:[#allocation41_spill]] }
  0x67   : > { %730 = vmatpush.msra.mxu0 %v707_v6  ;;  %843 = vmatpush.msra.mxu2 %v3243_v8  ;;  %v3256_v11 = vld [vmem:[#allocation17 + $0x18] sm:$0xff]  ;;  %v3262_v13 = vld [vmem:[#allocation17 + $0x10] sm:$0xff]  ;;  %v3264_v14 = vld [vmem:[#allocation18] sm:$0xff]  ;;  %s2974_s23 = smov 64   ;;  %s3854_s27 = sld [smem:[#allocation40_spill]]  ;;  %vm857_vm8 = vcmask 254976  }
  0x68   : > { %2496 = vset.pattern.permute.xlu2 %v2972_v4  ;;  %819 = vmatpush.msra.mxu1 %v3256_v11  ;;  %v3268_v15 = vld [vmem:[#allocation17 + $0x8] sm:$0xff]  ;;  %v3270_v16 = vld [vmem:[#allocation17] sm:$0xff]  ;;  %v790_v17 = vld [vmem:[#allocation4] sm:$0x3]  ;;  %s3823_s21 = smov 32   ;;  %vm750_vm9 = vcmask 1024  }
  0x69   : > { %731 = vmatpush.msra.mxu0 %v706_v7  ;;  %844 = vmatpush.msra.mxu2 %v3248_v10  ;;  %v3287_v18 = vld [vmem:[#allocation7] sm:$0x3]  ;;  %v791_v52 = vld [vmem:[#allocation5] sm:$0x3]  ;;  %v2515_v60 = vld [vmem:[#allocation10] ss:$0 sm:$0xff] }
  0x6a   : > { %v3235_v3 = vld [vmem:[#allocation6] sm:$0x3]  ;;  %2309 = vmatmul.msk.f32.vlgmr.msra.gmra.mxu0 %vm712_vm2, %v3246_v9  ;;  %820 = vmatpush.msra.mxu1 %v3262_v13  ;;  %vm755_vm10 = vcmask 3074   ;;  %vm760_vm11 = vcmask 5124   ;;  %vm765_vm12 = vcmask 7174   ;;  %s3855_s11 = sld [smem:[#allocation48_spill]] }
  0x6b   : > { %v3240_v5 = vld [vmem:[%s3852_s7] ss:$0 sm:$0xff]  ;;  %798 = vperm.xlu0 %2494, %v3235_v3   ;;  %845 = vmatpush.msra.mxu2 %v3258_v12  ;;  %v903_v45 = vsub.f32 1.0, %v3235_v3  ;;  %s3856_s10 = sld [smem:[#allocation47_spill]]  ;;  %s2978_s12 = smov [#allocation24]  }
  0x6c   : > { %862 = vrot.lane.b32.xlu2 %v3240_v5, %s2973_s26  ;;  %821 = vmatpush.msra.mxu1 %v3268_v15  ;;  %v2513_v21 = vld [vmem:[%s3853_s0] ss:$0 sm:$0xff]  ;;  %v856_v47 = vmul.f32 %v3240_v5, %v790_v17  ;;  %s2977_s0 = smov 65   ;;  %s2075_s8 = sshll.u32 %s2978_s12, 4  ;;  %s2076_s8 = int_to_ptr.vmem [resolvable:$true] %s2075_s8 }
  0x6d   : > { %846 = vmatpush.msra.mxu2 %v3264_v14  ;;  %v2514_v46 = vld [vmem:[%s3854_s27] ss:$0 sm:$0xff]  ;;  %s2077_s20 = sshll.u32 %s3813_s14, 4  ;;  %p3857_p1 = scmp.eq.s32.totalorder %s3113_s3, 1  ;;  %s2078_s20 = int_to_ptr.hbm [resolvable:$true] %s2077_s20 }
  0x6e   : > { %822 = vmatpush.msra.mxu1 %v3270_v16  ;;  %v740_v48 = vmul.f32 %v2514_v46, %v3246_v9  ;;  %v858_v49 = vsel %vm857_vm8, %v856_v47, 0.0  ;;  %s2089_s24 = sshll.u32 %s3814_s15, 4  ;;  %s2979_s27 = smov [#allocation26]   ;;  %s2090_s24 = int_to_ptr.hbm [resolvable:$true] %s2089_s24 }
  0x6f   : > { %1152 = vmatpush.msrb.mxu2 %v3243_v8  ;;  %2310 = vmatmul.msk.f32.vlgmr.msra.gmra.mxu1 %vm803_vm3, %v790_v17  ;;  %s2087_s30 = sshll.u32 %s2979_s27, 4  ;;  %p3858_p4 = pmov %p3857_p1  ;;  %s2088_s30 = int_to_ptr.vmem [resolvable:$true] %s2087_s30 }
  0x70   : > { %1126 = vmatpush.msrb.mxu1 %v3256_v11  ;;  %v741_v50 = vsel %vm712_vm2, %v740_v48, 0.0  ;;  %s2980_s12 = smov [#allocation27]   ;;  %s3859_s6 = sld [smem:[#allocation50_spill]] }
  0x71   : > { %1153 = vmatpush.msrb.mxu2 %v3248_v10  ;;  %p3860_p12 = pmov %p3857_p1 }
  0x72   : > { %1127 = vmatpush.msrb.mxu1 %v3262_v13 }
  0x73   : > { %1154 = vmatpush.msrb.mxu2 %v3258_v12 }
  0x74   : > { %1128 = vmatpush.msrb.mxu1 %v3268_v15 }
  0x75   : > { %1155 = vmatpush.msrb.mxu2 %v3264_v14 }
  0x76   : > { %1129 = vmatpush.msrb.mxu1 %v3270_v16 }
  0x78   : > { %1436 = vmatpush.msra.mxu1 %v3256_v11 }
  0x7a   : > { %1437 = vmatpush.msra.mxu1 %v3262_v13 }
  0x7c   : > { %1438 = vmatpush.msra.mxu1 %v3268_v15 }
  0x7e   : > { %1439 = vmatpush.msra.mxu1 %v3270_v16 }
  0xc6   : > { %v863_v57 = vpop.permute.xlu2 %862 }
  0xdd   : > { %v3289_v19 = vpop.permute.xlu0 %798 }
  0xde   : > { %v801_v20 = vmul.f32 %v3289_v19, %v3287_v18 }
  0xe0   : > { %2311 = vmatmul.msk.f32.vlgmr.msra.gmra.mxu2 %vm803_vm3, %v801_v20  ;;  %v865_v58 = vmul.f32 %v863_v57, %v801_v20 }
  0xe1   : > { %1462 = vmatpush.msra.mxu2 %v3243_v8 }
  0xe2   : > { %v866_v59 = vsel %vm857_vm8, %v865_v58, 0.0 }
  0xe3   : > { %1463 = vmatpush.msra.mxu2 %v3248_v10 }
  0xe5   : > { %1464 = vmatpush.msra.mxu2 %v3258_v12 }
  0xe7   : > { %1465 = vmatpush.msra.mxu2 %v3264_v14  ;;  %v733_v22 = vpop.f32.mrf.mxu0 }
  0xe8   : > { %v734_v23 = vadd.f32 %v2513_v21, %v733_v22  ;;  %v3319_v22 = vld [vmem:[#allocation9] sm:$0x3] }
  0xea   : > { %749 = vst [vmem:[#allocation2] sm:$0xf] %v734_v23  }
  0xeb   : > { %758 = vst [vmem:[#allocation2] sm:$0xf0] %v734_v23   ;;  %v2976_v23 = vmov 0.0  }
  0xec   : > { %v824_v25 = vpop.f32.mrf.mxu1 }
  0xf1   : > { %v802_v24 = vld [vmem:[#allocation2] sm:$0x3] }
  0xf2   : > { %v827_v26 = vadd.f32 %v824_v25, %v802_v24  ;;  %v1040_v25 = vsub.f32 1.0, %v3319_v22 }
 0x163   : > { %v848_v27 = vpop.f32.mrf.mxu2 }
 0x164   : > { %v851_v28 = vadd.f32 %v848_v27, %v827_v26 }
 0x166   : > { %2519 = vtanh.f32 %v851_v28  ;;  %v2312_v30 = vmul.f32 -1.442695, %v851_v28 }
 0x168   : > { %2521 = vpow2.f32 %v2312_v30  ;;  %v3334_v30 = vld [vmem:[#allocation21 + $0x18] sm:$0xff] }
 0x169   : > { %974 = vmatpush.msrb.mxu0 %v3334_v30 }
 0x16c   : > { %v2520_v29 = vpop.eup %2519 }
 0x16d   : > { %898 = vrot.lane.b32.xlu0 %v2520_v29, %s2974_s23 }
 0x16e   : > { %v2522_v31 = vpop.eup %2521 }
 0x16f   : > { %v873_v32 = vadd.f32 1.0, %v2522_v31  ;;  %v3336_v31 = vld [vmem:[#allocation21 + $0x10] sm:$0xff] }
 0x170   : > { %975 = vmatpush.msrb.mxu0 %v3336_v31 }
 0x171   : > { %2523 = vrcp.f32 %v873_v32  ;;  %v885_v38 = vand.u32 2147483648, %v873_v32  ;;  %vm879_vm5 = vweird.f32 %v873_v32  ;;  %v883_v39 = vand.u32 2147483647, %v873_v32 }
 0x173   : > { %v886_v41 = vor.u32 1.1754944e-38, %v885_v38  ;;  %vm884_vm7 = vcmp.eq.f32.partialorder %v883_v39, 8.507059e+37 }
 0x177   : > { %v2524_v33 = vpop.eup %2523 }
 0x178   : > { %v875_v34 = vmul.f32 %v2524_v33, %v873_v32  ;;  %vm880_vm4 = vweird.f32 %v2524_v33  ;;  %v3339_v32 = vld [vmem:[#allocation21 + $0x8] sm:$0xff] }
 0x179   : > { %vm881_vm6 = vmor %vm879_vm5, %vm880_vm4  ;;  %976 = vmatpush.msrb.mxu0 %v3339_v32 }
 0x17a   : > { %v876_v35 = vsub.f32 1.0, %v875_v34  ;;  %v3346_v34 = vld [vmem:[#allocation20 + $0x18] sm:$0xff] }
 0x17b   : > { %950 = vmatpush.msra.mxu3 %v3346_v34 }
 0x17c   : > { %v877_v36 = vmul.f32 %v2524_v33, %v876_v35  ;;  %v3348_v35 = vld [vmem:[#allocation20 + $0x10] sm:$0xff] }
 0x17d   : > { %951 = vmatpush.msra.mxu3 %v3348_v35 }
 0x17e   : > { %v878_v37 = vadd.f32 %v2524_v33, %v877_v36  ;;  %v3352_v36 = vld [vmem:[#allocation20 + $0x8] sm:$0xff] }
 0x17f   : > { %952 = vmatpush.msra.mxu3 %v3352_v36 }
 0x180   : > { %v882_v40 = vsel %vm881_vm6, %v2524_v33, %v878_v37  ;;  %v3343_v33 = vld [vmem:[#allocation21] sm:$0xff] }
 0x181   : > { %v887_v43 = vsel %vm884_vm7, %v886_v41, %v882_v40  ;;  %977 = vmatpush.msrb.mxu0 %v3343_v33  ;;  %v3356_v37 = vld [vmem:[#allocation20] sm:$0xff] }
 0x182   : > { %v904_v53 = vmul.f32 %v887_v43, %v791_v52  ;;  %953 = vmatpush.msra.mxu3 %v3356_v37  ;;  %v3395_v41 = vld [vmem:[%s3855_s11] ss:$0 sm:$0xff] }
 0x183   : > { %1295 = vmatpush.msra.mxu0 %v3334_v30 }
 0x184   : > { %1269 = vmatpush.msrb.mxu3 %v3346_v34 }
 0x185   : > { %1296 = vmatpush.msra.mxu0 %v3336_v31 }
 0x186   : > { %1270 = vmatpush.msrb.mxu3 %v3348_v35 }
 0x187   : > { %1297 = vmatpush.msra.mxu0 %v3339_v32 }
 0x188   : > { %1271 = vmatpush.msrb.mxu3 %v3352_v36 }
 0x189   : > { %1298 = vmatpush.msra.mxu0 %v3343_v33 }
 0x18a   : > { %1272 = vmatpush.msrb.mxu3 %v3356_v37 }
 0x197   : > { %742 = vadd.xlane.f32.xlu0 %v741_v50 }
 0x1df   : > { %v899_v42 = vpop.permute.xlu0 %898 }
 0x1e0   : > { %v901_v44 = vmul.f32 %v899_v42, %v887_v43 }
 0x1e2   : > { %906 = vrot.lane.b32.xlu1 %v901_v44, %s2973_s26  ;;  %v902_v62 = vmul.f32 %v901_v44, %v3289_v19 }
 0x1ea   : > { %912 = vperm.xlu1 %2495, %v903_v45  }
 0x20a   : > { %v743_v61 = vpop.xlane.xlu0 %742 }
 0x20b   : > { %v748_v63 = vadd.f32 %v2515_v60, %v743_v61 }
 0x20d   : > { %751 = vst.msk [vmem:[#allocation3] sm:$0x3] %vm750_vm9, %v748_v63 }
 0x20e   : > { %756 = vst.msk [vmem:[#allocation3] sm:$0xc] %vm755_vm10, %v748_v63 }
 0x20f   : > { %761 = vst.msk [vmem:[#allocation3] sm:$0x30] %vm760_vm11, %v748_v63 }
 0x210   : > { %766 = vst.msk [vmem:[#allocation3] sm:$0xc0] %vm765_vm12, %v748_v63 }
 0x214   : > { %859 = vadd.xlane.f32.xlu1 %v858_v49  ;;  %v852_v3 = vld [vmem:[#allocation3] sm:$0x3] }
 0x254   : > { %v907_v51 = vpop.permute.xlu1 %906 }
 0x255   : > { %v909_v54 = vadd.f32 %v907_v51, %v904_v53 }
 0x25c   : > { %v913_v55 = vpop.permute.xlu1 %912 }
 0x25d   : > { %v915_v56 = vmul.f32 %v913_v55, %v909_v54 }
 0x25f   : > { %917 = vrot.lane.b32.xlu2 %v915_v56, %s3823_s21 }
 0x287   : > { %v860_v4 = vpop.xlane.xlu1 %859 }
 0x288   : > { %867 = vadd.xlane.f32.xlu2 %v866_v59  ;;  %v861_v6 = vadd.f32 %v860_v4, %v852_v3  ;;  %v794_v59 = vld [vmem:[#allocation8] sm:$0x3] }
 0x2b9   : > { %v918_v0 = vpop.permute.xlu2 %917 }
 0x2ba   : > { %v3314_v1 = vadd.f32 %v918_v0, %v902_v62 }
 0x2bc   : > { %2525 = vtanh.f32 %v3314_v1 }
 0x2c2   : > { %v2526_v2 = vpop.eup %2525 }
 0x2c3   : > { %923 = vrot.lane.b32.xlu2 %v2526_v2, %s3823_s21 }
 0x2fb   : > { %v868_v7 = vpop.xlane.xlu2 %867 }
 0x2fc   : > { %v869_v9 = vadd.f32 %v868_v7, %v861_v6 }
 0x2fe   : > { %v890_v17 = vadd.f32 1.0, %v869_v9 }
 0x300   : > { %v891_v19 = vmul.f32 0.5, %v890_v17 }
 0x302   : > { %v892_v20 = vmax.f32 %v891_v19, 0.0 }
 0x304   : > { %v893_v21 = vmin.f32 %v892_v20, 1.0 }
 0x306   : > { %vm894_vm13 = vcmp.gt.f32.partialorder %v893_v21, 0.5 }
 0x307   : > { %v3322_v24 = vsel %vm894_vm13, 1.0, %v2976_v23 }
 0x308   : > { %929 = vperm.xlu1 %2495, %v3322_v24   ;;  %v1047_v26 = vsub.f32 1.0, %v3322_v24 }
 0x30a   : > { %v1048_v27 = vmul.f32 %v1047_v26, %v1040_v25 }
 0x30c   : > { %1051 = vperm.xlu2 %2496, %v1048_v27  }
 0x314   : > { %1043 = vperm.xlu2 %2496, %v3319_v22  }
 0x31d   : > { %v924_v28 = vpop.permute.xlu2 %923 }
 0x31e   : > { %v3330_v29 = vmul.f32 %v924_v28, %v887_v43 }
 0x320   : > { %934 = vrot.lane.b32.xlu0 %v3330_v29, %s2974_s23 }
 0x366   : > { %v1052_v60 = vpop.permute.xlu2 %1051 }
 0x367   : > { %v1054_v61 = vmul.f32 %v1052_v60, %v794_v59  ;;  %v1085_v62 = vmul.f32 %v1052_v60, %v3287_v18 }
 0x36e   : > { %v1044_v6 = vpop.permute.xlu2 %1043 }
 0x37a   : > { %v3366_v38 = vpop.permute.xlu1 %929 }
 0x37b   : > { %v3370_v39 = vmul.f32 %v3366_v38, %v3287_v18 }
 0x37d   : > { %2315 = vmatmul.msk.f32.vlgmr.msrb.gmra.mxu0 %vm803_vm3, %v3370_v39 }
 0x37e   : > { %1599 = vmatpush.msrb.mxu0 %v3334_v30 }
 0x380   : > { %1600 = vmatpush.msrb.mxu0 %v3336_v31 }
 0x382   : > { %1601 = vmatpush.msrb.mxu0 %v3339_v32 }
 0x384   : > { %1602 = vmatpush.msrb.mxu0 %v3343_v33 }
 0x392   : > { %v3378_v40 = vpop.permute.xlu0 %934 }
 0x393   : > { %2314 = vmatmul.msk.f32.vlgmr.msra.gmra.mxu3 %vm803_vm3, %v3378_v40  ;;  %2318 = vmatmul.msk.f32.vlgmr.msrb.gmra.mxu1 %vm803_vm3, %v3378_v40 }
 0x394   : > { %1573 = vmatpush.msra.mxu3 %v3346_v34  ;;  %1737 = vmatpush.msrb.mxu1 %v3256_v11 }
 0x396   : > { %1574 = vmatpush.msra.mxu3 %v3348_v35  ;;  %1738 = vmatpush.msrb.mxu1 %v3262_v13 }
 0x398   : > { %1575 = vmatpush.msra.mxu3 %v3352_v36  ;;  %1739 = vmatpush.msrb.mxu1 %v3268_v15  ;;  %v1060_v15 = vmul.f32 %v3322_v24, %v1040_v25 }
 0x39a   : > { %1576 = vmatpush.msra.mxu3 %v3356_v37  ;;  %1740 = vmatpush.msrb.mxu1 %v3270_v16 }
 0x3fa   : > { %v979_v43 = vpop.f32.mrf.mxu0 }
 0x416   : > { %v955_v42 = vpop.f32.mrf.mxu3 }
 0x417   : > { %v958_v11 = vadd.f32 %v3395_v41, %v955_v42 }
 0x419   : > { %v982_v44 = vadd.f32 %v979_v43, %v958_v11 }
 0x41b   : > { %2527 = vtanh.f32 %v982_v44  ;;  %v2316_v45 = vmul.f32 -1.442695, %v982_v44 }
 0x41d   : > { %2529 = vpow2.f32 %v2316_v45 }
 0x421   : > { %v2528_v13 = vpop.eup %2527 }
 0x422   : > { %1036 = vrot.lane.b32.xlu0 %v2528_v13, %s2974_s23  ;;  %v1131_v13 = vpop.f32.mrf.mxu1 }
 0x423   : > { %v2530_v16 = vpop.eup %2529 }
 0x424   : > { %v1011_v46 = vadd.f32 1.0, %v2530_v16 }
 0x426   : > { %2531 = vrcp.f32 %v1011_v46  ;;  %v1023_v52 = vand.u32 2147483648, %v1011_v46  ;;  %vm1017_vm15 = vweird.f32 %v1011_v46  ;;  %v1021_v53 = vand.u32 2147483647, %v1011_v46 }
 0x428   : > { %v1024_v55 = vor.u32 1.1754944e-38, %v1023_v52  ;;  %vm1022_vm1 = vcmp.eq.f32.partialorder %v1021_v53, 8.507059e+37 }
 0x42a   : > { %1069 = vperm.xlu0 %2494, %v1060_v15   ;;  %v1113_v15 = vld [vmem:[#allocation2 + $0x2] sm:$0x3] }
 0x42b   : > { %v1134_v45 = vadd.f32 %v1131_v13, %v1113_v15 }
 0x42c   : > { %v2532_v47 = vpop.eup %2531 }
 0x42d   : > { %v1013_v48 = vmul.f32 %v2532_v47, %v1011_v46  ;;  %vm1018_vm14 = vweird.f32 %v2532_v47 }
 0x42e   : > { %vm1019_vm0 = vmor %vm1017_vm15, %vm1018_vm14 }
 0x42f   : > { %v1014_v49 = vsub.f32 1.0, %v1013_v48 }
 0x431   : > { %v1015_v50 = vmul.f32 %v2532_v47, %v1014_v49 }
 0x433   : > { %v1016_v51 = vadd.f32 %v2532_v47, %v1015_v50 }
 0x435   : > { %v1020_v54 = vsel %vm1019_vm0, %v2532_v47, %v1016_v51 }
 0x436   : > { %v1025_v57 = vsel %vm1022_vm1, %v1024_v55, %v1020_v54 }
 0x437   : > { %v1061_v63 = vmul.f32 %v1025_v57, %v794_v59 }
 0x494   : > { %v1037_v56 = vpop.permute.xlu0 %1036 }
 0x495   : > { %v1039_v58 = vmul.f32 %v1037_v56, %v1025_v57 }
 0x497   : > { %1063 = vrot.lane.b32.xlu1 %v1039_v58, %s2973_s26  ;;  %v1046_v9 = vmul.f32 %v1044_v6, %v1039_v58 }
 0x49c   : > { %v1070_v3 = vpop.permute.xlu0 %1069 }
 0x49f   : > { %1056 = vrot.lane.b32.xlu1 %v1054_v61, %s3823_s21 }
 0x4a7   : > { %1087 = vrot.lane.b32.xlu1 %v1085_v62, %s2974_s23 }
 0x4af   : > { %1162 = vrot.lane.b32.xlu1 %v3240_v5, %s2974_s23 }
 0x509   : > { %v1064_v0 = vpop.permute.xlu1 %1063 }
 0x50a   : > { %v1066_v2 = vadd.f32 %v1064_v0, %v1061_v63 }
 0x50c   : > { %v1072_v4 = vmul.f32 %v1070_v3, %v1066_v2 }
 0x50e   : > { %1074 = vrot.lane.b32.xlu0 %v1072_v4, %s3823_s21 }
 0x511   : > { %v1057_v7 = vpop.permute.xlu1 %1056 }
 0x512   : > { %v1059_v17 = vadd.f32 %v1057_v7, %v1046_v9  ;;  %v3444_v9 = vld [vmem:[%s3856_s10] ss:$0 sm:$0xff] }
 0x519   : > { %v1088_v27 = vpop.permute.xlu1 %1087 }
 0x580   : > { %v1075_v19 = vpop.permute.xlu0 %1074 }
 0x581   : > { %v3407_v20 = vadd.f32 %v1075_v19, %v1059_v17 }
 0x583   : > { %2533 = vtanh.f32 %v3407_v20 }
 0x589   : > { %v2534_v18 = vpop.eup %2533 }
 0x58a   : > { %1080 = vrot.lane.b32.xlu2 %v2534_v18, %s3823_s21 }
 0x5e4   : > { %v1081_v21 = vpop.permute.xlu2 %1080 }
 0x5e5   : > { %v1083_v22 = vmul.f32 %v1081_v21, %v1025_v57 }
 0x5e7   : > { %v1084_v25 = vmul.f32 %v1083_v22, %v1044_v6  ;;  %v1091_v42 = vmul.f32 %v1083_v22, %v1070_v3  ;;  %v1161_v22 = vld [vmem:[#allocation3 + $0x2] sm:$0x3] }
 0x5e9   : > { %v1090_v28 = vadd.f32 %v1088_v27, %v1084_v25 }
 0x5eb   : > { %v3411_v11 = vadd.f32 %v1091_v42, %v1090_v28 }
 0x5ed   : > { %v1112_v43 = vmul.f32 %v3411_v11, %v3366_v38 }
 0x5ef   : > { %1136 = vrot.lane.b32.xlu0 %v1112_v43, %s2974_s23 }
 0x5f7   : > { %1174 = vrot.lane.b32.xlu0 %v3240_v5, %s3823_s21 }
 0x5ff   : > { %1231 = vperm.xlu0 %2494, %v1047_v26   ;;  %v3428_v26 = vpop.permute.xlu1 %1162 }
 0x661   : > { %v1137_v44 = vpop.permute.xlu0 %1136 }
 0x662   : > { %2319 = vmatmul.msk.f32.vlgmr.msrb.gmra.mxu2 %vm803_vm3, %v1137_v44 }
 0x663   : > { %1763 = vmatpush.msrb.mxu2 %v3243_v8  ;;  %v1165_v8 = vmul.f32 %v3428_v26, %v3330_v29 }
 0x665   : > { %1764 = vmatpush.msrb.mxu2 %v3248_v10 }
 0x667   : > { %1765 = vmatpush.msrb.mxu2 %v3258_v12 }
 0x669   : > { %1766 = vmatpush.msrb.mxu2 %v3264_v14  ;;  %v3434_v58 = vpop.permute.xlu0 %1174 }
 0x66a   : > { %v1177_v60 = vmul.f32 %v3434_v58, %v1112_v43 }
 0x671   : > { %v1232_v3 = vpop.permute.xlu0 %1231 }
 0x6e5   : > { %v1157_v16 = vpop.f32.mrf.mxu2 }
 0x6e6   : > { %v1160_v46 = vadd.f32 %v1157_v16, %v1134_v45 }
 0x6e8   : > { %2535 = vtanh.f32 %v1160_v46  ;;  %v2320_v10 = vmul.f32 -1.442695, %v1160_v46 }
 0x6ea   : > { %2537 = vpow2.f32 %v2320_v10 }
 0x6ee   : > { %v2536_v5 = vpop.eup %2535 }
 0x6ef   : > { %1214 = vrot.lane.b32.xlu2 %v2536_v5, %s2974_s23 }
 0x6f0   : > { %v2538_v12 = vpop.eup %2537 }
 0x6f1   : > { %v1189_v14 = vadd.f32 1.0, %v2538_v12 }
 0x6f3   : > { %2539 = vrcp.f32 %v1189_v14  ;;  %v1201_v52 = vand.u32 2147483648, %v1189_v14  ;;  %vm1195_vm4 = vweird.f32 %v1189_v14 }
 0x6f5   : > { %v1202_v54 = vor.u32 1.1754944e-38, %v1201_v52 }
 0x6f7   : > { %1220 = vrot.lane.b32.xlu2 %v3314_v1, %s2973_s26  ;;  %v1199_v1 = vand.u32 2147483647, %v1189_v14 }
 0x6f9   : > { %v2540_v47 = vpop.eup %2539  ;;  %vm1200_vm6 = vcmp.eq.f32.partialorder %v1199_v1, 8.507059e+37 }
 0x6fa   : > { %v1191_v48 = vmul.f32 %v2540_v47, %v1189_v14  ;;  %vm1196_vm2 = vweird.f32 %v2540_v47 }
 0x6fb   : > { %vm1197_vm5 = vmor %vm1195_vm4, %vm1196_vm2 }
 0x6fc   : > { %v1192_v49 = vsub.f32 1.0, %v1191_v48 }
 0x6fe   : > { %v1193_v50 = vmul.f32 %v2540_v47, %v1192_v49  ;;  %v3498_v49 = vld [vmem:[#allocation11] ss:$0 sm:$0xff] }
 0x6ff   : > { %1167 = vrot.lane.b32.xlu2 %v1165_v8, %s2974_s23 }
 0x700   : > { %v1194_v51 = vadd.f32 %v2540_v47, %v1193_v50 }
 0x702   : > { %v1198_v53 = vsel %vm1197_vm5, %v2540_v47, %v1194_v51 }
 0x703   : > { %v1203_v56 = vsel %vm1200_vm6, %v1202_v54, %v1198_v53 }
 0x749   : > { %v1215_v55 = vpop.permute.xlu2 %1214 }
 0x74a   : > { %v1217_v57 = vmul.f32 %v1215_v55, %v1203_v56 }
 0x74c   : > { %1225 = vrot.lane.b32.xlu1 %v1217_v57, %s2973_s26  ;;  %v1218_v17 = vmul.f32 %v1217_v57, %v3366_v38 }
 0x751   : > { %v1221_v59 = vpop.permute.xlu2 %1220 }
 0x752   : > { %v1223_v63 = vmul.f32 %v1221_v59, %v1203_v56 }
 0x754   : > { %1179 = vrot.lane.b32.xlu1 %v1177_v60, %s2974_s23 }
 0x759   : > { %v1168_v61 = vpop.permute.xlu2 %1167 }
 0x75a   : > { %v1170_v62 = vsel %vm857_vm8, %v1168_v61, 0.0 }
 0x75b   : > { %1171 = vadd.xlane.f32.xlu2 %v1170_v62 }
 0x7be   : > { %v1226_v0 = vpop.permute.xlu1 %1225 }
 0x7bf   : > { %v1228_v2 = vadd.f32 %v1226_v0, %v1223_v63 }
 0x7c1   : > { %v1234_v4 = vmul.f32 %v1232_v3, %v1228_v2 }
 0x7c3   : > { %1236 = vrot.lane.b32.xlu0 %v1234_v4, %s3823_s21 }
 0x7c6   : > { %v1180_v6 = vpop.permute.xlu1 %1179 }
 0x7c7   : > { %v1182_v7 = vsel %vm857_vm8, %v1180_v6, 0.0 }
 0x7c8   : > { %1183 = vadd.xlane.f32.xlu1 %v1182_v7 }
 0x7ce   : > { %v1172_v21 = vpop.xlane.xlu2 %1171 }
 0x7cf   : > { %v1173_v25 = vadd.f32 %v1172_v21, %v1161_v22 }
 0x7e1   : > { %1000 = vrot.lane.b32.xlu1 %v3444_v9, %s2973_s26 }
 0x835   : > { %v1237_v19 = vpop.permute.xlu0 %1236 }
 0x836   : > { %v3449_v18 = vadd.f32 %v1237_v19, %v1218_v17 }
 0x838   : > { %2541 = vtanh.f32 %v3449_v18 }
 0x83b   : > { %v1184_v27 = vpop.xlane.xlu1 %1183 }
 0x83c   : > { %v1185_v28 = vadd.f32 %v1184_v27, %v1173_v25 }
 0x83e   : > { %v2542_v42 = vpop.eup %2541  ;;  %v1206_v43 = vadd.f32 1.0, %v1185_v28 }
 0x83f   : > { %1242 = vrot.lane.b32.xlu0 %v2542_v42, %s3823_s21 }
 0x840   : > { %v1207_v44 = vmul.f32 0.5, %v1206_v43 }
 0x842   : > { %v1208_v13 = vmax.f32 %v1207_v44, 0.0 }
 0x844   : > { %v1209_v15 = vmin.f32 %v1208_v13, 1.0 }
 0x846   : > { %vm1210_vm7 = vcmp.gt.f32.partialorder %v1209_v15, 0.5 }
 0x847   : > { %v3454_v38 = vsel %vm1210_vm7, 1.0, %v2976_v23 }
 0x848   : > { %1248 = vperm.xlu0 %2494, %v3454_v38   ;;  %v1363_v25 = vsub.f32 1.0, %v3454_v38 }
 0x8b1   : > { %v1243_v45 = vpop.permute.xlu0 %1242 }
 0x8b2   : > { %v3457_v16 = vmul.f32 %v1243_v45, %v1203_v56 }
 0x8b4   : > { %1253 = vrot.lane.b32.xlu0 %v3457_v16, %s2974_s23  ;;  %v1472_v45 = vmul.f32 %v3457_v16, %v3428_v26 }
 0x8ba   : > { %v3461_v46 = vpop.permute.xlu0 %1248 }
 0x8bb   : > { %v3465_v5 = vmul.f32 %v3461_v46, %v3411_v11 }
 0x8bd   : > { %1279 = vrot.lane.b32.xlu0 %v3465_v5, %s2974_s23 }
 0x8c5   : > { %985 = vrot.lane.b32.xlu0 %v3444_v9, %s2974_s23 }
 0x926   : > { %v3471_v8 = vpop.permute.xlu0 %1253 }
 0x927   : > { %2322 = vmatmul.msk.f32.vlgmr.msrb.gmra.mxu3 %vm803_vm3, %v3471_v8  ;;  %2327 = vmatmul.msk.f32.vlgmr.msra.gmra.mxu1 %vm803_vm3, %v3471_v8 }
 0x928   : > { %1874 = vmatpush.msrb.mxu3 %v3346_v34 }
 0x92a   : > { %1875 = vmatpush.msrb.mxu3 %v3348_v35  ;;  %v1001_v35 = vpop.permute.xlu1 %1000 }
 0x92c   : > { %1876 = vmatpush.msrb.mxu3 %v3352_v36  ;;  %v1003_v36 = vmul.f32 %v1001_v35, %v3370_v39 }
 0x92e   : > { %1877 = vmatpush.msrb.mxu3 %v3356_v37  ;;  %v1004_v37 = vsel %vm857_vm8, %v1003_v36, 0.0 }
 0x92f   : > { %v1280_v10 = vpop.permute.xlu0 %1279 }
 0x930   : > { %2323 = vmatmul.msk.f32.vlgmr.msra.gmra.mxu0 %vm803_vm3, %v1280_v10 }
 0x931   : > { %1900 = vmatpush.msra.mxu0 %v3334_v30 }
 0x933   : > { %1901 = vmatpush.msra.mxu0 %v3336_v31 }
 0x935   : > { %1902 = vmatpush.msra.mxu0 %v3339_v32 }
 0x937   : > { %v3485_v12 = vpop.permute.xlu0 %985  ;;  %1903 = vmatpush.msra.mxu0 %v3343_v33 }
 0x938   : > { %v988_v34 = vmul.f32 %v3485_v12, %v3330_v29 }
 0x93a   : > { %990 = vrot.lane.b32.xlu2 %v988_v34, %s2974_s23 }
 0x963   : > { %1005 = vadd.xlane.f32.xlu2 %v1004_v37 }
 0x994   : > { %v991_v30 = vpop.permute.xlu2 %990 }
 0x995   : > { %v993_v31 = vsel %vm857_vm8, %v991_v30, 0.0 }
 0x996   : > { %994 = vadd.xlane.f32.xlu0 %v993_v31 }
 0x9aa   : > { %v1274_v32 = vpop.f32.mrf.mxu3 }
 0x9ab   : > { %v1277_v14 = vadd.f32 %v3395_v41, %v1274_v32 }
 0x9ad   : > { %v1300_v47 = vpop.f32.mrf.mxu0 }
 0x9ae   : > { %v1303_v33 = vadd.f32 %v1300_v47, %v1277_v14 }
 0x9b0   : > { %2543 = vtanh.f32 %v1303_v33  ;;  %v2324_v29 = vmul.f32 -1.442695, %v1303_v33  ;;  %v1304_v33 = vmul.f32 %v3457_v16, %v3485_v12 }
 0x9b2   : > { %2545 = vpow2.f32 %v2324_v29 }
 0x9b6   : > { %v2544_v48 = vpop.eup %2543 }
 0x9b7   : > { %1353 = vrot.lane.b32.xlu1 %v2544_v48, %s2974_s23 }
 0x9b8   : > { %v2546_v39 = vpop.eup %2545 }
 0x9b9   : > { %v1328_v50 = vadd.f32 1.0, %v2546_v39 }
 0x9bb   : > { %2547 = vrcp.f32 %v1328_v50  ;;  %v1340_v4 = vand.u32 2147483648, %v1328_v50  ;;  %vm1334_vm12 = vweird.f32 %v1328_v50  ;;  %v1338_v6 = vand.u32 2147483647, %v1328_v50 }
 0x9bd   : > { %v1341_v17 = vor.u32 1.1754944e-38, %v1340_v4  ;;  %vm1339_vm14 = vcmp.eq.f32.partialorder %v1338_v6, 8.507059e+37 }
 0x9bf   : > { %1374 = vrot.lane.b32.xlu1 %v3407_v20, %s2973_s26 }
 0x9c1   : > { %v2548_v57 = vpop.eup %2547 }
 0x9c2   : > { %v1330_v60 = vmul.f32 %v2548_v57, %v1328_v50  ;;  %vm1335_vm11 = vweird.f32 %v2548_v57 }
 0x9c3   : > { %vm1336_vm13 = vmor %vm1334_vm12, %vm1335_vm11 }
 0x9c4   : > { %v1331_v0 = vsub.f32 1.0, %v1330_v60 }
 0x9c6   : > { %v1332_v2 = vmul.f32 %v2548_v57, %v1331_v0 }
 0x9c8   : > { %v1333_v3 = vadd.f32 %v2548_v57, %v1332_v2 }
 0x9ca   : > { %v1337_v7 = vsel %vm1336_vm13, %v2548_v57, %v1333_v3 }
 0x9cb   : > { %v1342_v21 = vsel %vm1339_vm14, %v1341_v17, %v1337_v7 }
 0x9d6   : > { %v1006_v1 = vpop.xlane.xlu2 %1005 }
 0xa09   : > { %v995_v51 = vpop.xlane.xlu0 %994 }
 0xa0a   : > { %v999_v52 = vadd.f32 %v3498_v49, %v995_v51 }
 0xa0c   : > { %v1007_v53 = vadd.f32 %v1006_v1, %v999_v52 }
 0xa0e   : > { %v1028_v54 = vadd.f32 1.0, %v1007_v53  ;;  %v1441_v53 = vpop.f32.mrf.mxu1 }
 0xa10   : > { %v1029_v55 = vmul.f32 0.5, %v1028_v54  ;;  %v1423_v54 = vld [vmem:[#allocation2 + $0x4] sm:$0x3] }
 0xa12   : > { %v1030_v56 = vmax.f32 %v1029_v55, 0.0  ;;  %v1444_v55 = vadd.f32 %v1441_v53, %v1423_v54 }
 0xa14   : > { %v1031_v59 = vmin.f32 %v1030_v56, 1.0 }
 0xa16   : > { %vm1032_vm10 = vcmp.gt.f32.partialorder %v1031_v59, 0.5 }
 0xa17   : > { %v3502_v61 = vsel %vm1032_vm10, 1.0, %v2976_v23 }
 0xa18   : > { %v1357_v62 = vsub.f32 1.0, %v3502_v61 }
 0xa1a   : > { %v1372_v63 = vmul.f32 %v3454_v38, %v1357_v62  ;;  %v1364_v27 = vmul.f32 %v1363_v25, %v1357_v62 }
 0xa1c   : > { %1385 = vperm.xlu0 %2494, %v1372_v63  }
 0xa29   : > { %v1354_v19 = vpop.permute.xlu1 %1353 }
 0xa2a   : > { %v1356_v22 = vmul.f32 %v1354_v19, %v1342_v21 }
 0xa2c   : > { %1379 = vrot.lane.b32.xlu1 %v1356_v22, %s2973_s26 }
 0xa31   : > { %v1375_v28 = vpop.permute.xlu1 %1374 }
 0xa32   : > { %v1377_v42 = vmul.f32 %v1375_v28, %v1342_v21 }
 0xa34   : > { %1359 = vperm.xlu1 %2495, %v3502_v61  }
 0xa3c   : > { %1367 = vperm.xlu1 %2495, %v1364_v27  }
 0xa8e   : > { %v1386_v13 = vpop.permute.xlu0 %1385 }
 0xa9e   : > { %v1380_v43 = vpop.permute.xlu1 %1379 }
 0xa9f   : > { %v1382_v44 = vadd.f32 %v1380_v43, %v1377_v42 }
 0xaa1   : > { %v1388_v15 = vmul.f32 %v1386_v13, %v1382_v44 }
 0xaa3   : > { %1390 = vrot.lane.b32.xlu2 %v1388_v15, %s3823_s21 }
 0xaa6   : > { %v1360_v10 = vpop.permute.xlu1 %1359 }
 0xaa7   : > { %v1362_v36 = vmul.f32 %v1360_v10, %v1356_v22 }
 0xaab   : > { %1474 = vrot.lane.b32.xlu2 %v1472_v45, %s2974_s23 }
 0xaae   : > { %v1368_v34 = vpop.permute.xlu1 %1367 }
 0xaaf   : > { %v1370_v35 = vmul.f32 %v1368_v34, %v3407_v20  ;;  %v1401_v29 = vmul.f32 %v1368_v34, %v3411_v11 }
 0xab1   : > { %v1371_v37 = vadd.f32 %v1370_v35, %v1362_v36 }
 0xafd   : > { %v1391_v30 = vpop.permute.xlu2 %1390 }
 0xafe   : > { %v3514_v31 = vadd.f32 %v1391_v30, %v1371_v37  ;;  %v1471_v30 = vld [vmem:[#allocation3 + $0x4] sm:$0x3] }
 0xb00   : > { %2549 = vtanh.f32 %v3514_v31 }
 0xb05   : > { %v1475_v32 = vpop.permute.xlu2 %1474 }
 0xb06   : > { %v2550_v14 = vpop.eup %2549  ;;  %v1477_v47 = vsel %vm857_vm8, %v1475_v32, 0.0 }
 0xb07   : > { %1478 = vadd.xlane.f32.xlu2 %v1477_v47  ;;  %1396 = vrot.lane.b32.xlu0 %v2550_v14, %s3823_s21 }
 0xb1f   : > { %1306 = vrot.lane.b32.xlu2 %v1304_v33, %s2974_s23 }
 0xb79   : > { %v1397_v20 = vpop.permute.xlu0 %1396 }
 0xb7a   : > { %v1399_v48 = vmul.f32 %v1397_v20, %v1342_v21  ;;  %v1479_v37 = vpop.xlane.xlu2 %1478 }
 0xb7b   : > { %v1480_v32 = vadd.f32 %v1479_v37, %v1471_v30 }
 0xb7c   : > { %v1400_v39 = vmul.f32 %v1399_v48, %v1360_v10  ;;  %v1403_v51 = vmul.f32 %v1399_v48, %v1386_v13 }
 0xb7e   : > { %v1402_v50 = vadd.f32 %v1401_v29, %v1400_v39 }
 0xb80   : > { %v3523_v52 = vadd.f32 %v1403_v51, %v1402_v50 }
 0xb82   : > { %v1422_v1 = vmul.f32 %v3523_v52, %v3461_v46  ;;  %v1307_v53 = vpop.permute.xlu2 %1306 }
 0xb83   : > { %v1309_v54 = vsel %vm857_vm8, %v1307_v53, 0.0 }
 0xb84   : > { %1446 = vrot.lane.b32.xlu1 %v1422_v1, %s2974_s23  ;;  %v1481_v27 = vmul.f32 %v1422_v1, %v3434_v58 }
 0xb8c   : > { %1524 = vrot.lane.b32.xlu1 %v3449_v18, %s2973_s26 }
 0xb94   : > { %1535 = vperm.xlu1 %2495, %v1363_v25  }
 0xbf6   : > { %v1447_v16 = vpop.permute.xlu1 %1446 }
 0xbf7   : > { %2328 = vmatmul.msk.f32.vlgmr.msra.gmra.mxu2 %vm803_vm3, %v1447_v16 }
 0xbfe   : > { %v1525_v28 = vpop.permute.xlu1 %1524 }
 0xc06   : > { %v1536_v13 = vpop.permute.xlu1 %1535 }
 0xc7a   : > { %v1467_v56 = vpop.f32.mrf.mxu2 }
 0xc7b   : > { %v1470_v57 = vadd.f32 %v1467_v56, %v1444_v55 }
 0xc7d   : > { %2551 = vtanh.f32 %v1470_v57  ;;  %v2329_v60 = vmul.f32 -1.442695, %v1470_v57 }
 0xc7f   : > { %2553 = vpow2.f32 %v2329_v60 }
 0xc83   : > { %v2552_v59 = vpop.eup %2551 }
 0xc84   : > { %1518 = vrot.lane.b32.xlu0 %v2552_v59, %s2974_s23 }
 0xc85   : > { %v2554_v62 = vpop.eup %2553 }
 0xc86   : > { %v1493_v63 = vadd.f32 1.0, %v2554_v62 }
 0xc88   : > { %2555 = vrcp.f32 %v1493_v63  ;;  %v1505_v6 = vand.u32 2147483648, %v1493_v63  ;;  %vm1499_vm0 = vweird.f32 %v1493_v63  ;;  %v1503_v7 = vand.u32 2147483647, %v1493_v63 }
 0xc8a   : > { %v1506_v19 = vor.u32 1.1754944e-38, %v1505_v6  ;;  %vm1504_vm2 = vcmp.eq.f32.partialorder %v1503_v7, 8.507059e+37 }
 0xc8e   : > { %v2556_v0 = vpop.eup %2555 }
 0xc8f   : > { %v1495_v18 = vmul.f32 %v2556_v0, %v1493_v63  ;;  %vm1500_vm15 = vweird.f32 %v2556_v0 }
 0xc90   : > { %vm1501_vm1 = vmor %vm1499_vm0, %vm1500_vm15 }
 0xc91   : > { %v1496_v2 = vsub.f32 1.0, %v1495_v18 }
 0xc93   : > { %v1497_v3 = vmul.f32 %v2556_v0, %v1496_v2 }
 0xc95   : > { %v1498_v4 = vadd.f32 %v2556_v0, %v1497_v3 }
 0xc97   : > { %v1502_v17 = vsel %vm1501_vm1, %v2556_v0, %v1498_v4  ;;  %vm1106_vm1 = vcmask 523264  }
 0xc98   : > { %v1507_v22 = vsel %vm1504_vm2, %v1506_v19, %v1502_v17  ;;  %vm1108_vm2 = vcmask 531456  }
 0xc99   : > { %v1527_v42 = vmul.f32 %v1525_v28, %v1507_v22 }
 0xcf6   : > { %v1519_v21 = vpop.permute.xlu0 %1518 }
 0xcf7   : > { %v1521_v25 = vmul.f32 %v1519_v21, %v1507_v22 }
 0xcf9   : > { %1529 = vrot.lane.b32.xlu0 %v1521_v25, %s2973_s26  ;;  %v1522_v34 = vmul.f32 %v1521_v25, %v3461_v46 }
 0xd01   : > { %1483 = vrot.lane.b32.xlu0 %v1481_v27, %s2974_s23 }
 0xd6b   : > { %v1530_v43 = vpop.permute.xlu0 %1529 }
 0xd6c   : > { %v1532_v44 = vadd.f32 %v1530_v43, %v1527_v42 }
 0xd6e   : > { %v1538_v15 = vmul.f32 %v1536_v13, %v1532_v44 }
 0xd70   : > { %1540 = vrot.lane.b32.xlu1 %v1538_v15, %s3823_s21 }
 0xd73   : > { %v1484_v45 = vpop.permute.xlu0 %1483 }
 0xd74   : > { %v1486_v10 = vsel %vm857_vm8, %v1484_v45, 0.0 }
 0xd75   : > { %1487 = vadd.xlane.f32.xlu0 %v1486_v10 }
 0xde2   : > { %v1541_v35 = vpop.permute.xlu1 %1540 }
 0xde3   : > { %v3538_v36 = vadd.f32 %v1541_v35, %v1522_v34 }
 0xde5   : > { %2557 = vtanh.f32 %v3538_v36 }
 0xde8   : > { %v1488_v14 = vpop.xlane.xlu0 %1487 }
 0xde9   : > { %v1489_v47 = vadd.f32 %v1488_v14, %v1480_v32 }
 0xdeb   : > { %v2558_v33 = vpop.eup %2557  ;;  %v1510_v20 = vadd.f32 1.0, %v1489_v47 }
 0xdec   : > { %1546 = vrot.lane.b32.xlu1 %v2558_v33, %s3823_s21 }
 0xded   : > { %v1511_v48 = vmul.f32 0.5, %v1510_v20 }
 0xdef   : > { %v1512_v29 = vmax.f32 %v1511_v48, 0.0 }
 0xdf1   : > { %v1513_v39 = vmin.f32 %v1512_v29, 1.0 }
 0xdf3   : > { %vm1514_vm4 = vcmp.gt.f32.partialorder %v1513_v39, 0.5 }
 0xdf4   : > { %v3543_v46 = vsel %vm1514_vm4, 1.0, %v2976_v23  ;;  %vm1110_vm4 = vcmask 533504  }
 0xdf5   : > { %1552 = vperm.xlu1 %2495, %v3543_v46   ;;  %v1664_v47 = vsub.f32 1.0, %v3543_v46 }
 0xe5e   : > { %v1547_v50 = vpop.permute.xlu1 %1546 }
 0xe5f   : > { %v3546_v51 = vmul.f32 %v1547_v50, %v1507_v22 }
 0xe61   : > { %1557 = vrot.lane.b32.xlu1 %v3546_v51, %s2974_s23 }
 0xe67   : > { %v3550_v1 = vpop.permute.xlu1 %1552 }
 0xe68   : > { %v3554_v16 = vmul.f32 %v3550_v1, %v3523_v52 }
 0xe6a   : > { %1583 = vrot.lane.b32.xlu1 %v3554_v16, %s2974_s23 }
 0xe72   : > { %1313 = vrot.lane.b32.xlu1 %v3444_v9, %s3823_s21 }
 0xe9c   : > { %1310 = vadd.xlane.f32.xlu1 %v1309_v54 }
 0xed3   : > { %v3561_v55 = vpop.permute.xlu1 %1557 }
 0xed4   : > { %2331 = vmatmul.msk.f32.vlgmr.msra.gmra.mxu3 %vm803_vm3, %v3561_v55  ;;  %2336 = vmatmul.msk.f32.vlgmr.msrb.gmra.mxu1 %vm803_vm3, %v3561_v55 }
 0xedc   : > { %v1584_v56 = vpop.permute.xlu1 %1583 }
 0xedd   : > { %2332 = vmatmul.msk.f32.vlgmr.msrb.gmra.mxu0 %vm803_vm3, %v1584_v56 }
 0xee4   : > { %v3568_v57 = vpop.permute.xlu1 %1313 }
 0xee5   : > { %v1316_v9 = vmul.f32 %v3568_v57, %v3465_v5 }
 0xee7   : > { %1318 = vrot.lane.b32.xlu0 %v1316_v9, %s2974_s23 }
 0xf0f   : > { %v1311_v44 = vpop.xlane.xlu1 %1310 }
 0xf10   : > { %v1312_v13 = vadd.f32 %v3498_v49, %v1311_v44 }
 0xf57   : > { %v1578_v59 = vpop.f32.mrf.mxu3 }
 0xf58   : > { %v1581_v60 = vadd.f32 %v3395_v41, %v1578_v59 }
 0xf59   : > { %v1319_v62 = vpop.permute.xlu0 %1318 }
 0xf5a   : > { %v1604_v63 = vpop.f32.mrf.mxu0  ;;  %v1321_v0 = vsel %vm857_vm8, %v1319_v62, 0.0 }
 0xf5b   : > { %v1607_v18 = vadd.f32 %v1604_v63, %v1581_v60  ;;  %1322 = vadd.xlane.f32.xlu0 %v1321_v0 }
 0xf5d   : > { %2559 = vtanh.f32 %v1607_v18  ;;  %v2333_v3 = vmul.f32 -1.442695, %v1607_v18 }
 0xf5f   : > { %2561 = vpow2.f32 %v2333_v3 }
 0xf63   : > { %v2560_v2 = vpop.eup %2559 }
 0xf64   : > { %1654 = vrot.lane.b32.xlu2 %v2560_v2, %s2974_s23 }
 0xf65   : > { %v2562_v5 = vpop.eup %2561 }
 0xf66   : > { %v1629_v4 = vadd.f32 1.0, %v2562_v5 }
 0xf68   : > { %2563 = vrcp.f32 %v1629_v4  ;;  %v1641_v21 = vand.u32 2147483648, %v1629_v4  ;;  %vm1635_vm6 = vweird.f32 %v1629_v4  ;;  %v1639_v22 = vand.u32 2147483647, %v1629_v4 }
 0xf6a   : > { %v1642_v27 = vor.u32 1.1754944e-38, %v1641_v21  ;;  %vm1640_vm10 = vcmp.eq.f32.partialorder %v1639_v22, 8.507059e+37 }
 0xf6c   : > { %1675 = vrot.lane.b32.xlu2 %v3514_v31, %s2973_s26 }
 0xf6e   : > { %v2564_v6 = vpop.eup %2563 }
 0xf6f   : > { %v1631_v41 = vmul.f32 %v2564_v6, %v1629_v4  ;;  %vm1636_vm5 = vweird.f32 %v2564_v6 }
 0xf70   : > { %vm1637_vm7 = vmor %vm1635_vm6, %vm1636_vm5 }
 0xf71   : > { %v1632_v7 = vsub.f32 1.0, %v1631_v41 }
 0xf73   : > { %v1633_v17 = vmul.f32 %v2564_v6, %v1632_v7  ;;  %v1773_v7 = vmul.f32 %v3546_v51, %v3428_v26 }
 0xf75   : > { %v1634_v19 = vadd.f32 %v2564_v6, %v1633_v17 }
 0xf77   : > { %v1638_v25 = vsel %vm1637_vm7, %v2564_v6, %v1634_v19 }
 0xf78   : > { %v1643_v28 = vsel %vm1640_vm10, %v1642_v27, %v1638_v25  ;;  %v1617_v25 = vmul.f32 %v3554_v16, %v3568_v57  ;;  %v1742_v27 = vpop.f32.mrf.mxu1 }
 0xfbe   : > { %v1655_v42 = vpop.permute.xlu2 %1654 }
 0xfbf   : > { %v1657_v43 = vmul.f32 %v1655_v42, %v1643_v28 }
 0xfc1   : > { %1680 = vrot.lane.b32.xlu2 %v1657_v43, %s2973_s26 }
 0xfc6   : > { %v1676_v20 = vpop.permute.xlu2 %1675 }
 0xfc7   : > { %v1678_v29 = vmul.f32 %v1676_v20, %v1643_v28 }
 0xfce   : > { %v1323_v15 = vpop.xlane.xlu0 %1322 }
 0xfcf   : > { %v1324_v45 = vadd.f32 %v1323_v15, %v1312_v13 }
 0xfd1   : > { %v1345_v10 = vadd.f32 1.0, %v1324_v45 }
 0xfd3   : > { %v1346_v34 = vmul.f32 0.5, %v1345_v10 }
 0xfd5   : > { %v1347_v35 = vmax.f32 %v1346_v34, 0.0 }
 0xfd7   : > { %v1348_v37 = vmin.f32 %v1347_v35, 1.0 }
 0xfd9   : > { %vm1349_vm11 = vcmp.gt.f32.partialorder %v1348_v37, 0.5 }
 0xfda   : > { %v3581_v30 = vsel %vm1349_vm11, 1.0, %v2976_v23 }
 0xfdb   : > { %v1658_v32 = vsub.f32 1.0, %v3581_v30  ;;  %1660 = vperm.xlu2 %2496, %v3581_v30  }
 0xfdd   : > { %v1673_v14 = vmul.f32 %v3543_v46, %v1658_v32  ;;  %v1665_v33 = vmul.f32 %v1664_v47, %v1658_v32 }
 0xfdf   : > { %1686 = vperm.xlu1 %2495, %v1673_v14  }
 0xfe3   : > { %1668 = vperm.xlu2 %2496, %v1665_v33  }
0x101b   : > { %v1681_v48 = vpop.permute.xlu2 %1680 }
0x101c   : > { %v1683_v39 = vadd.f32 %v1681_v48, %v1678_v29 }
0x1035   : > { %v1661_v54 = vpop.permute.xlu2 %1660 }
0x1036   : > { %v1663_v59 = vmul.f32 %v1661_v54, %v1657_v43 }
0x103d   : > { %v1669_v56 = vpop.permute.xlu2 %1668 }
0x103e   : > { %v1671_v9 = vmul.f32 %v1669_v56, %v3514_v31  ;;  %v1702_v3 = vmul.f32 %v1669_v56, %v3523_v52 }
0x1040   : > { %v1672_v60 = vadd.f32 %v1671_v9, %v1663_v59 }
0x1051   : > { %v1687_v50 = vpop.permute.xlu1 %1686 }
0x1052   : > { %v1689_v53 = vmul.f32 %v1687_v50, %v1683_v39 }
0x1054   : > { %1691 = vrot.lane.b32.xlu0 %v1689_v53, %s3823_s21 }
0x105c   : > { %1836 = vperm.xlu0 %2494, %v1664_v47  }
0x10c6   : > { %v1692_v62 = vpop.permute.xlu0 %1691 }
0x10c7   : > { %v3589_v63 = vadd.f32 %v1692_v62, %v1672_v60 }
0x10c9   : > { %2565 = vtanh.f32 %v3589_v63 }
0x10cf   : > { %v2566_v0 = vpop.eup %2565 }
0x10d0   : > { %1697 = vrot.lane.b32.xlu2 %v2566_v0, %s3823_s21 }
0x112a   : > { %v1698_v18 = vpop.permute.xlu2 %1697 }
0x112b   : > { %v1700_v2 = vmul.f32 %v1698_v18, %v1643_v28 }
0x112d   : > { %v1701_v5 = vmul.f32 %v1700_v2, %v1661_v54  ;;  %v1704_v6 = vmul.f32 %v1700_v2, %v1687_v50  ;;  %v1837_v54 = vpop.permute.xlu0 %1836 }
0x112f   : > { %v1703_v4 = vadd.f32 %v1702_v3, %v1701_v5  ;;  %v1772_v3 = vld [vmem:[#allocation3 + $0x6] sm:$0x3] }
0x1131   : > { %v3594_v41 = vadd.f32 %v1704_v6, %v1703_v4 }
0x1133   : > { %v1723_v31 = vmul.f32 %v3594_v41, %v3550_v1 }
0x1135   : > { %1747 = vrot.lane.b32.xlu1 %v1723_v31, %s2974_s23  ;;  %v1782_v29 = vmul.f32 %v1723_v31, %v3434_v58 }
0x113d   : > { %1825 = vrot.lane.b32.xlu1 %v3538_v36, %s2973_s26  ;;  %v1724_v36 = vld [vmem:[#allocation2 + $0x6] sm:$0x3] }
0x113e   : > { %v1745_v28 = vadd.f32 %v1742_v27, %v1724_v36 }
0x1145   : > { %1775 = vrot.lane.b32.xlu1 %v1773_v7, %s2974_s23 }
0x11a7   : > { %v1748_v17 = vpop.permute.xlu1 %1747 }
0x11a8   : > { %2337 = vmatmul.msk.f32.vlgmr.msrb.gmra.mxu2 %vm803_vm3, %v1748_v17 }
0x11af   : > { %v1826_v19 = vpop.permute.xlu1 %1825 }
0x11b7   : > { %v1776_v21 = vpop.permute.xlu1 %1775 }
0x11b8   : > { %v1778_v22 = vsel %vm857_vm8, %v1776_v21, 0.0 }
0x11b9   : > { %1779 = vadd.xlane.f32.xlu1 %v1778_v22 }
0x11d2   : > { %1619 = vrot.lane.b32.xlu1 %v1617_v25, %s2974_s23 }
0x122b   : > { %v1768_v42 = vpop.f32.mrf.mxu2 }
0x122c   : > { %v1771_v26 = vadd.f32 %v1768_v42, %v1745_v28  ;;  %v1780_v60 = vpop.xlane.xlu1 %1779  ;;  %v1608_v28 = vmul.f32 %v3546_v51, %v3485_v12  ;;  %v2497_v42 = vpack.i.bf16 %v3454_v38, %v3322_v24 }
0x122d   : > { %v1781_v5 = vadd.f32 %v1780_v60, %v1772_v3 }
0x122e   : > { %2567 = vtanh.f32 %v1771_v26  ;;  %v2338_v44 = vmul.f32 -1.442695, %v1771_v26  ;;  %v2502_v26 = vpack.i.bf16 %v3581_v30, %v3502_v61 }
0x1230   : > { %2569 = vpow2.f32 %v2338_v44 }
0x1234   : > { %v2568_v43 = vpop.eup %2567 }
0x1235   : > { %1819 = vrot.lane.b32.xlu2 %v2568_v43, %s2974_s23 }
0x1236   : > { %v2570_v13 = vpop.eup %2569 }
0x1237   : > { %v1794_v15 = vadd.f32 1.0, %v2570_v13 }
0x1239   : > { %2571 = vrcp.f32 %v1794_v15  ;;  %v1806_v37 = vand.u32 2147483648, %v1794_v15  ;;  %vm1800_vm13 = vweird.f32 %v1794_v15  ;;  %v1804_v32 = vand.u32 2147483647, %v1794_v15 }
0x123b   : > { %v1807_v47 = vor.u32 1.1754944e-38, %v1806_v37  ;;  %vm1805_vm15 = vcmp.eq.f32.partialorder %v1804_v32, 8.507059e+37 }
0x123f   : > { %v2572_v45 = vpop.eup %2571 }
0x1240   : > { %v1796_v10 = vmul.f32 %v2572_v45, %v1794_v15  ;;  %vm1801_vm12 = vweird.f32 %v2572_v45 }
0x1241   : > { %vm1802_vm14 = vmor %vm1800_vm13, %vm1801_vm12 }
0x1242   : > { %v1797_v34 = vsub.f32 1.0, %v1796_v10 }
0x1244   : > { %v1798_v16 = vmul.f32 %v2572_v45, %v1797_v34  ;;  %v1620_v62 = vpop.permute.xlu1 %1619 }
0x1245   : > { %v1622_v58 = vsel %vm857_vm8, %v1620_v62, 0.0 }
0x1246   : > { %v1799_v35 = vadd.f32 %v2572_v45, %v1798_v16 }
0x1248   : > { %v1803_v14 = vsel %vm1802_vm14, %v2572_v45, %v1799_v35 }
0x1249   : > { %v1808_v20 = vsel %vm1805_vm15, %v1807_v47, %v1803_v14  ;;  %v2583_v14 = vld [vmem:[%s3855_s11] ss:$0 sm:$0xff] }
0x124a   : > { %v1828_v39 = vmul.f32 %v1826_v19, %v1808_v20 }
0x128f   : > { %v1820_v33 = vpop.permute.xlu2 %1819 }
0x1290   : > { %v1822_v48 = vmul.f32 %v1820_v33, %v1808_v20 }
0x1292   : > { %1830 = vrot.lane.b32.xlu2 %v1822_v48, %s2973_s26  ;;  %v1823_v0 = vmul.f32 %v1822_v48, %v3550_v1 }
0x129a   : > { %1784 = vrot.lane.b32.xlu2 %v1782_v29, %s2974_s23 }
0x12ec   : > { %v1831_v50 = vpop.permute.xlu2 %1830 }
0x12ed   : > { %v1833_v53 = vadd.f32 %v1831_v50, %v1828_v39 }
0x12ef   : > { %v1839_v56 = vmul.f32 %v1837_v54, %v1833_v53 }
0x12f1   : > { %1841 = vrot.lane.b32.xlu0 %v1839_v56, %s3823_s21 }
0x12f4   : > { %v1785_v9 = vpop.permute.xlu2 %1784 }
0x12f5   : > { %v1787_v59 = vsel %vm857_vm8, %v1785_v9, 0.0 }
0x12f6   : > { %1788 = vadd.xlane.f32.xlu2 %v1787_v59 }
0x130e   : > { %1095 = vrot.lane.b32.xlu2 %v3411_v11, %s2973_s26 }
0x1337   : > { %1623 = vadd.xlane.f32.xlu2 %v1622_v58 }
0x1363   : > { %v1842_v18 = vpop.permute.xlu0 %1841 }
0x1364   : > { %v3619_v2 = vadd.f32 %v1842_v18, %v1823_v0 }
0x1366   : > { %2573 = vtanh.f32 %v3619_v2 }
0x1369   : > { %v1789_v4 = vpop.xlane.xlu2 %1788 }
0x136a   : > { %v1790_v6 = vadd.f32 %v1789_v4, %v1781_v5 }
0x136c   : > { %v2574_v31 = vpop.eup %2573  ;;  %v1811_v7 = vadd.f32 1.0, %v1790_v6 }
0x136d   : > { %1847 = vrot.lane.b32.xlu0 %v2574_v31, %s3823_s21 }
0x136e   : > { %v1812_v11 = vmul.f32 0.5, %v1811_v7 }
0x1370   : > { %v1813_v17 = vmax.f32 %v1812_v11, 0.0 }
0x1371   : > { %v1096_v51 = vpop.permute.xlu2 %1095 }
0x1372   : > { %v1814_v19 = vmin.f32 %v1813_v17, 1.0  ;;  %v1105_v44 = vsel %vm803_vm3, %v3378_v40, %v1096_v51 }
0x1374   : > { %vm1815_vm0 = vcmp.gt.f32.partialorder %v1814_v19, 0.5 }
0x1375   : > { %v3624_v21 = vsel %vm1815_vm0, 1.0, %v2976_v23 }
0x1376   : > { %2030 = vst.msk [vmem:[#allocation6] sm:$0x3] %vm750_vm9, %v3624_v21  ;;  %1853 = vperm.xlu0 %2494, %v3624_v21   ;;  %v1965_v62 = vsub.f32 1.0, %v3624_v21  ;;  %v2507_v0 = vpack.i.bf16 %v3624_v21, %v3543_v46 }
0x1377   : > { %2043 = vst.msk [vmem:[%s3815_s16] sm:$0x3] %vm750_vm9, %v3624_v21 }
0x13aa   : > { %v1624_v29 = vpop.xlane.xlu2 %1623 }
0x13df   : > { %v1848_v1 = vpop.permute.xlu0 %1847 }
0x13e0   : > { %v3634_v22 = vmul.f32 %v1848_v1, %v1808_v20 }
0x13e2   : > { %1858 = vrot.lane.b32.xlu0 %v3634_v22, %s2974_s23  ;;  %v1909_v18 = vmul.f32 %v3634_v22, %v3485_v12 }
0x13e8   : > { %v1854_v25 = vpop.permute.xlu0 %1853 }
0x13e9   : > { %v1856_v27 = vmul.f32 %v1854_v25, %v3594_v41 }
0x13eb   : > { %v1918_v36 = vmul.f32 %v1856_v27, %v3568_v57  ;;  %1884 = vrot.lane.b32.xlu0 %v1856_v27, %s2974_s23 }
0x13ed   : > { %1920 = vrot.lane.b32.xlu2 %v1918_v36, %s2974_s23 }
0x13f3   : > { %1610 = vrot.lane.b32.xlu0 %v1608_v28, %s2974_s23 }
0x13fb   : > { %2498 = vrot.lane.b32.xlu0 %v2497_v42, %s2974_s23 }
0x1403   : > { %2503 = vrot.lane.b32.xlu0 %v2502_v26, %s2977_s0 }
0x140b   : > { %1407 = vrot.lane.b32.xlu0 %v3523_v52, %s2973_s26 }
0x1447   : > { %v1921_v5 = vpop.permute.xlu2 %1920 }
0x1448   : > { %v1923_v4 = vsel %vm857_vm8, %v1921_v5, 0.0 }
0x1454   : > { %v3653_v57 = vpop.permute.xlu0 %1858 }
0x1455   : > { %2024 = vst.msk [vmem:[#allocation4] sm:$0x3] %vm857_vm8, %v3653_v57  ;;  %2340 = vmatmul.msk.f32.vlgmr.msrb.gmra.mxu3 %vm803_vm3, %v3653_v57 }
0x1456   : > { %2041 = vst.msk [vmem:[#allocation24] sm:$0x3] %vm857_vm8, %v3653_v57 }
0x1457   : > { %2383 = dma.vmem_to_hbm [thread:$0]  (%p3857_p1), %s2076_s8, 32, %s2078_s20, [#allocation25]  }
0x1458   : > { %s2104_s20 = sshll.u32 %s3859_s6, 4  ;;  %s2105_s20 = int_to_ptr.hbm [resolvable:$true] %s2104_s20 }
0x145d   : > { %v1885_v24 = vpop.permute.xlu0 %1884 }
0x145e   : > { %2341 = vmatmul.msk.f32.vlgmr.msra.gmra.mxu0 %vm803_vm3, %v1885_v24 }
0x1465   : > { %v1611_v38 = vpop.permute.xlu0 %1610 }
0x1466   : > { %v1613_v61 = vsel %vm857_vm8, %v1611_v38, 0.0 }
0x1467   : > { %1614 = vadd.xlane.f32.xlu1 %v1613_v61 }
0x146d   : > { %v2499_v52 = vpop.permute.xlu0 %2498 }
0x146e   : > { %v2500_v30 = vunpack.i.l.bf16 %v2499_v52  ;;  %v2501_v10 = vunpack.i.h.bf16 %v2499_v52 }
0x1470   : > { %v1107_v15 = vsel %vm1106_vm1, %v1105_v44, %v2500_v30 }
0x1475   : > { %v2504_v43 = vpop.permute.xlu0 %2503 }
0x1476   : > { %v2505_v13 = vunpack.i.l.bf16 %v2504_v43  ;;  %v2506_v16 = vunpack.i.h.bf16 %v2504_v43 }
0x1478   : > { %v1109_v45 = vsel %vm1108_vm2, %v1107_v15, %v2505_v13 }
0x1479   : > { %1111 = vst.msk [vmem:[%s3231_s5] sm:$0x3] %vm1110_vm4, %v1109_v45 }
0x147d   : > { %v1408_v34 = vpop.permute.xlu0 %1407 }
0x147e   : > { %v1417_v35 = vsel %vm803_vm3, %v3471_v8, %v1408_v34 }
0x147f   : > { %v1418_v37 = vsel %vm1106_vm1, %v1417_v35, %v2501_v10 }
0x1480   : > { %v1419_v32 = vsel %vm1108_vm2, %v1418_v37, %v2506_v16 }
0x1481   : > { %2326 = vst.msk [vmem:[%s3231_s5 + $0x2] sm:$0x3] %vm1110_vm4, %v1419_v32 }
0x14d8   : > { %v1879_v40 = vpop.f32.mrf.mxu3 }
0x14d9   : > { %v1882_v47 = vadd.f32 %v2583_v14, %v1879_v40 }
0x14da   : > { %v1615_v33 = vpop.xlane.xlu1 %1614 }
0x14db   : > { %v1616_v20 = vadd.f32 %v3498_v49, %v1615_v33  ;;  %v1905_v48 = vpop.f32.mrf.mxu0 }
0x14dc   : > { %v1908_v39 = vadd.f32 %v1905_v48, %v1882_v47 }
0x14dd   : > { %v1625_v50 = vadd.f32 %v1624_v29, %v1616_v20 }
0x14de   : > { %2575 = vtanh.f32 %v1908_v39  ;;  %v2342_v31 = vmul.f32 -1.442695, %v1908_v39 }
0x14df   : > { %v1646_v8 = vadd.f32 1.0, %v1625_v50 }
0x14e0   : > { %2577 = vpow2.f32 %v2342_v31 }
0x14e1   : > { %v1647_v53 = vmul.f32 0.5, %v1646_v8 }
0x14e3   : > { %v1648_v54 = vmax.f32 %v1647_v53, 0.0 }
0x14e4   : > { %v2576_v56 = vpop.eup %2575 }
0x14e5   : > { %1955 = vrot.lane.b32.xlu0 %v2576_v56, %s2974_s23  ;;  %v1649_v9 = vmin.f32 %v1648_v54, 1.0 }
0x14e6   : > { %v2578_v11 = vpop.eup %2577 }
0x14e7   : > { %vm1650_vm5 = vcmp.gt.f32.partialorder %v1649_v9, 0.5  ;;  %v1930_v19 = vadd.f32 1.0, %v2578_v11 }
0x14e8   : > { %v2334_v59 = vsel %vm1650_vm5, 1.0, %v2976_v23 }
0x14e9   : > { %1961 = vperm.xlu2 %2496, %v2334_v59   ;;  %v1959_v60 = vsub.f32 1.0, %v2334_v59  ;;  %2579 = vrcp.f32 %v1930_v19  ;;  %vm1936_vm7 = vweird.f32 %v1930_v19  ;;  %v1940_v38 = vand.u32 2147483647, %v1930_v19 }
0x14eb   : > { %v1966_v58 = vmul.f32 %v1965_v62, %v1959_v60  ;;  %v1974_v3 = vmul.f32 %v3624_v21, %v1959_v60  ;;  %vm1941_vm11 = vcmp.eq.f32.partialorder %v1940_v38, 8.507059e+37 }
0x14ed   : > { %1708 = vrot.lane.b32.xlu0 %v3594_v41, %s2973_s26 }
0x14ef   : > { %v2580_v36 = vpop.eup %2579 }
0x14f0   : > { %v1932_v28 = vmul.f32 %v2580_v36, %v1930_v19  ;;  %vm1937_vm6 = vweird.f32 %v2580_v36 }
0x14f1   : > { %1969 = vperm.xlu2 %2496, %v1966_v58   ;;  %vm1938_vm10 = vmor %vm1936_vm7, %vm1937_vm6 }
0x14f2   : > { %v1933_v42 = vsub.f32 1.0, %v1932_v28 }
0x14f4   : > { %v1934_v26 = vmul.f32 %v2580_v36, %v1933_v42 }
0x14f5   : > { %2508 = vrot.lane.b32.xlu0 %v2507_v0, %s2974_s23 }
0x14f6   : > { %v1935_v24 = vadd.f32 %v2580_v36, %v1934_v26 }
0x14f8   : > { %v1939_v61 = vsel %vm1938_vm10, %v2580_v36, %v1935_v24 }
0x14fd   : > { %1715 = vrot.lane.b32.xlu0 %v2334_v59, %s2977_s0 }
0x1505   : > { %1911 = vrot.lane.b32.xlu0 %v1909_v18, %s2974_s23 }
0x150d   : > { %1976 = vrot.lane.b32.xlu0 %v3589_v63, %s2973_s26 }
0x1515   : > { %1987 = vperm.xlu0 %2494, %v1974_v3  }
0x153f   : > { %1924 = vadd.xlane.f32.xlu0 %v1923_v4 }
0x1543   : > { %v1962_v33 = vpop.permute.xlu2 %1961 }
0x154b   : > { %v1970_v20 = vpop.permute.xlu2 %1969 }
0x154c   : > { %v2003_v56 = vmul.f32 %v1970_v20, %v3594_v41 }
0x1557   : > { %v1956_v46 = vpop.permute.xlu0 %1955 }
0x155f   : > { %v1709_v6 = vpop.permute.xlu0 %1708 }
0x1560   : > { %v1718_v17 = vsel %vm803_vm3, %v3561_v55, %v1709_v6  ;;  %v1942_v55 = vand.u32 2147483648, %v1930_v19 }
0x1562   : > { %v1943_v52 = vor.u32 1.1754944e-38, %v1942_v55 }
0x1564   : > { %v1944_v51 = vsel %vm1941_vm11, %v1943_v52, %v1939_v61 }
0x1565   : > { %v1958_v30 = vmul.f32 %v1956_v46, %v1944_v51 }
0x1567   : > { %v3695_v7 = vpop.permute.xlu0 %2508  ;;  %v1964_v48 = vmul.f32 %v1962_v33, %v1958_v30 }
0x1568   : > { %v2510_v12 = vunpack.i.l.bf16 %v3695_v7  ;;  %v2511_v58 = vunpack.i.h.bf16 %v3695_v7 }
0x156a   : > { %v1719_v21 = vsel %vm1106_vm1, %v1718_v17, %v2510_v12 }
0x156f   : > { %v1716_v1 = vpop.permute.xlu0 %1715 }
0x1570   : > { %v1720_v22 = vsel %vm1108_vm2, %v1719_v21, %v1716_v1 }
0x1571   : > { %2335 = vst.msk [vmem:[%s3231_s5 + $0x4] sm:$0x3] %vm1110_vm4, %v1720_v22 }
0x1577   : > { %v1912_v25 = vpop.permute.xlu0 %1911 }
0x1578   : > { %v1914_v27 = vsel %vm857_vm8, %v1912_v25, 0.0 }
0x1579   : > { %1915 = vadd.xlane.f32.xlu1 %v1914_v27 }
0x157f   : > { %v1977_v43 = vpop.permute.xlu0 %1976 }
0x1580   : > { %v1979_v40 = vmul.f32 %v1977_v43, %v1944_v51 }
0x1587   : > { %v1988_v44 = vpop.permute.xlu0 %1987 }
0x1592   : > { %1981 = vrot.lane.b32.xlu1 %v1958_v30, %s2973_s26 }
0x15b2   : > { %v1925_v45 = vpop.xlane.xlu0 %1924 }
0x15ec   : > { %v1916_v13 = vpop.xlane.xlu1 %1915 }
0x15ed   : > { %v1917_v15 = vadd.f32 %v3498_v49, %v1916_v13 }
0x15ef   : > { %v1926_v10 = vadd.f32 %v1925_v45, %v1917_v15 }
0x15f1   : > { %v1947_v34 = vadd.f32 1.0, %v1926_v10 }
0x15f3   : > { %v1948_v16 = vmul.f32 0.5, %v1947_v34 }
0x15f5   : > { %v1949_v35 = vmax.f32 %v1948_v16, 0.0 }
0x15f7   : > { %v1950_v37 = vmin.f32 %v1949_v35, 1.0 }
0x15f9   : > { %vm1951_vm12 = vcmp.gt.f32.partialorder %v1950_v37, 0.5 }
0x15fa   : > { %v2343_v32 = vsel %vm1951_vm12, 1.0, %v2976_v23  ;;  %v1972_v23 = vmul.f32 %v1970_v20, %v3589_v63 }
0x15fb   : > { %2040 = vst.msk [vmem:[#allocation9] sm:$0x3] %vm750_vm9, %v2343_v32 }
0x15fc   : > { %2046 = vst.msk [vmem:[%s3818_s19] sm:$0x3] %vm750_vm9, %v2343_v32  ;;  %v1973_v29 = vadd.f32 %v1972_v23, %v1964_v48 }
0x1604   : > { %v1982_v14 = vpop.permute.xlu1 %1981 }
0x1605   : > { %v1984_v47 = vadd.f32 %v1982_v14, %v1979_v40 }
0x1607   : > { %v1990_v49 = vmul.f32 %v1988_v44, %v1984_v47 }
0x1609   : > { %1992 = vrot.lane.b32.xlu1 %v1990_v49, %s3823_s21 }
0x1611   : > { %2026 = vrot.lane.b32.xlu1 %v3619_v2, %s2973_s26 }
0x167b   : > { %v1993_v39 = vpop.permute.xlu1 %1992 }
0x167c   : > { %v1995_v50 = vadd.f32 %v1993_v39, %v1973_v29 }
0x167e   : > { %2581 = vtanh.f32 %v1995_v50 }
0x1683   : > { %v2027_v8 = vpop.permute.xlu1 %2026 }
0x1684   : > { %v2582_v53 = vpop.eup %2581  ;;  %2029 = vst.msk [vmem:[#allocation5] sm:$0x3] %vm857_vm8, %v2027_v8 }
0x1685   : > { %2042 = vst.msk [vmem:[#allocation26] sm:$0x3] %vm857_vm8, %v2027_v8  ;;  %1998 = vrot.lane.b32.xlu2 %v2582_v53, %s3823_s21 }
0x1686   : > { %2385 = dma.vmem_to_hbm [thread:$0]  (%p3858_p4), %s2088_s30, 32, %s2090_s24, [#allocation25]  }
0x1687   : > { %s3861_s24 = sld [smem:[#allocation49_spill]]  ;;  %s2060_s30 = sshll.u32 %s3231_s5, 4  ;;  %s2061_s30 = int_to_ptr.vmem [resolvable:$true] %s2060_s30 }
0x168d   : > { %2016 = vrot.lane.b32.xlu2 %v2343_v32, %s2977_s0  ;;  %s2358_s0 = sshll.u32 %s3113_s3, 3  ;;  %s2868_s10 = scalar_lea.hbm %s3861_s24, 16 }
0x168e   : > { %s2059_s27 = scalar_lea.hbm %s3861_s24, %s2358_s0 }
0x16df   : > { %v1999_v2 = vpop.permute.xlu2 %1998 }
0x16e0   : > { %v2001_v54 = vmul.f32 %v1999_v2, %v1944_v51 }
0x16e2   : > { %v2002_v63 = vmul.f32 %v2001_v54, %v1962_v33  ;;  %v2005_v59 = vmul.f32 %v2001_v54, %v1988_v44 }
0x16e4   : > { %v2004_v9 = vadd.f32 %v2003_v56, %v2002_v63 }
0x16e6   : > { %v2006_v60 = vadd.f32 %v2005_v59, %v2004_v9 }
0x16e7   : > { %v2017_v41 = vpop.permute.xlu2 %2016 }
0x16e8   : > { %2031 = vrot.lane.b32.xlu2 %v2006_v60, %s2974_s23  ;;  %2009 = vrot.lane.b32.xlu1 %v2006_v60, %s2973_s26  ;;  %s2102_s23 = sshll.u32 %s2980_s12, 4  ;;  %s2062_s12 = sshll.u32 %s2059_s27, 4  ;;  %s2103_s23 = int_to_ptr.vmem [resolvable:$true] %s2102_s23  ;;  %s2063_s12 = int_to_ptr.hbm [resolvable:$true] %s2062_s12 }
0x16e9   : > { %s2862_s28 = sshra.s32 %s2063_s12, 4  ;;  %s2863_s28 = int_to_ptr.hbm [resolvable:$true] %s2862_s28 }
0x16ea   : > { %s2864_s27 = scalar_lea.hbm %s2863_s28, 8  ;;  %p2869_p10 = scmp.lt.s32.totalorder %s2863_s28, %s3861_s24 }
0x16eb   : > { %p2865_p13 = scmp.ne.s32.totalorder %s2863_s28, %s2864_s27  ;;  %p2870_p11 = scmp.lt.s32.totalorder %s2868_s10, %s2864_s27 }
0x16ed   : > { %p2866_p9 = pnand %p2865_p13, %p3178_p0  ;;  %p2871_p2 = por %p2870_p11, %p2869_p10 }
0x16ef   : > { %p2867_p8 = pneg %p2866_p9 }
0x16f0   : > { %2036 = vrot.lane.b32.xlu1 %v1995_v50, %s2973_s26  ;;  %s2048_s26 = scalar_lea.sflag [#allocation14], %s3209_s18 }
0x16f1   : > { %p2872_p6 = pnand %p2871_p2, %p2867_p8 }
0x1742   : > { %v2032_v62 = vpop.permute.xlu2 %2031 }
0x1743   : > { %2034 = vst.msk [vmem:[#allocation7] sm:$0x3] %vm857_vm8, %v2032_v62 }
0x1744   : > { %2044 = vst.msk [vmem:[#allocation27] sm:$0x3] %vm857_vm8, %v2032_v62 }
0x1745   : > { %2387 = dma.vmem_to_hbm [thread:$0]  (%p3860_p12), %s2103_s23, 32, %s2105_s20, [#allocation28]  }
0x1746   : > { %s2981_s23 = smov [#allocation29]   ;;  %s3862_s20 = sld [smem:[#allocation51_spill]] }
0x1747   : > { %s2114_s8 = sshll.u32 %s2981_s23, 4  ;;  %s2115_s8 = int_to_ptr.vmem [resolvable:$true] %s2114_s8 }
0x174c   : > { %s2116_s0 = sshll.u32 %s3862_s20, 4  ;;  %s2117_s0 = int_to_ptr.hbm [resolvable:$true] %s2116_s0 }
0x175a   : > { %v2010_v0 = vpop.permute.xlu1 %2009 }
0x175b   : > { %v2019_v18 = vsel %vm803_vm3, %v3653_v57, %v2010_v0 }
0x175c   : > { %v2020_v3 = vsel %vm1106_vm1, %v2019_v18, %v2511_v58 }
0x175d   : > { %v2021_v5 = vsel %vm1108_vm2, %v2020_v3, %v2017_v41 }
0x175e   : > { %2344 = vst.msk [vmem:[%s3231_s5 + $0x6] sm:$0x3] %vm1110_vm4, %v2021_v5 }
0x175f   : > { %2875 = shalt.err (!%p2872_p6)
}
0x1760   : > { %s2982_s18 = smov 2   ;;  %s3863_s23 = smov 32  }
0x1761   : > { %2381 = dma.vmem_to_hbm [thread:$0]  (%p3178_p0), %s2061_s30, 128, %s2063_s12, %s2048_s26, %s3863_s23, %s3863_s23, %s2982_s18  }
0x1762   : > { %v2037_v57 = vpop.permute.xlu1 %2036  ;;  %p3864_p5 = pmov %p3857_p1  ;;  %p3865_p3 = pmov %p3857_p1 }
0x1763   : > { %2039 = vst.msk [vmem:[#allocation8] sm:$0x3] %vm857_vm8, %v2037_v57 }
0x1764   : > { %2045 = vst.msk [vmem:[#allocation29] sm:$0x3] %vm857_vm8, %v2037_v57 }
0x1765   : > { %2389 = dma.vmem_to_hbm [thread:$0]  (%p3864_p5), %s2115_s8, 32, %s2117_s0, [#allocation28]  }
0x1766   : > { %2937 = dma.done.wait (%p3865_p3), [#allocation25], 64  }
0x1767   : > { %2939 = vsyncadd (%p3857_p1), [#allocation25], 4294967232  ;;  %p3866_p4 = pmov %p3857_p1 }
0x1768   : > { %p3867_p12 = pmov %p3857_p1 }
0x1769   : > { %2941 = dma.done.wait (%p3866_p4), [#allocation28], 64  }
0x176a   : > { %2943 = vsyncadd (%p3867_p12), [#allocation28], 4294967232 }
0x176b PF: > { %s2157_s7 = sand.u32 1, %s2950_s1   ;;  %p3868_p0 = scmp.ge.s32.totalorder %s2962_s2, 2 }
0x176c   : > { %s2158_s10 = scalar_lea.sflag [#allocation14], %s2157_s7 }
0x176d   : > { %p2420_p13 = pnand %p3868_p0, %p3183_p7 }
0x176f   : > { %p2421_p9 = pneg %p2420_p13 }
0x1771   : > { %2945 = dma.done.wait (%p2421_p9), %s2158_s10, 128  }
0x1772   : > { %2947 = vsyncadd (%p2421_p9), %s2158_s10, 4294967168  ;;  %s3869_s11 = sld [smem:[#allocation37_spill]]  ;;  %p42_p8 = scmp.ge.s32.totalorder %s3156_s29, 4  }
0x1773   : > { %s3870_s1 = smov %s2954_s22  ;;  %s3871_s22 = smov %s2958_s4 }
0x1774   : > { %s3873_s2 = smov %s3156_s29  ;;  %44 = sbr.rel (!%p42_p8) target bundleno = 25 (0x19), region = 198 }
0x1778   : > { %s3872_s4 = smov %s3869_s11 }
0x1779   :  { %2164 = vsyncpa [#allocation13], 1 }
0x177a   :  { %2166 = vsyncpa [#allocation13 + $0x1], 1 }
0x177b   :  { %2167 = vsyncpa [#allocation16], 1 }
0x177c   :  { %2168 = vsyncpa [#allocation19], 1 }
0x177d   :  { %2169 = vsyncpa [#allocation22], 1 }
0x177e   :  { %2170 = vsyncpa [#allocation14], 1 }
0x177f   :  { %2172 = vsyncpa [#allocation14 + $0x1], 1 }
0x1780   :  { %2173 = vsyncpa [#allocation25], 1 }
0x1781   :  { %2174 = vsyncpa [#allocation28], 1 }

</bundles_post_ra>
